<compile_context>
chip_gen: v5e
topology: v5e:2x2
jax: 0.10.0
libtpu: 0.0.40
codegen_flags: <defaults>
</compile_context>

<pallas_src>
import functools

import jax
import jax.numpy as jnp
from jax import lax
from jax.experimental import pallas as pl
from jax.experimental.pallas import tpu as pltpu


CIN = 64          # Mixed_3a input channels (fixed by the module)
COUT = 96         # conv branch output channels
COUT_PAD = 128    # lane-padded conv width used inside the kernel
BN_EPS = 1e-3


# ------------------------------ Pallas kernel -------------------------------

def _mixed3a_kernel(ee_ref, eo_ref, oe_ref, oo_ref, w_ref, b_ref,
                    pool_ref, conv_ref, *, tr, wo):
    """One (batch, row-tile) step: fused 3x3/s2 max-pool and 3x3/s2 conv+BN+ReLU.

    ee/eo/oe/oo : parity planes of the NHWC input (whole, possibly row-padded,
                  image per batch element; resident across the row-tile axis).
    w_ref       : (9*CIN, COUT_PAD) bf16 weights with BN scale folded in.
    b_ref       : (1, COUT_PAD) f32 bias (beta - mean * scale, zero padded).
    pool_ref    : (1, tr, wo, CIN)      f32 max-pool branch output tile.
    conv_ref    : (1, tr, wo, COUT_PAD) f32 conv branch output tile (padded).

    The 9 stride-2 taps are streamed one at a time: each tap updates a running
    max (pool) and is immediately consumed by a small MXU matmul accumulating
    the conv branch in f32.  No patch matrix is built, so register pressure
    stays low and no 64-lane-offset packing is needed.
    """
    planes = ((ee_ref, eo_ref), (oe_ref, oo_ref))
    r0 = pl.multiple_of(pl.program_id(1) * tr, tr)   # first output row of tile
    m = tr * wo

    pool = None
    acc = jnp.zeros((m, COUT_PAD), jnp.float32)
    for t in range(9):
        i, j = divmod(t, 3)
        p = planes[i % 2][j % 2]
        # tap[r, c, ci] == x_nhwc[2*(r0+r)+i, 2*c+j, ci]  -- contiguous slice.
        tap = p[0, pl.ds(r0 + i // 2, tr), pl.ds(j // 2, wo), :]
        pool = tap if pool is None else jnp.maximum(pool, tap)     # exact f32
        acc = acc + jnp.dot(tap.astype(jnp.bfloat16).reshape(m, CIN),
                            w_ref[t * CIN:(t + 1) * CIN, :],
                            preferred_element_type=jnp.float32)

    conv = jnp.maximum(acc + b_ref[...], 0.0)

    # Lane-aligned stores: pool at lane offset 0, conv a full unmasked
    # 128-lane slab.
    pool_ref[0, :, :, :] = pool
    conv_ref[0, :, :, :] = conv.reshape(tr, wo, COUT_PAD)


# -------------------------------- JAX glue ----------------------------------

def mixed_3a(params, x_nchw):
    n, c, h, w = x_nchw.shape
    assert c == CIN, c
    ho = (h - 3) // 2 + 1
    wo = (w - 3) // 2 + 1

    # Row tile chosen so M = tr*wo lands near 256 (MXU depth on v6e/v7x).
    # cdiv-based: odd ho is handled by padding the last partial tile instead
    # of degrading to tr=1.
    tr = min(ho, max(1, -(-256 // wo)))
    n_row_tiles = -(-ho // tr)
    ho_pad = n_row_tiles * tr
    pad_r = ho_pad - ho

    # Parity planes (even/odd rows x even/odd cols) built directly from the
    # NCHW input: each plane is one fused slice+transpose pass (no full NHWC
    # intermediate).  Total bytes == input bytes, and every stride-2 tap
    # becomes a contiguous slice inside the kernel.
    row_sl = (slice(0, 2 * ho + 1, 2), slice(1, 2 * ho, 2))   # even, odd rows
    col_sl = (slice(0, 2 * wo + 1, 2), slice(1, 2 * wo, 2))   # even, odd cols

    def plane(a, b):
        p = x_nchw[:, :, row_sl[a], col_sl[b]]
        p = jnp.transpose(p, (0, 2, 3, 1)).astype(jnp.float32)   # -> NHWC
        if pad_r:
            p = jnp.pad(p, ((0, 0), (0, pad_r), (0, 0), (0, 0)))
        return p

    ee, eo, oe, oo = plane(0, 0), plane(0, 1), plane(1, 0), plane(1, 1)

    # Fold BatchNorm (eval) into the weights; pad Cout 96 -> 128 for a
    # lane-dense MXU output; bf16 weights, f32 accumulation in-kernel.
    wt = params["w"]                                        # (COUT, CIN, 3, 3)
    inv_std = 1.0 / jnp.sqrt(params["var"] + BN_EPS)
    scale = params["gamma"] * inv_std                       # (COUT,)
    bias = params["beta"] - params["mean"] * scale          # (COUT,)
    wmat = jnp.transpose(wt, (2, 3, 1, 0)).reshape(9 * CIN, COUT) * scale[None, :]
    wmat = jnp.pad(wmat, ((0, 0), (0, COUT_PAD - COUT))).astype(jnp.bfloat16)
    bias = jnp.pad(bias, (0, COUT_PAD - COUT)).reshape(1, COUT_PAD).astype(jnp.float32)

    kernel = functools.partial(_mixed3a_kernel, tr=tr, wo=wo)

    def plane_spec(p):
        shp = p.shape
        return pl.BlockSpec((1, shp[1], shp[2], shp[3]),
                            lambda nn, rr: (nn, 0, 0, 0))

    pool_out, conv_out = pl.pallas_call(
        kernel,
        out_shape=(jax.ShapeDtypeStruct((n, ho_pad, wo, CIN), jnp.float32),
                   jax.ShapeDtypeStruct((n, ho_pad, wo, COUT_PAD), jnp.float32)),
        grid=(n, n_row_tiles),
        in_specs=[
            plane_spec(ee), plane_spec(eo), plane_spec(oe), plane_spec(oo),
            pl.BlockSpec((9 * CIN, COUT_PAD), lambda nn, rr: (0, 0)),
            pl.BlockSpec((1, COUT_PAD), lambda nn, rr: (0, 0)),
        ],
        out_specs=(
            pl.BlockSpec((1, tr, wo, CIN), lambda nn, rr: (nn, rr, 0, 0)),
            pl.BlockSpec((1, tr, wo, COUT_PAD), lambda nn, rr: (nn, rr, 0, 0)),
        ),
        compiler_params=pltpu.CompilerParams(
            dimension_semantics=("parallel", "parallel"),
            vmem_limit_bytes=48 * 1024 * 1024),
    )(ee, eo, oe, oo, wmat, bias)

    # The un-pad / channel slice rides the NHWC->NCHW transpose; the concat is
    # done in NCHW where it is a cheap contiguous copy.
    pool_nchw = jnp.transpose(pool_out[:, :ho], (0, 3, 1, 2))
    conv_nchw = jnp.transpose(conv_out[:, :ho, :, :COUT], (0, 3, 1, 2))
    return jnp.concatenate([pool_nchw, conv_nchw], axis=1)


# ------------------------------ reference ----------------------------------

def mixed_3a_reference(params, x_nchw):
    conv = lax.conv_general_dilated(
        x_nchw, params["w"], window_strides=(2, 2), padding="VALID",
        dimension_numbers=("NCHW", "OIHW", "NCHW"),
        precision=lax.Precision.HIGHEST)
    inv_std = 1.0 / jnp.sqrt(params["var"] + BN_EPS)
    scale = (params["gamma"] * inv_std)[None, :, None, None]
    shift = (params["beta"] - params["mean"] * params["gamma"] * inv_std)[None, :, None, None]
    conv = jnp.maximum(conv * scale + shift, 0.0)
    pool = lax.reduce_window(x_nchw, -jnp.inf, lax.max,
                             (1, 1, 3, 3), (1, 1, 2, 2), "VALID")
    return jnp.concatenate([pool, conv], axis=1)


# ------------------------------ parameters ----------------------------------

def init_mixed_3a_params(key):
    k1, k2, k3, k4, k5 = jax.random.split(key, 5)
    return dict(
        w=0.05 * jax.random.normal(k1, (COUT, CIN, 3, 3), jnp.float32),
        gamma=1.0 + 0.1 * jax.random.normal(k2, (COUT,), jnp.float32),
        beta=0.1 * jax.random.normal(k3, (COUT,), jnp.float32),
        mean=0.1 * jax.random.normal(k4, (COUT,), jnp.float32),
        var=0.5 + jax.random.uniform(k5, (COUT,), jnp.float32),
    )


# --------------------------------- main --------------------------------------

if __name__ == "__main__":
    key = jax.random.PRNGKey(0)
    kx, kp = jax.random.split(key)

    # 64 input channels are fixed by Mixed_3a; small batch / spatial size.
    x = jax.random.normal(kx, (2, CIN, 33, 33), jnp.float32)
    params = init_mixed_3a_params(kp)

    fwd = jax.jit(functools.partial(mixed_3a, params))
    out = fwd(x)
    jax.block_until_ready(out)

    # maxpool (64 ch) + conv (96 ch) = 160 channels, 16x16 spatial
    assert out.shape == (2, CIN + COUT, 16, 16), out.shape
    assert out.dtype == jnp.float32

    ref = mixed_3a_reference(params, x)
    max_err = float(jnp.max(jnp.abs(out - ref)))
    assert max_err < 0.2, f"max abs err {max_err}"

    print("KERNEL_OK")
</pallas_src>

<mosaic_0001>
module attributes {stable_mosaic.version = 11 : i64} {
  func.func @_mixed3a_kernel(%arg0: i32, %arg1: i32, %arg2: memref<1x17x17x64xf32, #tpu.memory_space<vmem>>, %arg3: memref<1x17x16x64xf32, #tpu.memory_space<vmem>>, %arg4: memref<1x16x17x64xf32, #tpu.memory_space<vmem>>, %arg5: memref<1x16x16x64xf32, #tpu.memory_space<vmem>>, %arg6: memref<576x128xbf16, #tpu.memory_space<vmem>>, %arg7: memref<1x128xf32, #tpu.memory_space<vmem>>, %arg8: memref<1x16x16x64xf32, #tpu.memory_space<vmem>>, %arg9: memref<1x16x16x128xf32, #tpu.memory_space<vmem>>) attributes {dimension_semantics = [#tpu.dimension_semantics<parallel>, #tpu.dimension_semantics<parallel>], iteration_bounds = array<i64: 2, 1>, scalar_prefetch = 0 : i64, scratch_operands = 0 : i64, tpu.core_type = #tpu.core_type<tc>, window_params = [{transform_indices = @transform_0, window_bounds = array<i64: 1, 17, 17, 64>}, {transform_indices = @transform_1, window_bounds = array<i64: 1, 17, 16, 64>}, {transform_indices = @transform_2, window_bounds = array<i64: 1, 16, 17, 64>}, {transform_indices = @transform_3, window_bounds = array<i64: 1, 16, 16, 64>}, {pipeline_mode = #tpu.pipeline_mode<synchronous>, transform_indices = @transform_4, window_bounds = array<i64: 576, 128>}, {pipeline_mode = #tpu.pipeline_mode<synchronous>, transform_indices = @transform_5, window_bounds = array<i64: 1, 128>}, {transform_indices = @transform_6, window_bounds = array<i64: 1, 16, 16, 64>}, {transform_indices = @transform_7, window_bounds = array<i64: 1, 16, 16, 128>}]} {
    %c16_i32 = arith.constant 16 : i32
    %0 = arith.muli %arg1, %c16_i32 : i32
    %1 = tpu.assume_multiple %0, 16 : i32
    %cst = arith.constant 0.000000e+00 : f32
    %2 = vector.broadcast %cst : f32 to vector<256x128xf32>
    %c0_i32 = arith.constant 0 : i32
    %3 = arith.addi %1, %c0_i32 : i32
    %c0 = arith.constant 0 : index
    %4 = arith.index_cast %3 : i32 to index
    %c0_0 = arith.constant 0 : index
    %c0_1 = arith.constant 0 : index
    %5 = vector.load %arg2[%c0, %4, %c0_0, %c0_1] : memref<1x17x17x64xf32, #tpu.memory_space<vmem>>, vector<1x16x16x64xf32>
    %6 = vector.shape_cast %5 : vector<1x16x16x64xf32> to vector<16x16x64xf32>
    %7 = arith.truncf %6 : vector<16x16x64xf32> to vector<16x16x64xbf16>
    %8 = vector.shape_cast %7 : vector<16x16x64xbf16> to vector<256x64xbf16>
    %c0_2 = arith.constant 0 : index
    %c0_3 = arith.constant 0 : index
    %9 = vector.load %arg6[%c0_2, %c0_3] : memref<576x128xbf16, #tpu.memory_space<vmem>>, vector<64x128xbf16>
    %cst_4 = arith.constant dense<0.000000e+00> : vector<256x128xf32>
    %10 = tpu.matmul %8, %9, %cst_4 {dimension_numbers = #tpu.dot_dimension_numbers<[1], [0], [0], [1], [0, 0, 1, 1], [], []>} : vector<256x64xbf16>, vector<64x128xbf16>, vector<256x128xf32> -> vector<256x128xf32>
    %11 = arith.addf %2, %10 : vector<256x128xf32>
    %c0_i32_5 = arith.constant 0 : i32
    %12 = arith.addi %1, %c0_i32_5 : i32
    %c0_6 = arith.constant 0 : index
    %13 = arith.index_cast %12 : i32 to index
    %c0_7 = arith.constant 0 : index
    %c0_8 = arith.constant 0 : index
    %14 = vector.load %arg3[%c0_6, %13, %c0_7, %c0_8] : memref<1x17x16x64xf32, #tpu.memory_space<vmem>>, vector<1x16x16x64xf32>
    %15 = vector.shape_cast %14 : vector<1x16x16x64xf32> to vector<16x16x64xf32>
    %16 = arith.maximumf %6, %15 : vector<16x16x64xf32>
    %17 = arith.truncf %15 : vector<16x16x64xf32> to vector<16x16x64xbf16>
    %18 = vector.shape_cast %17 : vector<16x16x64xbf16> to vector<256x64xbf16>
    %c64 = arith.constant 64 : index
    %c0_9 = arith.constant 0 : index
    %19 = vector.load %arg6[%c64, %c0_9] : memref<576x128xbf16, #tpu.memory_space<vmem>>, vector<64x128xbf16>
    %cst_10 = arith.constant dense<0.000000e+00> : vector<256x128xf32>
    %20 = tpu.matmul %18, %19, %cst_10 {dimension_numbers = #tpu.dot_dimension_numbers<[1], [0], [0], [1], [0, 0, 1, 1], [], []>} : vector<256x64xbf16>, vector<64x128xbf16>, vector<256x128xf32> -> vector<256x128xf32>
    %21 = arith.addf %11, %20 : vector<256x128xf32>
    %c0_i32_11 = arith.constant 0 : i32
    %22 = arith.addi %1, %c0_i32_11 : i32
    %c0_12 = arith.constant 0 : index
    %23 = arith.index_cast %22 : i32 to index
    %c1 = arith.constant 1 : index
    %c0_13 = arith.constant 0 : index
    %24 = vector.load %arg2[%c0_12, %23, %c1, %c0_13] : memref<1x17x17x64xf32, #tpu.memory_space<vmem>>, vector<1x16x16x64xf32>
    %25 = vector.shape_cast %24 : vector<1x16x16x64xf32> to vector<16x16x64xf32>
    %26 = arith.maximumf %16, %25 : vector<16x16x64xf32>
    %27 = arith.truncf %25 : vector<16x16x64xf32> to vector<16x16x64xbf16>
    %28 = vector.shape_cast %27 : vector<16x16x64xbf16> to vector<256x64xbf16>
    %c128 = arith.constant 128 : index
    %c0_14 = arith.constant 0 : index
    %29 = vector.load %arg6[%c128, %c0_14] : memref<576x128xbf16, #tpu.memory_space<vmem>>, vector<64x128xbf16>
    %cst_15 = arith.constant dense<0.000000e+00> : vector<256x128xf32>
    %30 = tpu.matmul %28, %29, %cst_15 {dimension_numbers = #tpu.dot_dimension_numbers<[1], [0], [0], [1], [0, 0, 1, 1], [], []>} : vector<256x64xbf16>, vector<64x128xbf16>, vector<256x128xf32> -> vector<256x128xf32>
    %31 = arith.addf %21, %30 : vector<256x128xf32>
    %c0_i32_16 = arith.constant 0 : i32
    %32 = arith.addi %1, %c0_i32_16 : i32
    %c0_17 = arith.constant 0 : index
    %33 = arith.index_cast %32 : i32 to index
    %c0_18 = arith.constant 0 : index
    %c0_19 = arith.constant 0 : index
    %34 = vector.load %arg4[%c0_17, %33, %c0_18, %c0_19] : memref<1x16x17x64xf32, #tpu.memory_space<vmem>>, vector<1x16x16x64xf32>
    %35 = vector.shape_cast %34 : vector<1x16x16x64xf32> to vector<16x16x64xf32>
    %36 = arith.maximumf %26, %35 : vector<16x16x64xf32>
    %37 = arith.truncf %35 : vector<16x16x64xf32> to vector<16x16x64xbf16>
    %38 = vector.shape_cast %37 : vector<16x16x64xbf16> to vector<256x64xbf16>
    %c192 = arith.constant 192 : index
    %c0_20 = arith.constant 0 : index
    %39 = vector.load %arg6[%c192, %c0_20] : memref<576x128xbf16, #tpu.memory_space<vmem>>, vector<64x128xbf16>
    %cst_21 = arith.constant dense<0.000000e+00> : vector<256x128xf32>
    %40 = tpu.matmul %38, %39, %cst_21 {dimension_numbers = #tpu.dot_dimension_numbers<[1], [0], [0], [1], [0, 0, 1, 1], [], []>} : vector<256x64xbf16>, vector<64x128xbf16>, vector<256x128xf32> -> vector<256x128xf32>
    %41 = arith.addf %31, %40 : vector<256x128xf32>
    %c0_i32_22 = arith.constant 0 : i32
    %42 = arith.addi %1, %c0_i32_22 : i32
    %c0_23 = arith.constant 0 : index
    %43 = arith.index_cast %42 : i32 to index
    %c0_24 = arith.constant 0 : index
    %c0_25 = arith.constant 0 : index
    %44 = vector.load %arg5[%c0_23, %43, %c0_24, %c0_25] : memref<1x16x16x64xf32, #tpu.memory_space<vmem>>, vector<1x16x16x64xf32>
    %45 = vector.shape_cast %44 : vector<1x16x16x64xf32> to vector<16x16x64xf32>
    %46 = arith.maximumf %36, %45 : vector<16x16x64xf32>
    %47 = arith.truncf %45 : vector<16x16x64xf32> to vector<16x16x64xbf16>
    %48 = vector.shape_cast %47 : vector<16x16x64xbf16> to vector<256x64xbf16>
    %c256 = arith.constant 256 : index
    %c0_26 = arith.constant 0 : index
    %49 = vector.load %arg6[%c256, %c0_26] : memref<576x128xbf16, #tpu.memory_space<vmem>>, vector<64x128xbf16>
    %cst_27 = arith.constant dense<0.000000e+00> : vector<256x128xf32>
    %50 = tpu.matmul %48, %49, %cst_27 {dimension_numbers = #tpu.dot_dimension_numbers<[1], [0], [0], [1], [0, 0, 1, 1], [], []>} : vector<256x64xbf16>, vector<64x128xbf16>, vector<256x128xf32> -> vector<256x128xf32>
    %51 = arith.addf %41, %50 : vector<256x128xf32>
    %c0_i32_28 = arith.constant 0 : i32
    %52 = arith.addi %1, %c0_i32_28 : i32
    %c0_29 = arith.constant 0 : index
    %53 = arith.index_cast %52 : i32 to index
    %c1_30 = arith.constant 1 : index
    %c0_31 = arith.constant 0 : index
    %54 = vector.load %arg4[%c0_29, %53, %c1_30, %c0_31] : memref<1x16x17x64xf32, #tpu.memory_space<vmem>>, vector<1x16x16x64xf32>
    %55 = vector.shape_cast %54 : vector<1x16x16x64xf32> to vector<16x16x64xf32>
    %56 = arith.maximumf %46, %55 : vector<16x16x64xf32>
    %57 = arith.truncf %55 : vector<16x16x64xf32> to vector<16x16x64xbf16>
    %58 = vector.shape_cast %57 : vector<16x16x64xbf16> to vector<256x64xbf16>
    %c320 = arith.constant 320 : index
    %c0_32 = arith.constant 0 : index
    %59 = vector.load %arg6[%c320, %c0_32] : memref<576x128xbf16, #tpu.memory_space<vmem>>, vector<64x128xbf16>
    %cst_33 = arith.constant dense<0.000000e+00> : vector<256x128xf32>
    %60 = tpu.matmul %58, %59, %cst_33 {dimension_numbers = #tpu.dot_dimension_numbers<[1], [0], [0], [1], [0, 0, 1, 1], [], []>} : vector<256x64xbf16>, vector<64x128xbf16>, vector<256x128xf32> -> vector<256x128xf32>
    %61 = arith.addf %51, %60 : vector<256x128xf32>
    %c1_i32 = arith.constant 1 : i32
    %62 = arith.addi %1, %c1_i32 : i32
    %c0_34 = arith.constant 0 : index
    %63 = arith.index_cast %62 : i32 to index
    %c0_35 = arith.constant 0 : index
    %c0_36 = arith.constant 0 : index
    %64 = vector.load %arg2[%c0_34, %63, %c0_35, %c0_36] : memref<1x17x17x64xf32, #tpu.memory_space<vmem>>, vector<1x16x16x64xf32>
    %65 = vector.shape_cast %64 : vector<1x16x16x64xf32> to vector<16x16x64xf32>
    %66 = arith.maximumf %56, %65 : vector<16x16x64xf32>
    %67 = arith.truncf %65 : vector<16x16x64xf32> to vector<16x16x64xbf16>
    %68 = vector.shape_cast %67 : vector<16x16x64xbf16> to vector<256x64xbf16>
    %c384 = arith.constant 384 : index
    %c0_37 = arith.constant 0 : index
    %69 = vector.load %arg6[%c384, %c0_37] : memref<576x128xbf16, #tpu.memory_space<vmem>>, vector<64x128xbf16>
    %cst_38 = arith.constant dense<0.000000e+00> : vector<256x128xf32>
    %70 = tpu.matmul %68, %69, %cst_38 {dimension_numbers = #tpu.dot_dimension_numbers<[1], [0], [0], [1], [0, 0, 1, 1], [], []>} : vector<256x64xbf16>, vector<64x128xbf16>, vector<256x128xf32> -> vector<256x128xf32>
    %71 = arith.addf %61, %70 : vector<256x128xf32>
    %c1_i32_39 = arith.constant 1 : i32
    %72 = arith.addi %1, %c1_i32_39 : i32
    %c0_40 = arith.constant 0 : index
    %73 = arith.index_cast %72 : i32 to index
    %c0_41 = arith.constant 0 : index
    %c0_42 = arith.constant 0 : index
    %74 = vector.load %arg3[%c0_40, %73, %c0_41, %c0_42] : memref<1x17x16x64xf32, #tpu.memory_space<vmem>>, vector<1x16x16x64xf32>
    %75 = vector.shape_cast %74 : vector<1x16x16x64xf32> to vector<16x16x64xf32>
    %76 = arith.maximumf %66, %75 : vector<16x16x64xf32>
    %77 = arith.truncf %75 : vector<16x16x64xf32> to vector<16x16x64xbf16>
    %78 = vector.shape_cast %77 : vector<16x16x64xbf16> to vector<256x64xbf16>
    %c448 = arith.constant 448 : index
    %c0_43 = arith.constant 0 : index
    %79 = vector.load %arg6[%c448, %c0_43] : memref<576x128xbf16, #tpu.memory_space<vmem>>, vector<64x128xbf16>
    %cst_44 = arith.constant dense<0.000000e+00> : vector<256x128xf32>
    %80 = tpu.matmul %78, %79, %cst_44 {dimension_numbers = #tpu.dot_dimension_numbers<[1], [0], [0], [1], [0, 0, 1, 1], [], []>} : vector<256x64xbf16>, vector<64x128xbf16>, vector<256x128xf32> -> vector<256x128xf32>
    %81 = arith.addf %71, %80 : vector<256x128xf32>
    %c1_i32_45 = arith.constant 1 : i32
    %82 = arith.addi %1, %c1_i32_45 : i32
    %c0_46 = arith.constant 0 : index
    %83 = arith.index_cast %82 : i32 to index
    %c1_47 = arith.constant 1 : index
    %c0_48 = arith.constant 0 : index
    %84 = vector.load %arg2[%c0_46, %83, %c1_47, %c0_48] : memref<1x17x17x64xf32, #tpu.memory_space<vmem>>, vector<1x16x16x64xf32>
    %85 = vector.shape_cast %84 : vector<1x16x16x64xf32> to vector<16x16x64xf32>
    %86 = arith.maximumf %76, %85 : vector<16x16x64xf32>
    %87 = arith.truncf %85 : vector<16x16x64xf32> to vector<16x16x64xbf16>
    %88 = vector.shape_cast %87 : vector<16x16x64xbf16> to vector<256x64xbf16>
    %c512 = arith.constant 512 : index
    %c0_49 = arith.constant 0 : index
    %89 = vector.load %arg6[%c512, %c0_49] : memref<576x128xbf16, #tpu.memory_space<vmem>>, vector<64x128xbf16>
    %cst_50 = arith.constant dense<0.000000e+00> : vector<256x128xf32>
    %90 = tpu.matmul %88, %89, %cst_50 {dimension_numbers = #tpu.dot_dimension_numbers<[1], [0], [0], [1], [0, 0, 1, 1], [], []>} : vector<256x64xbf16>, vector<64x128xbf16>, vector<256x128xf32> -> vector<256x128xf32>
    %91 = arith.addf %81, %90 : vector<256x128xf32>
    %c0_51 = arith.constant 0 : index
    %c0_52 = arith.constant 0 : index
    %92 = vector.load %arg7[%c0_51, %c0_52] : memref<1x128xf32, #tpu.memory_space<vmem>>, vector<1x128xf32>
    %93 = vector.broadcast %92 : vector<1x128xf32> to vector<256x128xf32>
    %94 = arith.addf %91, %93 : vector<256x128xf32>
    %cst_53 = arith.constant 0.000000e+00 : f32
    %95 = vector.broadcast %cst_53 : f32 to vector<256x128xf32>
    %96 = arith.maximumf %94, %95 : vector<256x128xf32>
    %c0_54 = arith.constant 0 : index
    %c0_55 = arith.constant 0 : index
    %c0_56 = arith.constant 0 : index
    %c0_57 = arith.constant 0 : index
    %97 = vector.load %arg8[%c0_54, %c0_55, %c0_56, %c0_57] : memref<1x16x16x64xf32, #tpu.memory_space<vmem>>, vector<1x16x16x64xf32>
    %98 = vector.shape_cast %97 : vector<1x16x16x64xf32> to vector<16x16x64xf32>
    %99 = vector.shape_cast %86 : vector<16x16x64xf32> to vector<1x16x16x64xf32>
    tpu.vector_store %arg8[%c0_54, %c0_55, %c0_56, %c0_57], %99 {strides = array<i32>} : memref<1x16x16x64xf32, #tpu.memory_space<vmem>>, vector<1x16x16x64xf32>,
    %100 = vector.shape_cast %96 : vector<256x128xf32> to vector<16x16x128xf32>
    %c0_58 = arith.constant 0 : index
    %c0_59 = arith.constant 0 : index
    %c0_60 = arith.constant 0 : index
    %c0_61 = arith.constant 0 : index
    %101 = vector.load %arg9[%c0_58, %c0_59, %c0_60, %c0_61] : memref<1x16x16x128xf32, #tpu.memory_space<vmem>>, vector<1x16x16x128xf32>
    %102 = vector.shape_cast %101 : vector<1x16x16x128xf32> to vector<16x16x128xf32>
    %103 = vector.shape_cast %100 : vector<16x16x128xf32> to vector<1x16x16x128xf32>
    tpu.vector_store %arg9[%c0_58, %c0_59, %c0_60, %c0_61], %103 {strides = array<i32>} : memref<1x16x16x128xf32, #tpu.memory_space<vmem>>, vector<1x16x16x128xf32>,
    return
  }
  func.func @transform_0(%arg0: i32, %arg1: i32) -> (i32, i32, i32, i32) {
    %c0_i32 = arith.constant 0 : i32
    %c0_i32_0 = arith.constant 0 : i32
    %c0_i32_1 = arith.constant 0 : i32
    %c0_i32_2 = arith.constant 0 : i32
    return %arg0, %c0_i32, %c0_i32_0, %c0_i32_1 : i32, i32, i32, i32
  }
  func.func @transform_1(%arg0: i32, %arg1: i32) -> (i32, i32, i32, i32) {
    %c0_i32 = arith.constant 0 : i32
    %c0_i32_0 = arith.constant 0 : i32
    %c0_i32_1 = arith.constant 0 : i32
    %c0_i32_2 = arith.constant 0 : i32
    return %arg0, %c0_i32, %c0_i32_0, %c0_i32_1 : i32, i32, i32, i32
  }
  func.func @transform_2(%arg0: i32, %arg1: i32) -> (i32, i32, i32, i32) {
    %c0_i32 = arith.constant 0 : i32
    %c0_i32_0 = arith.constant 0 : i32
    %c0_i32_1 = arith.constant 0 : i32
    %c0_i32_2 = arith.constant 0 : i32
    return %arg0, %c0_i32, %c0_i32_0, %c0_i32_1 : i32, i32, i32, i32
  }
  func.func @transform_3(%arg0: i32, %arg1: i32) -> (i32, i32, i32, i32) {
    %c0_i32 = arith.constant 0 : i32
    %c0_i32_0 = arith.constant 0 : i32
    %c0_i32_1 = arith.constant 0 : i32
    %c0_i32_2 = arith.constant 0 : i32
    return %arg0, %c0_i32, %c0_i32_0, %c0_i32_1 : i32, i32, i32, i32
  }
  func.func @transform_4(%arg0: i32, %arg1: i32) -> (i32, i32) {
    %c0_i32 = arith.constant 0 : i32
    %c0_i32_0 = arith.constant 0 : i32
    %c0_i32_1 = arith.constant 0 : i32
    return %c0_i32, %c0_i32_0 : i32, i32
  }
  func.func @transform_5(%arg0: i32, %arg1: i32) -> (i32, i32) {
    %c0_i32 = arith.constant 0 : i32
    %c0_i32_0 = arith.constant 0 : i32
    %c0_i32_1 = arith.constant 0 : i32
    return %c0_i32, %c0_i32_0 : i32, i32
  }
  func.func @transform_6(%arg0: i32, %arg1: i32) -> (i32, i32, i32, i32) {
    %c0_i32 = arith.constant 0 : i32
    %c0_i32_0 = arith.constant 0 : i32
    %c0_i32_1 = arith.constant 0 : i32
    return %arg0, %arg1, %c0_i32, %c0_i32_0 : i32, i32, i32, i32
  }
  func.func @transform_7(%arg0: i32, %arg1: i32) -> (i32, i32, i32, i32) {
    %c0_i32 = arith.constant 0 : i32
    %c0_i32_0 = arith.constant 0 : i32
    %c0_i32_1 = arith.constant 0 : i32
    return %arg0, %arg1, %c0_i32, %c0_i32_0 : i32, i32, i32, i32
  }
}

</mosaic_0001>

<bundles_post_ra>
// kernel: mixed_3a.1
= control target key start
LH: loop header
LB: loop body
LE: loop exit
PB: predicated region body
PF: predicated region fallthrough
CT: control target
= control target key end

     0   :  { %s4586_s24 = smov 0   ;;  %s4588_s25 = smov 0   ;;  %s6791_s0 = inlined_call_operand.vmem [shape: f32[2,17,17,64], index: 0, kind: input, shape index: {}]   ;;  %s6792_s1 = inlined_call_operand.vmem [shape: f32[2,17,16,64], index: 1, kind: input, shape index: {}]   ;;  %s6793_s2 = inlined_call_operand.vmem [shape: f32[2,16,17,64], index: 2, kind: input, shape index: {}]   ;;  %s6794_s3 = inlined_call_operand.vmem [shape: f32[2,16,16,64], index: 3, kind: input, shape index: {}]   ;;  %s6795_s4 = inlined_call_operand.vmem [shape: bf16[576,128], index: 4, kind: input, shape index: {}]   ;;  %s6796_s5 = inlined_call_operand.vmem [shape: f32[1,128], index: 5, kind: input, shape index: {}]   ;;  %s6797_s6 = inlined_call_operand.vmem [shape: f32[2,16,16,64], index: 6, kind: output, shape index: {0}]   ;;  %s6798_s7 = inlined_call_operand.vmem [shape: f32[2,16,16,128], index: 7, kind: output, shape index: {1}]  }
   0x1   :  { %s4590_s26 = smov 0  }
   0x2 LB: > { %s30_s27 = sadd.s32 1, %s4540_s25  ;;  %p4032_p0 = scmp.ge.s32.totalorder %s4544_s26, 1  ;;  %s4544_s26 = sphi %s4590_s26, %s18_s26   ;;  %s4540_s25 = sphi %s4588_s25, %s6872_s25   ;;  %s4536_s24 = sphi %s4586_s24, %s6871_s24  }
   0x3   : > { %p32_p1 = scmp.ge.s32.totalorder %s30_s27, 2  ;;  %p286_p2 = scmp.lt.s32.totalorder %s4544_s26, 3 }
   0x5   : > { %s6874_s27 = smov (%p32_p1, %s30_s27), 0  ;;  %p287_p3 = pnand %p4032_p0, %p286_p2 }
   0x7   : > { %290 = sbr.rel (%p287_p3) target bundleno = 740 (0x2e4), region = 44 }
   0xc   : > { %v4438_v0 = vld [vmem:[%s6795_s4 + $0x38] sm:$0xff]  ;;  %p348_p4 = scmp.lt.s32.totalorder %s4536_s24, 1  ;;  %v4437_v1 = vld [vmem:[%s6795_s4 + $0x30] sm:$0xff]  ;;  %v4436_v2 = vld [vmem:[%s6795_s4 + $0x28] sm:$0xff]  ;;  %vm676_vm0 = vcmask 523264  }
   0xd   : > { %4467 = vmatpush.bf16.msra.mxu1 %v4438_v0  ;;  %4468 = vmatpush.bf16.msra.mxu2 %v4438_v0  ;;  %v4435_v10 = vld [vmem:[%s6795_s4 + $0x20] sm:$0xff]  ;;  %v4442_v18 = vld [vmem:[%s6795_s4 + $0x58] sm:$0xff]  ;;  %v4441_v32 = vld [vmem:[%s6795_s4 + $0x50] sm:$0xff] }
   0xe   : > { %s6876_s24 = smov (!%p348_p4, %s4536_s24), 1  ;;  %4469 = vmatpush.bf16.msra.mxu3 %v4438_v0  ;;  %729 = vmatpush.bf16.msra.mxu0 %v4438_v0  ;;  %v4446_v20 = vld [vmem:[%s6795_s4 + $0x78] sm:$0xff]  ;;  %v4445_v36 = vld [vmem:[%s6795_s4 + $0x70] sm:$0xff]  ;;  %v4440_v54 = vld [vmem:[%s6795_s4 + $0x48] sm:$0xff] }
   0xf   : > { %s4480_s9 = smul.u32 272, %s6876_s24  ;;  %v4434_v26 = vld [vmem:[%s6795_s4 + $0x18] sm:$0xff]  ;;  %v4433_v41 = vld [vmem:[%s6795_s4 + $0x10] sm:$0xff]  ;;  %v4444_v55 = vld [vmem:[%s6795_s4 + $0x68] sm:$0xff]  ;;  %s4800_s18 = sshll.u32 %s6876_s24, 8 }
  0x10   : > { %v4450_v27 = vld [vmem:[%s6795_s4 + $0x98] sm:$0xff]  ;;  %v4449_v42 = vld [vmem:[%s6795_s4 + $0x90] sm:$0xff]  ;;  %v4432_v60 = vld [vmem:[%s6795_s4 + $0x8] sm:$0xff]  ;;  %s4479_s23 = smul.u32 408, %s6876_s24  ;;  %s6470_s16 = scalar_lea.vmem %s6798_s7, %s4800_s18 }
  0x11   : > { %4470 = vmatpush.bf16.msra.mxu1 %v4437_v1  ;;  %4471 = vmatpush.bf16.msra.mxu2 %v4437_v1  ;;  %s4619_s14 = scalar_lea.vmem %s6792_s1, %s4480_s9  ;;  %v4448_v61 = vld [vmem:[%s6795_s4 + $0x88] sm:$0xff]  ;;  %s4481_s17 = smul.u32 384, %s6876_s24 }
  0x12   : > { %4472 = vmatpush.bf16.msra.mxu3 %v4437_v1  ;;  %730 = vmatpush.bf16.msra.mxu0 %v4437_v1  ;;  %v4622_v3 = vld [vmem:[%s4619_s14 + $0x40] sm:$0xff]  ;;  %v4625_v4 = vld [vmem:[%s4619_s14 + $0x48] sm:$0xff]  ;;  %v4674_v35 = vld [vmem:[%s4619_s14 + $0x50] sm:$0xff]  ;;  %s4737_s30 = scalar_lea.vmem %s6791_s0, %s4479_s23  ;;  %s4813_s23 = scalar_lea.vmem %s6794_s3, %s4800_s18 }
  0x13   : > { %v4628_v5 = vld [vmem:[%s4619_s14 + $0x80] sm:$0xff]  ;;  %v540_v6 = vpack.c.bf16 %v4622_v3, %v4622_v3  ;;  %v541_v7 = vpack.c.bf16 %v4625_v4, %v4625_v4  ;;  %v4635_v8 = vld [vmem:[%s4619_s14 + $0x88] sm:$0xff]  ;;  %v4680_v38 = vld [vmem:[%s4619_s14 + $0x58] sm:$0xff]  ;;  %v542_v46 = vpack.c.bf16 %v4674_v35, %v4674_v35  ;;  %s4807_s21 = scalar_lea.vmem %s6793_s2, %s4481_s17  ;;  %s4895_s17 = scalar_lea.vmem %s6797_s6, %s4800_s18 }
  0x14   : > { %v548_v9 = vpack.c.bf16 %v4628_v5, %v4628_v5  ;;  %v549_v11 = vpack.c.bf16 %v4635_v8, %v4635_v8  ;;  %v492_v12 = vld [vmem:[%s4619_s14 + $0xc0] sm:$0xff]  ;;  %v493_v13 = vld [vmem:[%s4619_s14 + $0xc8] sm:$0xff]  ;;  %v4683_v39 = vld [vmem:[%s4619_s14 + $0x90] sm:$0xff]  ;;  %v543_v47 = vpack.c.bf16 %v4680_v38, %v4680_v38 }
  0x15   : > { %4473 = vmatpush.bf16.msra.mxu1 %v4436_v2  ;;  %4474 = vmatpush.bf16.msra.mxu2 %v4436_v2  ;;  %v612_v14 = vunpack.c.l.b16 %v540_v6  ;;  %v613_v15 = vunpack.c.l.b16 %v541_v7  ;;  %v4650_v19 = vld [vmem:[%s4619_s14] sm:$0xff]  ;;  %v556_v22 = vpack.c.bf16 %v492_v12, %v492_v12  ;;  %v557_v23 = vpack.c.bf16 %v493_v13, %v493_v13  ;;  %v4656_v24 = vld [vmem:[%s4619_s14 + $0x8] sm:$0xff]  ;;  %v4686_v40 = vld [vmem:[%s4619_s14 + $0x98] sm:$0xff] }
  0x16   : > { %4475 = vmatpush.bf16.msra.mxu3 %v4436_v2  ;;  %731 = vmatpush.bf16.msra.mxu0 %v4436_v2  ;;  %v620_v16 = vunpack.c.l.b16 %v548_v9  ;;  %v621_v17 = vunpack.c.l.b16 %v549_v11  ;;  %v532_v30 = vpack.c.bf16 %v4650_v19, %v4650_v19  ;;  %v533_v31 = vpack.c.bf16 %v4656_v24, %v4656_v24  ;;  %v494_v44 = vld [vmem:[%s4619_s14 + $0xd0] sm:$0xff]  ;;  %v495_v45 = vld [vmem:[%s4619_s14 + $0xd8] sm:$0xff]  ;;  %v4732_v11 = vld [vmem:[%s4619_s14 + $0x60] sm:$0xff] }
  0x17   : > { %v640_v21 = vpack.c.b16 %v613_v15, %v612_v14  ;;  %v628_v28 = vunpack.c.l.b16 %v556_v22  ;;  %v629_v29 = vunpack.c.l.b16 %v557_v23  ;;  %v550_v48 = vpack.c.bf16 %v4683_v39, %v4683_v39  ;;  %v4707_v52 = vld [vmem:[%s4619_s14 + $0x10] sm:$0xff]  ;;  %v4710_v53 = vld [vmem:[%s4619_s14 + $0x18] sm:$0xff]  ;;  %v4740_v13 = vld [vmem:[%s4619_s14 + $0x68] sm:$0xff] }
  0x18   : > { %v644_v25 = vpack.c.b16 %v621_v17, %v620_v16  ;;  %v604_v34 = vunpack.c.l.b16 %v532_v30  ;;  %v605_v37 = vunpack.c.l.b16 %v533_v31  ;;  %v551_v49 = vpack.c.bf16 %v4686_v40, %v4686_v40  ;;  %v4743_v14 = vld [vmem:[%s4619_s14 + $0xa0] sm:$0xff]  ;;  %v4746_v15 = vld [vmem:[%s4619_s14 + $0xa8] sm:$0xff] }
  0x19   : > { %4476 = vmatpush.bf16.msra.mxu1 %v4435_v10  ;;  %4477 = vmatpush.bf16.msra.mxu2 %v4435_v10  ;;  %v648_v33 = vpack.c.b16 %v629_v29, %v628_v28  ;;  %v558_v50 = vpack.c.bf16 %v494_v44, %v494_v44  ;;  %v559_v51 = vpack.c.bf16 %v495_v45, %v495_v45  ;;  %v614_v56 = vunpack.c.l.b16 %v542_v46  ;;  %v4439_v16 = vld [vmem:[%s6795_s4 + $0x40] sm:$0xff]  ;;  %v4776_v29 = vld [vmem:[%s4737_s30 + $0x8] sm:$0xff] }
  0x1a   : > { %4478 = vmatpush.bf16.msra.mxu3 %v4435_v10  ;;  %732 = vmatpush.bf16.msra.mxu0 %v4435_v10  ;;  %v636_v43 = vpack.c.b16 %v605_v37, %v604_v34  ;;  %v615_v57 = vunpack.c.l.b16 %v543_v47  ;;  %v622_v58 = vunpack.c.l.b16 %v550_v48  ;;  %v623_v59 = vunpack.c.l.b16 %v551_v49  ;;  %v496_v17 = vld [vmem:[%s4619_s14 + $0xe0] sm:$0xff] }
  0x1b   : > { %v534_v62 = vpack.c.bf16 %v4707_v52, %v4707_v52  ;;  %v535_v63 = vpack.c.bf16 %v4710_v53, %v4710_v53  ;;  %v630_v0 = vunpack.c.l.b16 %v558_v50  ;;  %v631_v1 = vunpack.c.l.b16 %v559_v51  ;;  %v4447_v28 = vld [vmem:[%s6795_s4 + $0x80] sm:$0xff] }
  0x1c   : > { %4062 = vmatmul.msk.bf16.vlgmr.msra.gmra.mxu1 %vm676_vm0, %v640_v21  ;;  %4066 = vmatmul.msk.bf16.vlgmr.msra.gmra.mxu2 %vm676_vm0, %v644_v25  ;;  %v641_v2 = vpack.c.b16 %v615_v57, %v614_v56  ;;  %v645_v6 = vpack.c.b16 %v623_v59, %v622_v58  ;;  %v544_v21 = vpack.c.bf16 %v4732_v11, %v4732_v11  ;;  %v4794_v47 = vld [vmem:[%s4737_s30 + $0x1] sm:$0xff]  ;;  %v4816_v57 = vld [vmem:[%s4619_s14 + $0x70] sm:$0xff] }
  0x1d   : > { %1315 = vmatpush.bf16.msrb.mxu2 %v4442_v18  ;;  %970 = vmatpush.bf16.msrb.mxu1 %v4434_v26  ;;  %v606_v7 = vunpack.c.l.b16 %v534_v62  ;;  %v607_v9 = vunpack.c.l.b16 %v535_v63  ;;  %v649_v10 = vpack.c.b16 %v631_v1, %v630_v0  ;;  %v497_v18 = vld [vmem:[%s4619_s14 + $0xe8] sm:$0xff]  ;;  %v545_v22 = vpack.c.bf16 %v4740_v13, %v4740_v13  ;;  %v4443_v26 = vld [vmem:[%s6795_s4 + $0x60] sm:$0xff]  ;;  %v4833_v62 = vld [vmem:[%s4619_s14 + $0xb8] sm:$0xff] }
  0x1e   : > { %1693 = vmatpush.bf16.msrb.mxu3 %v4446_v20  ;;  %2071 = vmatpush.bf16.msrb.mxu0 %v4450_v27  ;;  %v4755_v20 = vld [vmem:[%s4737_s30] sm:$0xff]  ;;  %v552_v23 = vpack.c.bf16 %v4743_v14, %v4743_v14  ;;  %v553_v25 = vpack.c.bf16 %v4746_v15, %v4746_v15  ;;  %v560_v30 = vpack.c.bf16 %v496_v17, %v496_v17  ;;  %v616_v37 = vunpack.c.l.b16 %v544_v21  ;;  %v4822_v59 = vld [vmem:[%s4807_s21 + $0x8] sm:$0xff]  ;;  %v498_v21 = vld [vmem:[%s4619_s14 + $0xf0] sm:$0xff] }
  0x1f   : > { %4070 = vmatmul.msk.bf16.vlgmr.msra.gmra.mxu3 %vm676_vm0, %v648_v33  ;;  %4058 = vmatmul.msk.bf16.vlgmr.msra.gmra.mxu0 %vm676_vm0, %v636_v43  ;;  %v637_v12 = vpack.c.b16 %v607_v9, %v606_v7  ;;  %v4431_v27 = vld [vmem:[%s6795_s4] sm:$0xff]  ;;  %v561_v31 = vpack.c.bf16 %v497_v18, %v497_v18  ;;  %v4782_v33 = vld [vmem:[%s4619_s14 + $0x28] sm:$0xff]  ;;  %v500_v34 = vmax.f32 %v4755_v20, %v4650_v19  ;;  %v4458_v7 = vld [vmem:[%s6795_s4 + $0xd8] sm:$0xff] }
  0x20   : > { %v625_v43 = vunpack.c.l.b16 %v553_v25  ;;  %v537_v45 = vpack.c.bf16 %v4782_v33, %v4782_v33  ;;  %v632_v19 = vunpack.c.l.b16 %v560_v30  ;;  %v4819_v58 = vld [vmem:[%s4807_s21] sm:$0xff]  ;;  %v555_v18 = vpack.c.bf16 %v4833_v62, %v4833_v62  ;;  %v4866_v30 = vld [vmem:[%s4619_s14 + $0x38] sm:$0xff] }
  0x21   : > { %1316 = vmatpush.bf16.msrb.mxu2 %v4441_v32  ;;  %971 = vmatpush.bf16.msrb.mxu1 %v4433_v41  ;;  %v4779_v32 = vld [vmem:[%s4619_s14 + $0x20] sm:$0xff]  ;;  %v617_v41 = vunpack.c.l.b16 %v545_v22  ;;  %v633_v46 = vunpack.c.l.b16 %v561_v31  ;;  %v1087_v48 = vmax.f32 %v500_v34, %v4794_v47  ;;  %v499_v22 = vld [vmem:[%s4619_s14 + $0xf8] sm:$0xff] }
  0x22   : > { %1694 = vmatpush.bf16.msrb.mxu3 %v4445_v36  ;;  %2072 = vmatpush.bf16.msrb.mxu0 %v4449_v42  ;;  %v501_v36 = vmax.f32 %v4776_v29, %v4656_v24  ;;  %v624_v42 = vunpack.c.l.b16 %v552_v23  ;;  %v536_v44 = vpack.c.bf16 %v4779_v32, %v4779_v32  ;;  %v4797_v24 = vld [vmem:[%s4737_s30 + $0x9] sm:$0xff]  ;;  %v2188_v25 = vld [vmem:[%s4807_s21 + $0x1] sm:$0xff] }
  0x23   : > { %v642_v50 = vpack.c.b16 %v617_v41, %v616_v37  ;;  %v650_v56 = vpack.c.b16 %v633_v46, %v632_v19  ;;  %v1465_v63 = vmax.f32 %v1087_v48, %v4819_v58  ;;  %v4861_v23 = vld [vmem:[%s4619_s14 + $0x30] sm:$0xff]  ;;  %v4872_v37 = vld [vmem:[%s4737_s30 + $0x20] sm:$0xff]  ;;  %v4454_v19 = vld [vmem:[%s6795_s4 + $0xb8] sm:$0xff] }
  0x24   : > { %v1088_v49 = vmax.f32 %v501_v36, %v4797_v24  ;;  %v646_v51 = vpack.c.b16 %v625_v43, %v624_v42  ;;  %v4869_v36 = vld [vmem:[%s4737_s30 + $0x18] sm:$0xff] }
  0x25   : > { %1317 = vmatpush.bf16.msrb.mxu2 %v4440_v54  ;;  %972 = vmatpush.bf16.msrb.mxu1 %v4432_v60  ;;  %v608_v54 = vunpack.c.l.b16 %v536_v44  ;;  %v4827_v60 = vld [vmem:[%s4619_s14 + $0x78] sm:$0xff]  ;;  %v627_v44 = vunpack.c.l.b16 %v555_v18 }
  0x26   : > { %1695 = vmatpush.bf16.msrb.mxu3 %v4444_v55  ;;  %2073 = vmatpush.bf16.msrb.mxu0 %v4448_v61  ;;  %v609_v55 = vunpack.c.l.b16 %v537_v45  ;;  %v4830_v61 = vld [vmem:[%s4619_s14 + $0xb0] sm:$0xff]  ;;  %v1466_v0 = vmax.f32 %v1088_v49, %v4822_v59  ;;  %v4462_v45 = vld [vmem:[%s6795_s4 + $0xf8] sm:$0xff] }
  0x27   : > { %v554_v17 = vpack.c.bf16 %v4830_v61, %v4830_v61  ;;  %v4466_v46 = vld [vmem:[%s6795_s4 + $0x118] sm:$0xff] }
  0x28   : > { %v638_v1 = vpack.c.b16 %v609_v55, %v608_v54 }
  0x29   : > { %1318 = vmatpush.bf16.msrb.mxu2 %v4439_v16  ;;  %973 = vmatpush.bf16.msrb.mxu1 %v4431_v27  ;;  %v547_v16 = vpack.c.bf16 %v4827_v60, %v4827_v60  ;;  %v562_v27 = vpack.c.bf16 %v498_v21, %v498_v21  ;;  %v626_v43 = vunpack.c.l.b16 %v554_v17  ;;  %v503_v17 = vmax.f32 %v4872_v37, %v4710_v53 }
  0x2a   : > { %1696 = vmatpush.bf16.msrb.mxu3 %v4443_v26  ;;  %2074 = vmatpush.bf16.msrb.mxu0 %v4447_v28  ;;  %v2189_v26 = vld [vmem:[%s4807_s21 + $0x9] sm:$0xff]  ;;  %v563_v28 = vpack.c.bf16 %v499_v22, %v499_v22 }
  0x2b   : > { %v619_v42 = vunpack.c.l.b16 %v547_v16  ;;  %v634_v54 = vunpack.c.l.b16 %v562_v27  ;;  %v502_v16 = vmax.f32 %v4869_v36, %v4707_v52  ;;  %v4921_v27 = vld [vmem:[%s4807_s21 + $0x20] sm:$0xff] }
  0x2c   : > { %4063 = vmatmul.msk.bf16.gmra.mxu1 %vm676_vm0, %v641_v2  ;;  %4067 = vmatmul.msk.bf16.gmra.mxu2 %vm676_vm0, %v645_v6  ;;  %v4838_v2 = vld [vmem:[%s4813_s23] sm:$0xff]  ;;  %v4841_v6 = vld [vmem:[%s4813_s23 + $0x8] sm:$0xff]  ;;  %v635_v55 = vunpack.c.l.b16 %v563_v28 }
  0x2d   : > { %v1843_v9 = vmax.f32 %v1465_v63, %v4838_v2  ;;  %2828 = vmatpush.bf16.msra.mxu2 %v4458_v7  ;;  %2448 = vmatpush.bf16.msra.mxu1 %v4454_v19  ;;  %v4898_v7 = vld [vmem:[%s4737_s30 + $0x19] sm:$0xff] }
  0x2e   : > { %3207 = vmatpush.bf16.msra.mxu3 %v4462_v45  ;;  %3584 = vmatpush.bf16.msra.mxu0 %v4466_v46  ;;  %v651_v22 = vpack.c.b16 %v635_v55, %v634_v54  ;;  %v1120_v45 = vpack.c.bf16 %v4797_v24, %v4797_v24 }
  0x2f   : > { %4071 = vmatmul.msk.bf16.gmra.mxu3 %vm676_vm0, %v649_v10  ;;  %4059 = vmatmul.msk.bf16.gmra.mxu0 %vm676_vm0, %v637_v12  ;;  %v1844_v10 = vmax.f32 %v1466_v0, %v4841_v6  ;;  %v546_v12 = vpack.c.bf16 %v4816_v57, %v4816_v57  ;;  %v2220_v31 = vmax.f32 %v1843_v9, %v2188_v25  ;;  %v4901_v9 = vld [vmem:[%s4737_s30 + $0x21] sm:$0xff] }
  0x30   : > { %v1089_v25 = vmax.f32 %v502_v16, %v4898_v7  ;;  %v1192_v55 = vunpack.c.l.b16 %v1120_v45  ;;  %v4969_v16 = vld [vmem:[%s4737_s30 + $0x39] sm:$0xff] }
  0x31   : > { %v2221_v34 = vmax.f32 %v1844_v10, %v2189_v26  ;;  %v618_v41 = vunpack.c.l.b16 %v546_v12  ;;  %v2600_v48 = vmax.f32 %v2220_v31, %v4869_v36 }
  0x33   : > { %v2601_v49 = vmax.f32 %v2221_v34, %v4872_v37  ;;  %v643_v0 = vpack.c.b16 %v619_v42, %v618_v41  ;;  %v426_v34 = vpack.c.bf16 %v4755_v20, %v4755_v20  ;;  %v427_v41 = vpack.c.bf16 %v4776_v29, %v4776_v29  ;;  %v4931_v42 = vld [vmem:[%s4813_s23 + $0x10] sm:$0xff] }
  0x34   : > { %v4948_v20 = vld [vmem:[%s4737_s30 + $0x30] sm:$0xff]  ;;  %v1497_v29 = vpack.c.bf16 %v4819_v58, %v4819_v58  ;;  %v1875_v58 = vpack.c.bf16 %v4838_v2, %v4838_v2 }
  0x35   : > { %v2980_v63 = vmax.f32 %v2601_v49, %v4710_v53  ;;  %v4918_v53 = vld [vmem:[%s4807_s21 + $0x18] sm:$0xff]  ;;  %v504_v24 = vmax.f32 %v4948_v20, %v4779_v32 }
  0x36   : > { %v1467_v28 = vmax.f32 %v1089_v25, %v4918_v53 }
  0x37   : > { %v3357_v12 = vmax.f32 %v2980_v63, %v4901_v9 }
  0x38   : > { %v4941_v19 = vmax.f32 %v1467_v28, %v4931_v42  ;;  %v1815_v28 = vld [vmem:[%s4813_s23 + $0x20] sm:$0xff] }
  0x39   : > { %3770 = vst.msk [vmem:[%s4895_s17 + $0x8] sm:$0xff] %vm676_vm0, %v3357_v12  ;;  %v4966_v12 = vld [vmem:[%s4737_s30 + $0x31] sm:$0xff] }
  0x3a   : > { %v1091_v2 = vmax.f32 %v504_v24, %v4966_v12 }
  0x3c   : > { %4064 = vmatmul.msk.bf16.gmra.mxu1 %vm676_vm0, %v642_v50  ;;  %4068 = vmatmul.msk.bf16.gmra.mxu2 %vm676_vm0, %v646_v51  ;;  %v538_v50 = vpack.c.bf16 %v4861_v23, %v4861_v23  ;;  %v539_v51 = vpack.c.bf16 %v4866_v30, %v4866_v30 }
  0x3e   : > { %v610_v18 = vunpack.c.l.b16 %v538_v50  ;;  %v611_v21 = vunpack.c.l.b16 %v539_v51  ;;  %v846_v50 = vunpack.c.l.b16 %v426_v34  ;;  %v847_v51 = vunpack.c.l.b16 %v427_v41 }
  0x3f   : > { %4072 = vmatmul.msk.bf16.gmra.mxu3 %vm676_vm0, %v650_v56  ;;  %4060 = vmatmul.msk.bf16.gmra.mxu0 %vm676_vm0, %v638_v1  ;;  %v2979_v56 = vmax.f32 %v2600_v48, %v4707_v52  ;;  %v647_v1 = vpack.c.b16 %v627_v44, %v626_v43  ;;  %v1090_v52 = vmax.f32 %v503_v17, %v4901_v9  ;;  %v4934_v43 = vld [vmem:[%s4813_s23 + $0x18] sm:$0xff] }
  0x40   : > { %v639_v26 = vpack.c.b16 %v611_v21, %v610_v18  ;;  %v1119_v44 = vpack.c.bf16 %v4794_v47, %v4794_v47  ;;  %v1498_v48 = vpack.c.bf16 %v4822_v59, %v4822_v59  ;;  %v4955_v47 = vld [vmem:[%s4737_s30 + $0x38] sm:$0xff]  ;;  %v1876_v59 = vpack.c.bf16 %v4841_v6, %v4841_v6  ;;  %v1437_v18 = vld [vmem:[%s4807_s21 + $0x30] sm:$0xff] }
  0x41   : > { %v3356_v10 = vmax.f32 %v2979_v56, %v4898_v7  ;;  %v1468_v31 = vmax.f32 %v1090_v52, %v4921_v27  ;;  %v505_v49 = vmax.f32 %v4955_v47, %v4782_v33  ;;  %v1569_v56 = vunpack.c.l.b16 %v1497_v29  ;;  %v1438_v21 = vld [vmem:[%s4807_s21 + $0x38] sm:$0xff]  ;;  %v4994_v29 = vld [vmem:[%s4737_s30 + $0x48] sm:$0xff] }
  0x42   : > { %v1191_v54 = vunpack.c.l.b16 %v1119_v44  ;;  %v1570_v63 = vunpack.c.l.b16 %v1498_v48  ;;  %v2632_v52 = vpack.c.bf16 %v4869_v36, %v4869_v36  ;;  %v1121_v34 = vpack.c.bf16 %v4898_v7, %v4898_v7  ;;  %v5001_v48 = vld [vmem:[%s4737_s30 + $0x50] sm:$0xff] }
  0x43   : > { %3769 = vst.msk [vmem:[%s4895_s17] sm:$0xff] %vm676_vm0, %v3356_v10  ;;  %v4944_v46 = vmax.f32 %v1468_v31, %v4934_v43  ;;  %v1948_v10 = vunpack.c.l.b16 %v1876_v59  ;;  %v1092_v6 = vmax.f32 %v505_v49, %v4969_v16  ;;  %v1816_v31 = vld [vmem:[%s4813_s23 + $0x28] sm:$0xff]  ;;  %v1122_v41 = vpack.c.bf16 %v4901_v9, %v4901_v9 }
  0x44   : > { %v1223_v32 = vpack.c.b16 %v1192_v55, %v1191_v54  ;;  %v1601_v33 = vpack.c.b16 %v1570_v63, %v1569_v56  ;;  %v1499_v36 = vpack.c.bf16 %v4918_v53, %v4918_v53  ;;  %v506_v7 = vmax.f32 %v4994_v29, %v4861_v23  ;;  %v5014_v63 = vld [vmem:[%s4737_s30 + $0x49] sm:$0xff] }
  0x45   : > { %v1470_v25 = vmax.f32 %v1092_v6, %v1438_v21  ;;  %v507_v9 = vmax.f32 %v5001_v48, %v4866_v30  ;;  %v2704_v24 = vunpack.c.l.b16 %v2632_v52  ;;  %v1877_v53 = vpack.c.bf16 %v4931_v42, %v4931_v42 }
  0x46   : > { %v1571_v54 = vunpack.c.l.b16 %v1499_v36  ;;  %v1093_v42 = vmax.f32 %v506_v7, %v5014_v63  ;;  %v430_v6 = vpack.c.bf16 %v4948_v20, %v4948_v20  ;;  %v1123_v52 = vpack.c.bf16 %v4966_v12, %v4966_v12 }
  0x47   : > { %v4990_v45 = vmax.f32 %v1470_v25, %v1816_v31  ;;  %v1949_v59 = vunpack.c.l.b16 %v1877_v53  ;;  %v5041_v25 = vld [vmem:[%s4813_s23 + $0x38] sm:$0xff]  ;;  %v1501_v20 = vpack.c.bf16 %v1437_v18, %v1437_v18  ;;  %v1879_v12 = vpack.c.bf16 %v1815_v28, %v1815_v28 }
  0x48   : > { %v850_v36 = vunpack.c.l.b16 %v430_v6  ;;  %v1195_v7 = vunpack.c.l.b16 %v1123_v52 }
  0x49   : > { %v1951_v53 = vunpack.c.l.b16 %v1879_v12 }
  0x4c   : > { %4065 = vmatmul.msk.bf16.gmra.mxu1 %vm676_vm0, %v643_v0  ;;  %4069 = vmatmul.msk.bf16.gmra.mxu2 %vm676_vm0, %v647_v1  ;;  %v878_v0 = vpack.c.b16 %v847_v51, %v846_v50  ;;  %v1947_v1 = vunpack.c.l.b16 %v1875_v58  ;;  %v1193_v50 = vunpack.c.l.b16 %v1121_v34  ;;  %v1194_v51 = vunpack.c.l.b16 %v1122_v41 }
  0x4e   : > { %v1979_v17 = vpack.c.b16 %v1948_v10, %v1947_v1  ;;  %v1224_v23 = vpack.c.b16 %v1194_v51, %v1193_v50  ;;  %v5025_v1 = vld [vmem:[%s4807_s21 + $0x48] sm:$0xff]  ;;  %v5028_v10 = vld [vmem:[%s4807_s21 + $0x50] sm:$0xff] }
  0x4f   : > { %4073 = vmatmul.msk.bf16.gmra.mxu3 %vm676_vm0, %v651_v22  ;;  %4061 = vmatmul.msk.bf16.gmra.mxu0 %vm676_vm0, %v639_v26  ;;  %v1469_v22 = vmax.f32 %v1091_v2, %v1437_v18  ;;  %v2633_v26 = vpack.c.bf16 %v4872_v37, %v4872_v37  ;;  %v1500_v37 = vpack.c.bf16 %v4921_v27, %v4921_v27 }
  0x50   : > { %v1878_v27 = vpack.c.bf16 %v4934_v43, %v4934_v43 }
  0x51   : > { %v4988_v44 = vmax.f32 %v1469_v22, %v1815_v28  ;;  %v2705_v49 = vunpack.c.l.b16 %v2633_v26  ;;  %v1572_v55 = vunpack.c.l.b16 %v1500_v37  ;;  %v5038_v22 = vld [vmem:[%s4813_s23 + $0x30] sm:$0xff]  ;;  %v1124_v26 = vpack.c.bf16 %v4969_v16, %v4969_v16 }
  0x52   : > { %v1950_v56 = vunpack.c.l.b16 %v1878_v27 }
  0x53   : > { %v5011_v58 = vpack.c.b16 %v2705_v49, %v2704_v24  ;;  %v1602_v30 = vpack.c.b16 %v1572_v55, %v1571_v54  ;;  %v1880_v24 = vpack.c.bf16 %v1816_v31, %v1816_v31  ;;  %v1573_v49 = vunpack.c.l.b16 %v1501_v20  ;;  %v5060_v55 = vld [vmem:[%s4737_s30 + $0x68] sm:$0xff]  ;;  %v1819_v20 = vld [vmem:[%s4813_s23 + $0x40] sm:$0xff] }
  0x54   : > { %v509_v31 = vmax.f32 %v5060_v55, %v4625_v4 }
  0x55   : > { %v1952_v27 = vunpack.c.l.b16 %v1880_v24 }
  0x57   : > { %v1981_v18 = vpack.c.b16 %v1952_v27, %v1951_v53 }
  0x5c   : > { %4090 = vmatmul.msk.bf16.vlgmr.msrb.gmra.mxu1 %vm676_vm0, %v878_v0  ;;  %4122 = vmatmul.msk.bf16.vlgmr.msrb.gmra.mxu2 %vm676_vm0, %v1223_v32  ;;  %v5017_v0 = vld [vmem:[%s4737_s30 + $0x51] sm:$0xff]  ;;  %v1980_v32 = vpack.c.b16 %v1950_v56, %v1949_v59  ;;  %v432_v59 = vpack.c.bf16 %v4994_v29, %v4994_v29  ;;  %v433_v56 = vpack.c.bf16 %v5001_v48, %v5001_v48  ;;  %v1441_v29 = vld [vmem:[%s4807_s21 + $0x60] sm:$0xff]  ;;  %v1442_v48 = vld [vmem:[%s4807_s21 + $0x68] sm:$0xff] }
  0x5d   : > { %v1094_v43 = vmax.f32 %v507_v9, %v5017_v0  ;;  %v1196_v9 = vunpack.c.l.b16 %v1124_v26  ;;  %v1126_v4 = vpack.c.bf16 %v5017_v0, %v5017_v0  ;;  %v1504_v0 = vpack.c.bf16 %v5028_v10, %v5028_v10 }
  0x5e   : > { %v852_v52 = vunpack.c.l.b16 %v432_v59  ;;  %v853_v26 = vunpack.c.l.b16 %v433_v56  ;;  %v1065_v59 = vld [vmem:[%s4737_s30 + $0x79] sm:$0xff]  ;;  %v1066_v56 = vld [vmem:[%s4737_s30 + $0x81] sm:$0xff] }
  0x5f   : > { %4154 = vmatmul.msk.bf16.vlgmr.msrb.gmra.mxu3 %vm676_vm0, %v1601_v33  ;;  %4186 = vmatmul.msk.bf16.vlgmr.msrb.gmra.mxu0 %vm676_vm0, %v1979_v17  ;;  %v1471_v33 = vmax.f32 %v1093_v42, %v5025_v1  ;;  %v1472_v2 = vmax.f32 %v1094_v43, %v5028_v10  ;;  %v431_v17 = vpack.c.bf16 %v4955_v47, %v4955_v47  ;;  %v5078_v42 = vld [vmem:[%s4737_s30 + $0x69] sm:$0xff]  ;;  %v1576_v24 = vunpack.c.l.b16 %v1504_v0 }
  0x60   : > { %v1502_v47 = vpack.c.bf16 %v1438_v21, %v1438_v21  ;;  %v1225_v51 = vpack.c.b16 %v1196_v9, %v1195_v7  ;;  %v5057_v21 = vld [vmem:[%s4737_s30 + $0x60] sm:$0xff]  ;;  %v1882_v10 = vpack.c.bf16 %v5041_v25, %v5041_v25 }
  0x61   : > { %v5048_v34 = vmax.f32 %v1471_v33, %v5038_v22  ;;  %v5051_v41 = vmax.f32 %v1472_v2, %v5041_v25  ;;  %v851_v37 = vunpack.c.l.b16 %v431_v17  ;;  %v508_v28 = vmax.f32 %v5057_v21, %v4622_v3  ;;  %v4461_v33 = vld [vmem:[%s6795_s4 + $0xf0] sm:$0xff]  ;;  %v5115_v25 = vld [vmem:[%s4737_s30 + $0x78] sm:$0xff] }
  0x62   : > { %v1574_v16 = vunpack.c.l.b16 %v1502_v47  ;;  %v1125_v3 = vpack.c.bf16 %v5014_v63, %v5014_v63  ;;  %v1503_v63 = vpack.c.bf16 %v5025_v1, %v5025_v1  ;;  %v4453_v17 = vld [vmem:[%s6795_s4 + $0xb0] sm:$0xff]  ;;  %v1820_v47 = vld [vmem:[%s4813_s23 + $0x48] sm:$0xff]  ;;  %3208 = vmatpush.bf16.msra.mxu3 %v4461_v33  ;;  %v1881_v1 = vpack.c.bf16 %v5038_v22, %v5038_v22 }
  0x63   : > { %v880_v50 = vpack.c.b16 %v851_v37, %v850_v36  ;;  %v1198_v37 = vunpack.c.l.b16 %v1126_v4  ;;  %2449 = vmatpush.bf16.msra.mxu1 %v4453_v17  ;;  %v1954_v53 = vunpack.c.l.b16 %v1882_v10  ;;  %v1128_v4 = vpack.c.bf16 %v5078_v42, %v5078_v42  ;;  %v1822_v17 = vld [vmem:[%s4813_s23 + $0x58] sm:$0xff] }
  0x64   : > { %v1603_v54 = vpack.c.b16 %v1574_v16, %v1573_v49  ;;  %v1197_v36 = vunpack.c.l.b16 %v1125_v3  ;;  %v1575_v12 = vunpack.c.l.b16 %v1503_v63  ;;  %v4465_v49 = vld [vmem:[%s6795_s4 + $0x110] sm:$0xff]  ;;  %v881_v16 = vpack.c.b16 %v853_v26, %v852_v52 }
  0x65   : > { %3585 = vmatpush.bf16.msra.mxu0 %v4465_v49  ;;  %v1506_v33 = vpack.c.bf16 %v1442_v48, %v1442_v48  ;;  %v1200_v26 = vunpack.c.l.b16 %v1128_v4  ;;  %v1130_v4 = vpack.c.bf16 %v1066_v56, %v1066_v56 }
  0x66   : > { %v1604_v27 = vpack.c.b16 %v1576_v24, %v1575_v12 }
  0x67   : > { %v1578_v10 = vunpack.c.l.b16 %v1506_v33 }
  0x6c   : > { %4091 = vmatmul.msk.bf16.gmra.mxu1 %vm676_vm0, %v5011_v58  ;;  %4123 = vmatmul.msk.bf16.gmra.mxu2 %vm676_vm0, %v1224_v23  ;;  %v4457_v23 = vld [vmem:[%s6795_s4 + $0xd0] sm:$0xff] }
  0x6d   : > { %2829 = vmatpush.bf16.msra.mxu2 %v4457_v23  ;;  %v435_v23 = vpack.c.bf16 %v5060_v55, %v5060_v55 }
  0x6f   : > { %4155 = vmatmul.msk.bf16.gmra.mxu3 %vm676_vm0, %v1602_v30  ;;  %4187 = vmatmul.msk.bf16.gmra.mxu0 %vm676_vm0, %v1980_v32  ;;  %v5075_v30 = vld [vmem:[%s4737_s30 + $0x61] sm:$0xff]  ;;  %v1096_v32 = vmax.f32 %v509_v31, %v5078_v42  ;;  %v434_v31 = vpack.c.bf16 %v5057_v21, %v5057_v21  ;;  %v1505_v21 = vpack.c.bf16 %v1441_v29, %v1441_v29 }
  0x70   : > { %v1095_v43 = vmax.f32 %v508_v28, %v5075_v30  ;;  %v1127_v3 = vpack.c.bf16 %v5075_v30, %v5075_v30 }
  0x71   : > { %v1474_v6 = vmax.f32 %v1096_v32, %v1442_v48  ;;  %v1444_v32 = vld [vmem:[%s4807_s21 + $0x80] sm:$0xff]  ;;  %v854_v0 = vunpack.c.l.b16 %v434_v31  ;;  %v5168_v31 = vld [vmem:[%s4737_s30 + $0x91] sm:$0xff] }
  0x72   : > { %v1473_v2 = vmax.f32 %v1095_v43, %v1441_v29  ;;  %v1199_v52 = vunpack.c.l.b16 %v1127_v3  ;;  %v1129_v3 = vpack.c.bf16 %v1065_v59, %v1065_v59  ;;  %v1508_v33 = vpack.c.bf16 %v1444_v32, %v1444_v32 }
  0x73   : > { %v5103_v9 = vmax.f32 %v1474_v6, %v1820_v47  ;;  %v1821_v6 = vld [vmem:[%s4813_s23 + $0x50] sm:$0xff] }
  0x74   : > { %v5101_v7 = vmax.f32 %v1473_v2, %v1819_v20  ;;  %v855_v2 = vunpack.c.l.b16 %v435_v23  ;;  %v1227_v48 = vpack.c.b16 %v1200_v26, %v1199_v52  ;;  %v5171_v23 = vld [vmem:[%s4737_s30 + $0x99] sm:$0xff]  ;;  %v1201_v52 = vunpack.c.l.b16 %v1129_v3 }
  0x75   : > { %v1202_v26 = vunpack.c.l.b16 %v1130_v4 }
  0x76   : > { %v882_v29 = vpack.c.b16 %v855_v2, %v854_v0  ;;  %v5189_v0 = vld [vmem:[%s4813_s23 + $0x60] sm:$0xff]  ;;  %v5192_v2 = vld [vmem:[%s4813_s23 + $0x68] sm:$0xff] }
  0x7c   : > { %4092 = vmatmul.msk.bf16.gmra.mxu1 %vm676_vm0, %v880_v50  ;;  %4124 = vmatmul.msk.bf16.gmra.mxu2 %vm676_vm0, %v1225_v51  ;;  %v1226_v50 = vpack.c.b16 %v1198_v37, %v1197_v36  ;;  %v1953_v51 = vunpack.c.l.b16 %v1881_v1  ;;  %v1883_v36 = vpack.c.bf16 %v1819_v20, %v1819_v20  ;;  %v1884_v37 = vpack.c.bf16 %v1820_v47, %v1820_v47  ;;  %v5152_v20 = vld [vmem:[%s4737_s30 + $0x98] sm:$0xff] }
  0x7d   : > { %v1577_v1 = vunpack.c.l.b16 %v1505_v21 }
  0x7e   : > { %v1982_v22 = vpack.c.b16 %v1954_v53, %v1953_v51  ;;  %v1955_v24 = vunpack.c.l.b16 %v1883_v36  ;;  %v1956_v49 = vunpack.c.l.b16 %v1884_v37  ;;  %v5149_v51 = vld [vmem:[%s4737_s30 + $0x90] sm:$0xff] }
  0x7f   : > { %4156 = vmatmul.msk.bf16.gmra.mxu3 %vm676_vm0, %v1603_v54  ;;  %4188 = vmatmul.msk.bf16.gmra.mxu0 %vm676_vm0, %v1981_v18  ;;  %v5118_v54 = vld [vmem:[%s4737_s30 + $0x80] sm:$0xff]  ;;  %v510_v18 = vmax.f32 %v5115_v25, %v4674_v35  ;;  %v512_v53 = vmax.f32 %v5149_v51, %v4732_v11 }
  0x80   : > { %v511_v28 = vmax.f32 %v5118_v54, %v4680_v38  ;;  %v1443_v38 = vld [vmem:[%s4807_s21 + $0x78] sm:$0xff] }
  0x81   : > { %v1097_v35 = vmax.f32 %v510_v18, %v1065_v59  ;;  %v436_v18 = vpack.c.bf16 %v5115_v25, %v5115_v25  ;;  %v1099_v11 = vmax.f32 %v512_v53, %v5168_v31  ;;  %v1507_v21 = vpack.c.bf16 %v1443_v38, %v1443_v38 }
  0x82   : > { %v1098_v43 = vmax.f32 %v511_v28, %v1066_v56  ;;  %v437_v28 = vpack.c.bf16 %v5118_v54, %v5118_v54  ;;  %v5184_v54 = vld [vmem:[%s4807_s21 + $0x98] sm:$0xff] }
  0x83   : > { %v1475_v63 = vmax.f32 %v1097_v35, %v1443_v38  ;;  %v1885_v38 = vpack.c.bf16 %v1821_v6, %v1821_v6 }
  0x84   : > { %v1476_v55 = vmax.f32 %v1098_v43, %v1444_v32  ;;  %v5181_v43 = vld [vmem:[%s4807_s21 + $0x90] sm:$0xff]  ;;  %v1886_v32 = vpack.c.bf16 %v1822_v17, %v1822_v17 }
  0x85   : > { %v5140_v30 = vmax.f32 %v1475_v63, %v1821_v6  ;;  %v1477_v59 = vmax.f32 %v1099_v11, %v5181_v43  ;;  %v856_v63 = vunpack.c.l.b16 %v436_v18  ;;  %v1957_v53 = vunpack.c.l.b16 %v1885_v38  ;;  %v5211_v18 = vld [vmem:[%s4737_s30 + $0xa8] sm:$0xff] }
  0x86   : > { %v5142_v42 = vmax.f32 %v1476_v55, %v1822_v17  ;;  %v857_v55 = vunpack.c.l.b16 %v437_v28  ;;  %v5214_v28 = vld [vmem:[%s4737_s30 + $0xb0] sm:$0xff]  ;;  %v514_v4 = vmax.f32 %v5211_v18, %v4816_v57  ;;  %v1132_v57 = vpack.c.bf16 %v5171_v23, %v5171_v23 }
  0x87   : > { %6799 = vst [vmem:[#allocation2_spill] sm:$0xff] %v5140_v30  ;;  %v5195_v36 = vmax.f32 %v1477_v59, %v5189_v0  ;;  %v515_v11 = vmax.f32 %v5214_v28, %v4827_v60  ;;  %v5230_v59 = vld [vmem:[%s4737_s30 + $0xa9] sm:$0xff] }
  0x88   : > { %6800 = vst [vmem:[#allocation3_spill] sm:$0xff] %v5142_v42  ;;  %v1101_v60 = vmax.f32 %v514_v4, %v5230_v59  ;;  %v1887_v4 = vpack.c.bf16 %v5189_v0, %v5189_v0  ;;  %v5289_v0 = vld [vmem:[%s4737_s30 + $0xc1] sm:$0xff]  ;;  %v5452_v42 = vld [vmem:[%s4737_s30 + $0xf9] sm:$0xff] }
  0x89   : > { %6802 = vst [vmem:[#allocation5_spill] sm:$0xff] %v5195_v36 }
  0x8c   : > { %4093 = vmatmul.msk.bf16.gmra.mxu1 %vm676_vm0, %v881_v16  ;;  %4125 = vmatmul.msk.bf16.gmra.mxu2 %vm676_vm0, %v1226_v50  ;;  %v1605_v16 = vpack.c.b16 %v1578_v10, %v1577_v1  ;;  %v1983_v50 = vpack.c.b16 %v1956_v49, %v1955_v24  ;;  %v1579_v10 = vunpack.c.l.b16 %v1507_v21  ;;  %v883_v24 = vpack.c.b16 %v857_v55, %v856_v63 }
  0x8d   : > { %v1228_v49 = vpack.c.b16 %v1202_v26, %v1201_v52  ;;  %v438_v21 = vpack.c.bf16 %v5149_v51, %v5149_v51  ;;  %v1131_v63 = vpack.c.bf16 %v5168_v31, %v5168_v31  ;;  %v5247_v52 = vld [vmem:[%s4807_s21 + $0xa8] sm:$0xff]  ;;  %v5250_v26 = vld [vmem:[%s4807_s21 + $0xb0] sm:$0xff]  ;;  %v1509_v31 = vpack.c.bf16 %v5181_v43, %v5181_v43 }
  0x8e   : > { %v1479_v38 = vmax.f32 %v1101_v60, %v5247_v52 }
  0x8f   : > { %4157 = vmatmul.msk.bf16.gmra.mxu3 %vm676_vm0, %v1604_v27  ;;  %4189 = vmatmul.msk.bf16.gmra.mxu0 %vm676_vm0, %v1982_v22  ;;  %v513_v27 = vmax.f32 %v5152_v20, %v4740_v13 }
  0x91   : > { %v1100_v13 = vmax.f32 %v513_v27, %v5171_v23  ;;  %v1958_v27 = vunpack.c.l.b16 %v1886_v32  ;;  %v1510_v23 = vpack.c.bf16 %v5184_v54, %v5184_v54 }
  0x93   : > { %v1478_v56 = vmax.f32 %v1100_v13, %v5184_v54  ;;  %v1984_v17 = vpack.c.b16 %v1958_v27, %v1957_v53  ;;  %v1203_v53 = vunpack.c.l.b16 %v1131_v63  ;;  %v1204_v27 = vunpack.c.l.b16 %v1132_v57  ;;  %v5271_v54 = vld [vmem:[%s4737_s30 + $0xc0] sm:$0xff] }
  0x94   : > { %v1581_v57 = vunpack.c.l.b16 %v1509_v31  ;;  %v1582_v60 = vunpack.c.l.b16 %v1510_v23 }
  0x95   : > { %v5198_v37 = vmax.f32 %v1478_v56, %v5192_v2  ;;  %v5233_v56 = vld [vmem:[%s4737_s30 + $0xb1] sm:$0xff] }
  0x96   : > { %v1102_v55 = vmax.f32 %v515_v11, %v5233_v56  ;;  %v1888_v11 = vpack.c.bf16 %v5192_v2, %v5192_v2  ;;  %v1607_v23 = vpack.c.b16 %v1582_v60, %v1581_v57  ;;  %v441_v57 = vpack.c.bf16 %v5214_v28, %v5214_v28  ;;  %v5323_v60 = vld [vmem:[%s4813_s23 + $0x80] sm:$0xff] }
  0x97   : > { %6803 = vst [vmem:[#allocation6_spill] sm:$0xff] %v5198_v37 }
  0x98   : > { %v1480_v32 = vmax.f32 %v1102_v55, %v5250_v26 }
  0x99   : > { %v5144_v12 = vpop.f32.mrf.mxu1 }
  0x9c   : > { %4094 = vmatmul.msk.bf16.gmra.mxu1 %vm676_vm0, %v882_v29  ;;  %4126 = vmatmul.msk.bf16.gmra.mxu2 %vm676_vm0, %v1227_v48  ;;  %v5154_v47 = vpop.f32.mrf.mxu0  ;;  %v1580_v29 = vunpack.c.l.b16 %v1508_v33  ;;  %v439_v33 = vpack.c.bf16 %v5152_v20, %v5152_v20 }
  0x9e   : > { %v1606_v6 = vpack.c.b16 %v1580_v29, %v1579_v10  ;;  %v858_v10 = vunpack.c.l.b16 %v438_v21  ;;  %v859_v29 = vunpack.c.l.b16 %v439_v33  ;;  %v516_v21 = vmax.f32 %v5271_v54, %v4628_v5 }
  0x9f   : > { %4158 = vmatmul.msk.bf16.gmra.mxu3 %vm676_vm0, %v1605_v16  ;;  %v5161_v22 = vpop.f32.mrf.mxu2  ;;  %4190 = vmatmul.msk.bf16.gmra.mxu0 %vm676_vm0, %v1983_v50 }
  0xa1   : > { %v5178_v25 = vpop.f32.mrf.mxu1 }
  0xa2   : > { %v5176_v35 = vpop.f32.mrf.mxu3 }
  0xa3   : > { %6801 = vst [vmem:[#allocation4_spill] sm:$0xff] %v5176_v35 }
  0xa4   : > { %v5200_v1 = vpop.f32.mrf.mxu0 }
  0xa7   : > { %v5202_v48 = vpop.f32.mrf.mxu2 }
  0xa9   : > { %v5206_v50 = vpop.f32.mrf.mxu1 }
  0xaa   : > { %v5204_v16 = vpop.f32.mrf.mxu3 }
  0xab   : > { %6804 = vst [vmem:[#allocation7_spill] sm:$0xff] %v5204_v16  ;;  %v5375_v16 = vld [vmem:[%s4737_s30 + $0xd9] sm:$0xff] }
  0xac   : > { %4095 = vmatmul.msk.bf16.gmra.mxu1 %vm676_vm0, %v883_v24  ;;  %4127 = vmatmul.msk.bf16.gmra.mxu2 %vm676_vm0, %v1228_v49  ;;  %v5216_v3 = vpop.f32.mrf.mxu0  ;;  %v5259_v24 = vld [vmem:[%s4813_s23 + $0x70] sm:$0xff]  ;;  %v5262_v49 = vld [vmem:[%s4813_s23 + $0x78] sm:$0xff] }
  0xad   : > { %v5268_v43 = vmax.f32 %v1480_v32, %v5262_v49  ;;  %v1229_v32 = vpack.c.b16 %v1204_v27, %v1203_v53  ;;  %v5306_v53 = vld [vmem:[%s4807_s21 + $0xc8] sm:$0xff] }
  0xaf   : > { %4159 = vmatmul.msk.bf16.gmra.mxu3 %vm676_vm0, %v1606_v6  ;;  %v5223_v13 = vpop.f32.mrf.mxu2  ;;  %4191 = vmatmul.msk.bf16.gmra.mxu0 %vm676_vm0, %v1984_v17  ;;  %v5265_v6 = vmax.f32 %v1479_v38, %v5259_v24  ;;  %6807 = vst [vmem:[#allocation10_spill] sm:$0xff] %v5268_v43  ;;  %v5274_v17 = vld [vmem:[%s4737_s30 + $0xc8] sm:$0xff]  ;;  %v884_v38 = vpack.c.b16 %v859_v29, %v858_v10  ;;  %v1959_v43 = vunpack.c.l.b16 %v1887_v4  ;;  %v5303_v29 = vld [vmem:[%s4807_s21 + $0xc0] sm:$0xff] }
  0xb0   : > { %v517_v33 = vmax.f32 %v5274_v17, %v4635_v8  ;;  %v1960_v8 = vunpack.c.l.b16 %v1888_v11 }
  0xb1   : > { %v5244_v20 = vpop.f32.mrf.mxu1  ;;  %6806 = vst [vmem:[#allocation9_spill] sm:$0xff] %v5265_v6  ;;  %v1103_v6 = vmax.f32 %v516_v21, %v5289_v0  ;;  %v4456_v21 = vld [vmem:[%s6795_s4 + $0xc8] sm:$0xff] }
  0xb2   : > { %v5242_v51 = vpop.f32.mrf.mxu3  ;;  %v1985_v10 = vpack.c.b16 %v1960_v8, %v1959_v43  ;;  %v440_v43 = vpack.c.bf16 %v5211_v18, %v5211_v18  ;;  %2830 = vmatpush.bf16.msra.mxu2 %v4456_v21 }
  0xb3   : > { %6805 = vst [vmem:[#allocation8_spill] sm:$0xff] %v5242_v51  ;;  %v5292_v51 = vld [vmem:[%s4737_s30 + $0xc9] sm:$0xff]  ;;  %v1481_v4 = vmax.f32 %v1103_v6, %v5303_v29  ;;  %v1133_v6 = vpack.c.bf16 %v5230_v59, %v5230_v59 }
  0xb4   : > { %v5284_v63 = vpop.f32.mrf.mxu0  ;;  %v1104_v31 = vmax.f32 %v517_v33, %v5292_v51  ;;  %v4460_v59 = vld [vmem:[%s6795_s4 + $0xe8] sm:$0xff] }
  0xb5   : > { %v5333_v8 = vmax.f32 %v1481_v4, %v5323_v60  ;;  %v4452_v4 = vld [vmem:[%s6795_s4 + $0xa8] sm:$0xff]  ;;  %3209 = vmatpush.bf16.msra.mxu3 %v4460_v59  ;;  %v1205_v21 = vunpack.c.l.b16 %v1133_v6 }
  0xb6   : > { %v1482_v11 = vmax.f32 %v1104_v31, %v5306_v53  ;;  %2450 = vmatpush.bf16.msra.mxu1 %v4452_v4  ;;  %v4464_v4 = vld [vmem:[%s6795_s4 + $0x108] sm:$0xff] }
  0xb7   : > { %v5286_v55 = vpop.f32.mrf.mxu2  ;;  %6810 = vst [vmem:[#allocation13_spill] sm:$0xff] %v5333_v8  ;;  %v5354_v8 = vld [vmem:[%s4737_s30 + $0xd8] sm:$0xff]  ;;  %3586 = vmatpush.bf16.msra.mxu0 %v4464_v4 }
  0xb8   : > { %v518_v59 = vmax.f32 %v5354_v8, %v4683_v39  ;;  %v5378_v39 = vld [vmem:[%s4737_s30 + $0xe1] sm:$0xff] }
  0xb9   : > { %v5296_v5 = vpop.f32.mrf.mxu1 }
  0xba   : > { %v5294_v2 = vpop.f32.mrf.mxu3  ;;  %v1105_v37 = vmax.f32 %v518_v59, %v5375_v16 }
  0xbb   : > { %6808 = vst [vmem:[#allocation11_spill] sm:$0xff] %v5294_v2 }
  0xbc   : > { %4096 = vmatmul.msk.bf16.gmra.mxu1 %vm676_vm0, %v884_v38  ;;  %4128 = vmatmul.msk.bf16.gmra.mxu2 %vm676_vm0, %v1229_v32  ;;  %v5308_v27 = vpop.f32.mrf.mxu0  ;;  %v5326_v38 = vld [vmem:[%s4813_s23 + $0x88] sm:$0xff]  ;;  %v1134_v32 = vpack.c.bf16 %v5233_v56, %v5233_v56  ;;  %v1511_v56 = vpack.c.bf16 %v5247_v52, %v5247_v52  ;;  %v1889_v52 = vpack.c.bf16 %v5259_v24, %v5259_v24 }
  0xbd   : > { %v5336_v18 = vmax.f32 %v1482_v11, %v5326_v38  ;;  %v861_v11 = vunpack.c.l.b16 %v441_v57 }
  0xbe   : > { %v1583_v6 = vunpack.c.l.b16 %v1511_v56  ;;  %v1961_v56 = vunpack.c.l.b16 %v1889_v52 }
  0xbf   : > { %4160 = vmatmul.msk.bf16.gmra.mxu3 %vm676_vm0, %v1607_v23  ;;  %v5316_v33 = vpop.f32.mrf.mxu2  ;;  %6811 = vst [vmem:[#allocation14_spill] sm:$0xff] %v5336_v18  ;;  %4192 = vmatmul.msk.bf16.gmra.mxu0 %vm676_vm0, %v1985_v10  ;;  %v1512_v23 = vpack.c.bf16 %v5250_v26, %v5250_v26  ;;  %v860_v10 = vunpack.c.l.b16 %v440_v43  ;;  %v1206_v18 = vunpack.c.l.b16 %v1134_v32  ;;  %v1890_v26 = vpack.c.bf16 %v5262_v49, %v5262_v49 }
  0xc0   : > { %6809 = vst [vmem:[#allocation12_spill] sm:$0xff] %v5316_v33 }
  0xc1   : > { %v5341_v31 = vpop.f32.mrf.mxu1  ;;  %v1584_v32 = vunpack.c.l.b16 %v1512_v23  ;;  %v885_v24 = vpack.c.b16 %v861_v11, %v860_v10  ;;  %v1230_v49 = vpack.c.b16 %v1206_v18, %v1205_v21  ;;  %v1962_v23 = vunpack.c.l.b16 %v1890_v26  ;;  %v5389_v11 = vld [vmem:[%s4807_s21 + $0xd8] sm:$0xff]  ;;  %v5392_v21 = vld [vmem:[%s4807_s21 + $0xe0] sm:$0xff] }
  0xc2   : > { %v5339_v28 = vpop.f32.mrf.mxu3  ;;  %v1483_v52 = vmax.f32 %v1105_v37, %v5389_v11 }
  0xc3   : > { %6812 = vst [vmem:[#allocation15_spill] sm:$0xff] %v5339_v28  ;;  %v5357_v28 = vld [vmem:[%s4737_s30 + $0xe0] sm:$0xff]  ;;  %v1608_v10 = vpack.c.b16 %v1584_v32, %v1583_v6  ;;  %v1986_v18 = vpack.c.b16 %v1962_v23, %v1961_v56  ;;  %v443_v6 = vpack.c.bf16 %v5274_v17, %v5274_v17  ;;  %v5406_v32 = vld [vmem:[%s4813_s23 + $0x90] sm:$0xff]  ;;  %v1513_v23 = vpack.c.bf16 %v5303_v29, %v5303_v29 }
  0xc4   : > { %v519_v43 = vmax.f32 %v5357_v28, %v4686_v40  ;;  %v5367_v57 = vpop.f32.mrf.mxu0  ;;  %v5416_v37 = vmax.f32 %v1483_v52, %v5406_v32 }
  0xc6   : > { %v1106_v36 = vmax.f32 %v519_v43, %v5378_v39  ;;  %v442_v43 = vpack.c.bf16 %v5271_v54, %v5271_v54  ;;  %6816 = vst [vmem:[#allocation19_spill] sm:$0xff] %v5416_v37 }
  0xc7   : > { %v5372_v2 = vpop.f32.mrf.mxu2 }
  0xc8   : > { %6813 = vst [vmem:[#allocation16_spill] sm:$0xff] %v5372_v2  ;;  %v1484_v26 = vmax.f32 %v1106_v36, %v5392_v21  ;;  %v1136_v36 = vpack.c.bf16 %v5292_v51, %v5292_v51  ;;  %v863_v51 = vunpack.c.l.b16 %v443_v6  ;;  %v1585_v6 = vunpack.c.l.b16 %v1513_v23 }
  0xc9   : > { %v5382_v35 = vpop.f32.mrf.mxu1 }
  0xca   : > { %v5380_v40 = vpop.f32.mrf.mxu3  ;;  %v1208_v37 = vunpack.c.l.b16 %v1136_v36 }
  0xcb   : > { %6814 = vst [vmem:[#allocation17_spill] sm:$0xff] %v5380_v40 }
  0xcc   : > { %4097 = vmatmul.msk.bf16.gmra.mxu1 %vm676_vm0, %v885_v24  ;;  %4129 = vmatmul.msk.bf16.gmra.mxu2 %vm676_vm0, %v1230_v49  ;;  %v5394_v4 = vpop.f32.mrf.mxu0  ;;  %v5409_v24 = vld [vmem:[%s4813_s23 + $0x98] sm:$0xff]  ;;  %v1135_v49 = vpack.c.bf16 %v5289_v0, %v5289_v0  ;;  %v1514_v0 = vpack.c.bf16 %v5306_v53, %v5306_v53 }
  0xcd   : > { %v5419_v54 = vmax.f32 %v1484_v26, %v5409_v24  ;;  %v5431_v26 = vld [vmem:[%s4737_s30 + $0xf0] sm:$0xff] }
  0xce   : > { %v1207_v52 = vunpack.c.l.b16 %v1135_v49  ;;  %v520_v29 = vmax.f32 %v5431_v26, %v4743_v14  ;;  %v1586_v49 = vunpack.c.l.b16 %v1514_v0 }
  0xcf   : > { %4161 = vmatmul.msk.bf16.gmra.mxu3 %vm676_vm0, %v1608_v10  ;;  %v5399_v59 = vpop.f32.mrf.mxu2  ;;  %6817 = vst [vmem:[#allocation20_spill] sm:$0xff] %v5419_v54  ;;  %4193 = vmatmul.msk.bf16.gmra.mxu0 %vm676_vm0, %v1986_v18  ;;  %v862_v10 = vunpack.c.l.b16 %v442_v43  ;;  %v5434_v54 = vld [vmem:[%s4737_s30 + $0xf8] sm:$0xff]  ;;  %v1891_v18 = vpack.c.bf16 %v5323_v60, %v5323_v60 }
  0xd0   : > { %6815 = vst [vmem:[#allocation18_spill] sm:$0xff] %v5399_v59  ;;  %v521_v53 = vmax.f32 %v5434_v54, %v4746_v15  ;;  %v1231_v59 = vpack.c.b16 %v1208_v37, %v1207_v52  ;;  %v5449_v60 = vld [vmem:[%s4737_s30 + $0xf1] sm:$0xff] }
  0xd1   : > { %v5424_v56 = vpop.f32.mrf.mxu1  ;;  %v886_v40 = vpack.c.b16 %v863_v51, %v862_v10  ;;  %v1963_v30 = vunpack.c.l.b16 %v1891_v18  ;;  %v1107_v15 = vmax.f32 %v520_v29, %v5449_v60  ;;  %v1609_v10 = vpack.c.b16 %v1586_v49, %v1585_v6  ;;  %v5462_v51 = vld [vmem:[%s4807_s21 + $0xf0] sm:$0xff]  ;;  %v5465_v52 = vld [vmem:[%s4807_s21 + $0xf8] sm:$0xff] }
  0xd2   : > { %v5422_v17 = vpop.f32.mrf.mxu3  ;;  %v1108_v23 = vmax.f32 %v521_v53, %v5452_v42  ;;  %v1138_v49 = vpack.c.bf16 %v5378_v39, %v5378_v39  ;;  %v1516_v39 = vpack.c.bf16 %v5392_v21, %v5392_v21  ;;  %v1894_v21 = vpack.c.bf16 %v5409_v24, %v5409_v24 }
  0xd3   : > { %6818 = vst [vmem:[#allocation21_spill] sm:$0xff] %v5422_v17  ;;  %v1892_v17 = vpack.c.bf16 %v5326_v38, %v5326_v38 }
  0xd4   : > { %v5444_v43 = vpop.f32.mrf.mxu0  ;;  %v1486_v29 = vmax.f32 %v1108_v23, %v5465_v52 }
  0xd5   : > { %v1964_v2 = vunpack.c.l.b16 %v1892_v17  ;;  %v1485_v17 = vmax.f32 %v1107_v15, %v5462_v51 }
  0xd7   : > { %v5446_v36 = vpop.f32.mrf.mxu2  ;;  %v1987_v37 = vpack.c.b16 %v1964_v2, %v1963_v30  ;;  %v1137_v30 = vpack.c.bf16 %v5375_v16, %v5375_v16  ;;  %v5477_v2 = vld [vmem:[%s4813_s23 + $0xa0] sm:$0xff] }
  0xd8   : > { %6819 = vst [vmem:[#allocation22_spill] sm:$0xff] %v5446_v36  ;;  %v1966_v36 = vunpack.c.l.b16 %v1894_v21  ;;  %v5541_v21 = vld [vmem:[%s4813_s23 + $0xb0] sm:$0xff] }
  0xd9   : > { %v975_v14 = vpop.f32.mrf.mxu1 }
  0xda   : > { %v5454_v38 = vpop.f32.mrf.mxu3  ;;  %v976_v0 = vadd.f32 %v975_v14, %v5154_v47  ;;  %v444_v47 = vpack.c.bf16 %v5354_v8, %v5354_v8  ;;  %v5485_v14 = vmax.f32 %v1485_v17, %v5477_v2  ;;  %v5497_v17 = vld [vmem:[%s4737_s30 + $0x108] sm:$0xff] }
  0xdb   : > { %6820 = vst [vmem:[#allocation23_spill] sm:$0xff] %v5454_v38 }
  0xdc   : > { %4098 = vmatmul.msk.bf16.gmra.mxu1 %vm676_vm0, %v886_v40  ;;  %4130 = vmatmul.msk.bf16.gmra.mxu2 %vm676_vm0, %v1231_v59  ;;  %v2076_v18 = vpop.f32.mrf.mxu0  ;;  %v445_v40 = vpack.c.bf16 %v5357_v28, %v5357_v28  ;;  %v5480_v59 = vld [vmem:[%s4813_s23 + $0xa8] sm:$0xff]  ;;  %6821 = vst [vmem:[#allocation24_spill] sm:$0xff] %v5485_v14  ;;  %v5502_v14 = vld [vmem:[%s4737_s30 + $0x110] sm:$0xff] }
  0xdd   : > { %v5488_v8 = vmax.f32 %v1486_v29, %v5480_v59  ;;  %v1209_v29 = vunpack.c.l.b16 %v1137_v30 }
  0xdf   : > { %4162 = vmatmul.msk.bf16.gmra.mxu3 %vm676_vm0, %v1609_v10  ;;  %v1320_v53 = vpop.f32.mrf.mxu2  ;;  %6822 = vst [vmem:[#allocation25_spill] sm:$0xff] %v5488_v8  ;;  %4194 = vmatmul.msk.bf16.gmra.mxu0 %vm676_vm0, %v1987_v37  ;;  %v864_v10 = vunpack.c.l.b16 %v444_v47  ;;  %v1210_v8 = vunpack.c.l.b16 %v1138_v49  ;;  %v523_v47 = vmax.f32 %v5502_v14, %v4833_v62 }
  0xe0   : > { %v1400_v6 = vadd.f32 %v1320_v53, %v976_v0  ;;  %v1515_v0 = vpack.c.bf16 %v5389_v11, %v5389_v11  ;;  %v865_v53 = vunpack.c.l.b16 %v445_v40  ;;  %v1893_v11 = vpack.c.bf16 %v5406_v32, %v5406_v32 }
  0xe1   : > { %v977_v15 = vpop.f32.mrf.mxu1 }
  0xe2   : > { %v1698_v28 = vpop.f32.mrf.mxu3  ;;  %v978_v23 = vadd.f32 %v977_v15, %v5200_v1  ;;  %v522_v1 = vmax.f32 %v5497_v17, %v4830_v61  ;;  %v1587_v30 = vunpack.c.l.b16 %v1515_v0  ;;  %v887_v15 = vpack.c.b16 %v865_v53, %v864_v10  ;;  %v5527_v10 = vld [vmem:[%s4807_s21 + $0x110] sm:$0xff] }
  0xe3   : > { %v1778_v16 = vadd.f32 %v1698_v28, %v1400_v6  ;;  %v1588_v6 = vunpack.c.l.b16 %v1516_v39  ;;  %v1232_v61 = vpack.c.b16 %v1210_v8, %v1209_v29  ;;  %v1965_v38 = vunpack.c.l.b16 %v1893_v11 }
  0xe4   : > { %v2078_v40 = vpop.f32.mrf.mxu0  ;;  %v446_v11 = vpack.c.bf16 %v5431_v26, %v5431_v26 }
  0xe5   : > { %v5499_v37 = vadd.f32 %v2076_v18, %v1778_v16  ;;  %v5513_v18 = vld [vmem:[%s4737_s30 + $0x109] sm:$0xff]  ;;  %v5516_v16 = vld [vmem:[%s4737_s30 + $0x111] sm:$0xff]  ;;  %v1610_v33 = vpack.c.b16 %v1588_v6, %v1587_v30  ;;  %v1988_v8 = vpack.c.b16 %v1966_v36, %v1965_v38  ;;  %v447_v36 = vpack.c.bf16 %v5434_v54, %v5434_v54 }
  0xe6   : > { %v1109_v32 = vmax.f32 %v522_v1, %v5513_v18  ;;  %v1110_v62 = vmax.f32 %v523_v47, %v5516_v16  ;;  %v1139_v38 = vpack.c.bf16 %v5449_v60, %v5449_v60  ;;  %v5544_v47 = vld [vmem:[%s4813_s23 + $0xb8] sm:$0xff] }
  0xe7   : > { %6823 = vst [vmem:[#allocation26_spill] sm:$0xff] %v5499_v37  ;;  %v1322_v49 = vpop.f32.mrf.mxu2 }
  0xe8   : > { %v1401_v28 = vadd.f32 %v1322_v49, %v978_v23  ;;  %v5524_v23 = vld [vmem:[%s4807_s21 + $0x108] sm:$0xff] }
  0xe9   : > { %v980_v24 = vpop.f32.mrf.mxu1 }
  0xea   : > { %v1700_v37 = vpop.f32.mrf.mxu3  ;;  %v981_v39 = vadd.f32 %v980_v24, %v5216_v3  ;;  %v1488_v3 = vmax.f32 %v1110_v62, %v5527_v10  ;;  %v1211_v24 = vunpack.c.l.b16 %v1139_v38  ;;  %v5577_v38 = vld [vmem:[%s4737_s30 + $0x121] sm:$0xff] }
  0xeb   : > { %v1779_v0 = vadd.f32 %v1700_v37, %v1401_v28  ;;  %v1487_v37 = vmax.f32 %v1109_v32, %v5524_v23  ;;  %v1517_v28 = vpack.c.bf16 %v5462_v51, %v5462_v51  ;;  %v867_v32 = vunpack.c.l.b16 %v447_v36 }
  0xec   : > { %4099 = vmatmul.msk.bf16.gmra.mxu1 %vm676_vm0, %v887_v15  ;;  %4131 = vmatmul.msk.bf16.gmra.mxu2 %vm676_vm0, %v1232_v61  ;;  %v2081_v29 = vpop.f32.mrf.mxu0  ;;  %v5552_v26 = vmax.f32 %v1488_v3, %v5544_v47  ;;  %v866_v15 = vunpack.c.l.b16 %v446_v11  ;;  %v5561_v61 = vld [vmem:[%s4737_s30 + $0x120] sm:$0xff]  ;;  %v1895_v51 = vpack.c.bf16 %v5477_v2, %v5477_v2 }
  0xed   : > { %v5529_v53 = vadd.f32 %v2078_v40, %v1779_v0  ;;  %v1140_v40 = vpack.c.bf16 %v5452_v42, %v5452_v42  ;;  %v5549_v30 = vmax.f32 %v1487_v37, %v5541_v21  ;;  %v1518_v42 = vpack.c.bf16 %v5465_v52, %v5465_v52  ;;  %v4508_v37 = vld [vmem:[%s4619_s14 + $0xc8] sm:$0xff] }
  0xee   : > { %6825 = vst [vmem:[#allocation28_spill] sm:$0xff] %v5552_v26  ;;  %v1896_v52 = vpack.c.bf16 %v5480_v59, %v5480_v59  ;;  %v1589_v11 = vunpack.c.l.b16 %v1517_v28 }
  0xef   : > { %4163 = vmatmul.msk.bf16.gmra.mxu3 %vm676_vm0, %v1610_v33  ;;  %v1325_v1 = vpop.f32.mrf.mxu2  ;;  %6824 = vst [vmem:[#allocation27_spill] sm:$0xff] %v5549_v30  ;;  %4195 = vmatmul.msk.bf16.gmra.mxu0 %vm676_vm0, %v1988_v8  ;;  %v1212_v62 = vunpack.c.l.b16 %v1140_v40  ;;  %v4507_v8 = vld [vmem:[%s4619_s14 + $0xc0] sm:$0xff]  ;;  %v1590_v36 = vunpack.c.l.b16 %v1518_v42  ;;  %v888_v40 = vpack.c.b16 %v867_v32, %v866_v15  ;;  %v5591_v32 = vld [vmem:[%s4807_s21 + $0x128] sm:$0xff] }
  0xf0   : > { %v1402_v33 = vadd.f32 %v1325_v1, %v981_v39  ;;  %v5566_v39 = vld [vmem:[%s4737_s30 + $0x128] sm:$0xff]  ;;  %v1968_v26 = vunpack.c.l.b16 %v1896_v52  ;;  %v5588_v15 = vld [vmem:[%s4807_s21 + $0x120] sm:$0xff] }
  0xf1   : > { %v982_v60 = vpop.f32.mrf.mxu1  ;;  %v525_v3 = vmax.f32 %v5566_v39, %v4508_v37  ;;  %v1611_v30 = vpack.c.b16 %v1590_v36, %v1589_v11  ;;  %v5608_v11 = vld [vmem:[%s4813_s23 + $0xc0] sm:$0xff] }
  0xf2   : > { %v1703_v54 = vpop.f32.mrf.mxu3  ;;  %v983_v49 = vadd.f32 %v982_v60, %v5284_v63  ;;  %v524_v63 = vmax.f32 %v5561_v61, %v4507_v8  ;;  %v5580_v60 = vld [vmem:[%s4737_s30 + $0x129] sm:$0xff]  ;;  %v1967_v8 = vunpack.c.l.b16 %v1895_v51  ;;  %v4455_v51 = vld [vmem:[%s6795_s4 + $0xc0] sm:$0xff] }
  0xf3   : > { %v1780_v6 = vadd.f32 %v1703_v54, %v1402_v33  ;;  %v1233_v54 = vpack.c.b16 %v1212_v62, %v1211_v24  ;;  %v1112_v37 = vmax.f32 %v525_v3, %v5580_v60  ;;  %v449_v3 = vpack.c.bf16 %v5502_v14, %v5502_v14  ;;  %2831 = vmatpush.bf16.msra.mxu2 %v4455_v51 }
  0xf4   : > { %v2083_v1 = vpop.f32.mrf.mxu0  ;;  %v1111_v2 = vmax.f32 %v524_v63, %v5577_v38  ;;  %v1898_v51 = vpack.c.bf16 %v5544_v47, %v5544_v47  ;;  %v5656_v47 = vld [vmem:[%s4737_s30 + $0x141] sm:$0xff] }
  0xf5   : > { %v5563_v0 = vadd.f32 %v2081_v29, %v1780_v6 }
  0xf6   : > { %v1489_v63 = vmax.f32 %v1111_v2, %v5588_v15  ;;  %v1519_v2 = vpack.c.bf16 %v5524_v23, %v5524_v23  ;;  %v5639_v23 = vld [vmem:[%s4737_s30 + $0x140] sm:$0xff] }
  0xf7   : > { %v1327_v29 = vpop.f32.mrf.mxu2 }
  0xf8   : > { %v1403_v33 = vadd.f32 %v1327_v29, %v983_v49  ;;  %v1989_v49 = vpack.c.b16 %v1968_v26, %v1967_v8  ;;  %v448_v26 = vpack.c.bf16 %v5497_v17, %v5497_v17  ;;  %v1142_v29 = vpack.c.bf16 %v5516_v16, %v5516_v16 }
  0xf9   : > { %v985_v59 = vpop.f32.mrf.mxu1 }
  0xfa   : > { %v1705_v6 = vpop.f32.mrf.mxu3  ;;  %v986_v42 = vadd.f32 %v985_v59, %v5308_v27  ;;  %v1490_v27 = vmax.f32 %v1112_v37, %v5591_v32  ;;  %v4451_v59 = vld [vmem:[%s6795_s4 + $0xa0] sm:$0xff]  ;;  %v868_v8 = vunpack.c.l.b16 %v448_v26  ;;  %v5634_v37 = vld [vmem:[%s4737_s30 + $0x138] sm:$0xff] }
  0xfb   : > { %v1781_v28 = vadd.f32 %v1705_v6, %v1403_v33  ;;  %v5616_v33 = vmax.f32 %v1489_v63, %v5608_v11  ;;  %v1520_v6 = vpack.c.bf16 %v5527_v10, %v5527_v10  ;;  %2451 = vmatpush.bf16.msra.mxu1 %v4451_v59  ;;  %v4509_v63 = vld [vmem:[%s4619_s14 + $0xd0] sm:$0xff] }
  0xfc   : > { %4100 = vmatmul.msk.bf16.gmra.mxu1 %vm676_vm0, %v888_v40  ;;  %4132 = vmatmul.msk.bf16.gmra.mxu2 %vm676_vm0, %v1233_v54  ;;  %v2086_v62 = vpop.f32.mrf.mxu0  ;;  %v4459_v40 = vld [vmem:[%s6795_s4 + $0xe0] sm:$0xff]  ;;  %v526_v10 = vmax.f32 %v5634_v37, %v4509_v63  ;;  %v1970_v63 = vunpack.c.l.b16 %v1898_v51 }
  0xfd   : > { %v5593_v24 = vadd.f32 %v2083_v1, %v1781_v28  ;;  %v1141_v1 = vpack.c.bf16 %v5513_v18, %v5513_v18  ;;  %6826 = vst [vmem:[#allocation29_spill] sm:$0xff] %v5616_v33  ;;  %3210 = vmatpush.bf16.msra.mxu3 %v4459_v40  ;;  %v869_v28 = vunpack.c.l.b16 %v449_v3 }
  0xff   : > { %4164 = vmatmul.msk.bf16.gmra.mxu3 %vm676_vm0, %v1611_v30  ;;  %v1330_v52 = vpop.f32.mrf.mxu2  ;;  %v5611_v30 = vld [vmem:[%s4813_s23 + $0xc8] sm:$0xff]  ;;  %4196 = vmatmul.msk.bf16.gmra.mxu0 %vm676_vm0, %v1989_v49  ;;  %v1214_v49 = vunpack.c.l.b16 %v1142_v29  ;;  %v889_v40 = vpack.c.b16 %v869_v28, %v868_v8  ;;  %v5664_v28 = vld [vmem:[%s4807_s21 + $0x138] sm:$0xff] }
 0x100   : > { %v1404_v36 = vadd.f32 %v1330_v52, %v986_v42  ;;  %v5619_v17 = vmax.f32 %v1490_v27, %v5611_v30  ;;  %v1213_v42 = vunpack.c.l.b16 %v1141_v1  ;;  %v1897_v27 = vpack.c.bf16 %v5541_v21, %v5541_v21  ;;  %v4510_v52 = vld [vmem:[%s4619_s14 + $0xd8] sm:$0xff] }
 0x101   : > { %v987_v18 = vpop.f32.mrf.mxu1  ;;  %v527_v26 = vmax.f32 %v5639_v23, %v4510_v52  ;;  %v1591_v1 = vunpack.c.l.b16 %v1519_v2 }
 0x102   : > { %6827 = vst [vmem:[#allocation30_spill] sm:$0xff] %v5619_v17  ;;  %v1708_v14 = vpop.f32.mrf.mxu3  ;;  %v988_v16 = vadd.f32 %v987_v18, %v5367_v57  ;;  %v1234_v21 = vpack.c.b16 %v1214_v49, %v1213_v42  ;;  %v5667_v42 = vld [vmem:[%s4807_s21 + $0x140] sm:$0xff] }
 0x103   : > { %v1782_v54 = vadd.f32 %v1708_v14, %v1404_v36  ;;  %v1592_v36 = vunpack.c.l.b16 %v1520_v6  ;;  %v5653_v14 = vld [vmem:[%s4737_s30 + $0x139] sm:$0xff]  ;;  %v1969_v6 = vunpack.c.l.b16 %v1897_v27  ;;  %v1114_v52 = vmax.f32 %v527_v26, %v5656_v47 }
 0x104   : > { %v2088_v3 = vpop.f32.mrf.mxu0  ;;  %v450_v26 = vpack.c.bf16 %v5561_v61, %v5561_v61 }
 0x105   : > { %v5636_v57 = vadd.f32 %v2086_v62, %v1782_v54  ;;  %v4463_v62 = vld [vmem:[%s6795_s4 + $0x100] sm:$0xff]  ;;  %v1113_v54 = vmax.f32 %v526_v10, %v5653_v14  ;;  %v1990_v8 = vpack.c.b16 %v1970_v63, %v1969_v6 }
 0x106   : > { %3587 = vmatpush.bf16.msra.mxu0 %v4463_v62  ;;  %v5681_v62 = vld [vmem:[%s4813_s23 + $0xd0] sm:$0xff] }
 0x107   : > { %v1332_v29 = vpop.f32.mrf.mxu2  ;;  %v1491_v27 = vmax.f32 %v1113_v54, %v5664_v28  ;;  %v870_v54 = vunpack.c.l.b16 %v450_v26 }
 0x108   : > { %v1405_v18 = vadd.f32 %v1332_v29, %v988_v16  ;;  %v1612_v16 = vpack.c.b16 %v1592_v36, %v1591_v1  ;;  %v451_v1 = vpack.c.bf16 %v5566_v39, %v5566_v39  ;;  %v1143_v36 = vpack.c.bf16 %v5577_v38, %v5577_v38 }
 0x109   : > { %v990_v2 = vpop.f32.mrf.mxu1  ;;  %v1144_v29 = vpack.c.bf16 %v5580_v60, %v5580_v60  ;;  %v1522_v60 = vpack.c.bf16 %v5591_v32, %v5591_v32 }
 0x10a   : > { %v1710_v59 = vpop.f32.mrf.mxu3  ;;  %v991_v33 = vadd.f32 %v990_v2, %v5394_v4  ;;  %v1492_v4 = vmax.f32 %v1114_v52, %v5667_v42  ;;  %v1215_v2 = vunpack.c.l.b16 %v1143_v36  ;;  %v5703_v52 = vld [vmem:[%s4737_s30 + $0x150] sm:$0xff] }
 0x10b   : > { %v1783_v17 = vadd.f32 %v1710_v59, %v1405_v18  ;;  %v5689_v18 = vmax.f32 %v1491_v27, %v5681_v62  ;;  %v871_v59 = vunpack.c.l.b16 %v451_v1  ;;  %v1216_v6 = vunpack.c.l.b16 %v1144_v29  ;;  %v4512_v27 = vld [vmem:[%s4619_s14 + $0xe8] sm:$0xff] }
 0x10c   : > { %4101 = vmatmul.msk.bf16.gmra.mxu1 %vm676_vm0, %v889_v40  ;;  %4133 = vmatmul.msk.bf16.gmra.mxu2 %vm676_vm0, %v1234_v21  ;;  %v2091_v10 = vpop.f32.mrf.mxu0  ;;  %v1521_v21 = vpack.c.bf16 %v5588_v15, %v5588_v15  ;;  %v1900_v15 = vpack.c.bf16 %v5611_v30, %v5611_v30  ;;  %v1594_v26 = vunpack.c.l.b16 %v1522_v60 }
 0x10d   : > { %v5669_v49 = vadd.f32 %v2088_v3, %v1783_v17  ;;  %v5684_v17 = vld [vmem:[%s4813_s23 + $0xd8] sm:$0xff]  ;;  %v1235_v29 = vpack.c.b16 %v1216_v6, %v1215_v2 }
 0x10e   : > { %v5692_v61 = vmax.f32 %v1492_v4, %v5684_v17 }
 0x10f   : > { %4165 = vmatmul.msk.bf16.gmra.mxu3 %vm676_vm0, %v1612_v16  ;;  %v1335_v51 = vpop.f32.mrf.mxu2  ;;  %4197 = vmatmul.msk.bf16.gmra.mxu0 %vm676_vm0, %v1990_v8  ;;  %v5706_v16 = vld [vmem:[%s4737_s30 + $0x158] sm:$0xff]  ;;  %v4511_v8 = vld [vmem:[%s4619_s14 + $0xe0] sm:$0xff] }
 0x110   : > { %v1406_v3 = vadd.f32 %v1335_v51, %v991_v33  ;;  %6828 = vst [vmem:[#allocation31_spill] sm:$0xff] %v5692_v61  ;;  %v528_v32 = vmax.f32 %v5703_v52, %v4511_v8  ;;  %v529_v4 = vmax.f32 %v5706_v16, %v4512_v27  ;;  %v1593_v51 = vunpack.c.l.b16 %v1521_v21 }
 0x111   : > { %v992_v38 = vpop.f32.mrf.mxu1  ;;  %v1972_v8 = vunpack.c.l.b16 %v1900_v15 }
 0x112   : > { %v1713_v39 = vpop.f32.mrf.mxu3  ;;  %v993_v33 = vadd.f32 %v992_v38, %v5444_v43  ;;  %v1899_v43 = vpack.c.bf16 %v5608_v11, %v5608_v11  ;;  %v5720_v11 = vld [vmem:[%s4737_s30 + $0x159] sm:$0xff]  ;;  %v1613_v60 = vpack.c.b16 %v1594_v26, %v1593_v51  ;;  %v452_v51 = vpack.c.bf16 %v5634_v37, %v5634_v37 }
 0x113   : > { %v1784_v40 = vadd.f32 %v1713_v39, %v1406_v3  ;;  %v890_v3 = vpack.c.b16 %v871_v59, %v870_v54  ;;  %v5717_v39 = vld [vmem:[%s4737_s30 + $0x151] sm:$0xff]  ;;  %v1116_v27 = vmax.f32 %v529_v4, %v5720_v11  ;;  %v453_v26 = vpack.c.bf16 %v5639_v23, %v5639_v23 }
 0x114   : > { %v1115_v61 = vmax.f32 %v528_v32, %v5717_v39  ;;  %v5727_v54 = vld [vmem:[%s4807_s21 + $0x150] sm:$0xff]  ;;  %v5730_v59 = vld [vmem:[%s4807_s21 + $0x158] sm:$0xff] }
 0x115   : > { %v5700_v63 = vadd.f32 %v2091_v10, %v1784_v40  ;;  %v2093_v10 = vpop.f32.mrf.mxu0  ;;  %v1971_v40 = vunpack.c.l.b16 %v1899_v43  ;;  %v1494_v32 = vmax.f32 %v1116_v27, %v5730_v59 }
 0x116   : > { %v1493_v15 = vmax.f32 %v1115_v61, %v5727_v54  ;;  %v1146_v61 = vpack.c.bf16 %v5656_v47, %v5656_v47  ;;  %v872_v47 = vunpack.c.l.b16 %v452_v51 }
 0x117   : > { %v1337_v1 = vpop.f32.mrf.mxu2 }
 0x118   : > { %v1407_v36 = vadd.f32 %v1337_v1, %v993_v33  ;;  %v1991_v33 = vpack.c.b16 %v1972_v8, %v1971_v40  ;;  %v5745_v1 = vld [vmem:[%s4813_s23 + $0xe0] sm:$0xff]  ;;  %v5764_v40 = vld [vmem:[%s4737_s30 + $0x168] sm:$0xff]  ;;  %v873_v8 = vunpack.c.l.b16 %v453_v26 }
 0x119   : > { %v995_v38 = vpop.f32.mrf.mxu1 }
 0x11a   : > { %v1715_v30 = vpop.f32.mrf.mxu3  ;;  %v996_v6 = vadd.f32 %v995_v38, %v5144_v12  ;;  %v5748_v12 = vld [vmem:[%s4813_s23 + $0xe8] sm:$0xff]  ;;  %v1524_v38 = vpack.c.bf16 %v5667_v42, %v5667_v42  ;;  %v1902_v42 = vpack.c.bf16 %v5684_v17, %v5684_v17 }
 0x11b   : > { %v1785_v21 = vadd.f32 %v1715_v30, %v1407_v36  ;;  %v5756_v37 = vmax.f32 %v1494_v32, %v5748_v12  ;;  %v1523_v30 = vpack.c.bf16 %v5664_v28, %v5664_v28  ;;  %v1901_v28 = vpack.c.bf16 %v5681_v62, %v5681_v62  ;;  %v4514_v32 = vld [vmem:[%s4619_s14 + $0xf8] sm:$0xff] }
 0x11c   : > { %4102 = vmatmul.msk.bf16.gmra.mxu1 %vm676_vm0, %v890_v3  ;;  %4134 = vmatmul.msk.bf16.gmra.mxu2 %vm676_vm0, %v1235_v29  ;;  %v5753_v3 = vmax.f32 %v1493_v15, %v5745_v1  ;;  %v5784_v62 = vld [vmem:[%s4737_s30 + $0x171] sm:$0xff] }
 0x11d   : > { %v5732_v2 = vadd.f32 %v2093_v10, %v1785_v21  ;;  %v2096_v43 = vpop.f32.mrf.mxu0  ;;  %v1145_v10 = vpack.c.bf16 %v5653_v14, %v5653_v14  ;;  %6830 = vst [vmem:[#allocation33_spill] sm:$0xff] %v5756_v37  ;;  %v1218_v21 = vunpack.c.l.b16 %v1146_v61  ;;  %v1595_v26 = vunpack.c.l.b16 %v1523_v30 }
 0x11e   : > { %6829 = vst [vmem:[#allocation32_spill] sm:$0xff] %v5753_v3  ;;  %v1973_v3 = vunpack.c.l.b16 %v1901_v28 }
 0x11f   : > { %4166 = vmatmul.msk.bf16.gmra.mxu3 %vm676_vm0, %v1613_v60  ;;  %v1340_v4 = vpop.f32.mrf.mxu2  ;;  %4198 = vmatmul.msk.bf16.gmra.mxu0 %vm676_vm0, %v1991_v33  ;;  %v1217_v27 = vunpack.c.l.b16 %v1145_v10  ;;  %v5769_v33 = vld [vmem:[%s4737_s30 + $0x170] sm:$0xff]  ;;  %v1596_v10 = vunpack.c.l.b16 %v1524_v38 }
 0x120   : > { %v1408_v36 = vadd.f32 %v1340_v4, %v996_v6  ;;  %v4513_v6 = vld [vmem:[%s4619_s14 + $0xf0] sm:$0xff]  ;;  %v531_v4 = vmax.f32 %v5769_v33, %v4514_v32 }
 0x121   : > { %v997_v14 = vpop.f32.mrf.mxu1  ;;  %v530_v15 = vmax.f32 %v5764_v40, %v4513_v6  ;;  %v5781_v6 = vld [vmem:[%s4737_s30 + $0x169] sm:$0xff]  ;;  %v1614_v30 = vpack.c.b16 %v1596_v10, %v1595_v26  ;;  %v1148_v26 = vpack.c.bf16 %v5720_v11, %v5720_v11 }
 0x122   : > { %v1718_v23 = vpop.f32.mrf.mxu3  ;;  %v998_v51 = vadd.f32 %v997_v14, %v5178_v25  ;;  %v1118_v25 = vmax.f32 %v531_v4, %v5784_v62  ;;  %v454_v4 = vpack.c.bf16 %v5703_v52, %v5703_v52 }
 0x123   : > { %v1786_v29 = vadd.f32 %v1718_v23, %v1408_v36  ;;  %v891_v23 = vpack.c.b16 %v873_v8, %v872_v47  ;;  %v1117_v32 = vmax.f32 %v530_v15, %v5781_v6  ;;  %v5791_v47 = vld [vmem:[%s4807_s21 + $0x168] sm:$0xff]  ;;  %v5794_v8 = vld [vmem:[%s4807_s21 + $0x170] sm:$0xff] }
 0x124   : > { %v1496_v28 = vmax.f32 %v1118_v25, %v5794_v8 }
 0x125   : > { %v5766_v60 = vadd.f32 %v2096_v43, %v1786_v29  ;;  %v2098_v43 = vpop.f32.mrf.mxu0  ;;  %v1236_v29 = vpack.c.b16 %v1218_v21, %v1217_v27 }
 0x127   : > { %6831 = vst [vmem:[#allocation34_spill] sm:$0xff] %v5766_v60  ;;  %v1342_v36 = vpop.f32.mrf.mxu2  ;;  %v1974_v60 = vunpack.c.l.b16 %v1902_v42 }
 0x128   : > { %v1409_v61 = vadd.f32 %v1342_v36, %v998_v51  ;;  %v5809_v51 = vld [vmem:[%s4813_s23 + $0xf0] sm:$0xff] }
 0x129   : > { %v1000_v17 = vpop.f32.mrf.mxu1  ;;  %v1992_v38 = vpack.c.b16 %v1974_v60, %v1973_v3  ;;  %v455_v3 = vpack.c.bf16 %v5706_v16, %v5706_v16  ;;  %v1147_v60 = vpack.c.bf16 %v5717_v39, %v5717_v39 }
 0x12a   : > { %v1720_v37 = vpop.f32.mrf.mxu3  ;;  %v1001_v21 = vadd.f32 %v1000_v17, %v5206_v50  ;;  %v5812_v50 = vld [vmem:[%s4813_s23 + $0xf8] sm:$0xff] }
 0x12b   : > { %v1787_v14 = vadd.f32 %v1720_v37, %v1409_v61  ;;  %v1495_v37 = vmax.f32 %v1117_v32, %v5791_v47  ;;  %v5820_v52 = vmax.f32 %v1496_v28, %v5812_v50  ;;  %v1525_v61 = vpack.c.bf16 %v5727_v54, %v5727_v54 }
 0x12c   : > { %4103 = vmatmul.msk.bf16.gmra.mxu1 %vm676_vm0, %v891_v23  ;;  %4135 = vmatmul.msk.bf16.gmra.mxu2 %vm676_vm0, %v1236_v29  ;;  %v1526_v23 = vpack.c.bf16 %v5730_v59, %v5730_v59  ;;  %v874_v29 = vunpack.c.l.b16 %v454_v4  ;;  %v875_v11 = vunpack.c.l.b16 %v455_v3  ;;  %v1219_v17 = vunpack.c.l.b16 %v1147_v60 }
 0x12d   : > { %v5796_v27 = vadd.f32 %v2098_v43, %v1787_v14  ;;  %v2101_v15 = vpop.f32.mrf.mxu0  ;;  %v5817_v10 = vmax.f32 %v1495_v37, %v5809_v51  ;;  %6833 = vst [vmem:[#allocation36_spill] sm:$0xff] %v5820_v52  ;;  %v1220_v32 = vunpack.c.l.b16 %v1148_v26  ;;  %v4515_v14 = vld [vmem:[%s4807_s21 + $0x1] sm:$0xff]  ;;  %v1904_v28 = vpack.c.bf16 %v5748_v12, %v5748_v12 }
 0x12e   : > { %v1597_v59 = vunpack.c.l.b16 %v1525_v61  ;;  %v1598_v4 = vunpack.c.l.b16 %v1526_v23 }
 0x12f   : > { %4167 = vmatmul.msk.bf16.gmra.mxu3 %vm676_vm0, %v1614_v30  ;;  %v1345_v42 = vpop.f32.mrf.mxu2  ;;  %6832 = vst [vmem:[#allocation35_spill] sm:$0xff] %v5817_v10  ;;  %4199 = vmatmul.msk.bf16.gmra.mxu0 %vm676_vm0, %v1992_v38  ;;  %v2252_v30 = vpack.c.bf16 %v4515_v14, %v4515_v14  ;;  %v1903_v38 = vpack.c.bf16 %v5745_v1, %v5745_v1  ;;  %v1976_v1 = vunpack.c.l.b16 %v1904_v28 }
 0x130   : > { %v1410_v43 = vadd.f32 %v1345_v42, %v1001_v21  ;;  %v4516_v21 = vld [vmem:[%s4807_s21 + $0x9] sm:$0xff]  ;;  %v1615_v10 = vpack.c.b16 %v1598_v4, %v1597_v59  ;;  %v1906_v59 = vpack.c.bf16 %v5812_v50, %v5812_v50 }
 0x131   : > { %v1002_v39 = vpop.f32.mrf.mxu1  ;;  %v2253_v37 = vpack.c.bf16 %v4516_v21, %v4516_v21  ;;  %v5836_v26 = vunpack.c.l.b16 %v2252_v30  ;;  %v1975_v21 = vunpack.c.l.b16 %v1903_v38  ;;  %v1150_v30 = vpack.c.bf16 %v5784_v62, %v5784_v62 }
 0x132   : > { %v1723_v16 = vpop.f32.mrf.mxu3  ;;  %v1003_v54 = vadd.f32 %v1002_v39, %v5244_v20  ;;  %v1905_v62 = vpack.c.bf16 %v5809_v51, %v5809_v51 }
 0x133   : > { %v1788_v36 = vadd.f32 %v1723_v16, %v1410_v43  ;;  %v892_v43 = vpack.c.b16 %v875_v11, %v874_v29  ;;  %v5838_v16 = vunpack.c.l.b16 %v2253_v37  ;;  %v1993_v12 = vpack.c.b16 %v1976_v1, %v1975_v21  ;;  %v5872_v21 = vld [vmem:[%s4807_s21 + $0x21] sm:$0xff] }
 0x134   : > { %v456_v11 = vpack.c.bf16 %v5764_v40, %v5764_v40  ;;  %v1528_v40 = vpack.c.bf16 %v5794_v8, %v5794_v8  ;;  %v2223_v50 = vmax.f32 %v4944_v46, %v5872_v21 }
 0x135   : > { %v5827_v25 = vadd.f32 %v2101_v15, %v1788_v36  ;;  %v2103_v42 = vpop.f32.mrf.mxu0  ;;  %v1237_v15 = vpack.c.b16 %v1220_v32, %v1219_v17  ;;  %v2356_v39 = vpack.c.b16 %v5838_v16, %v5836_v26  ;;  %v457_v32 = vpack.c.bf16 %v5769_v33, %v5769_v33 }
 0x136   : > { %v876_v28 = vunpack.c.l.b16 %v456_v11 }
 0x137   : > { %v1347_v3 = vpop.f32.mrf.mxu2  ;;  %v877_v33 = vunpack.c.l.b16 %v457_v32  ;;  %v5884_v32 = vld [vmem:[%s4737_s30 + $0x38] sm:$0xff] }
 0x138   : > { %v1411_v60 = vadd.f32 %v1347_v3, %v1003_v54 }
 0x139   : > { %v1005_v14 = vpop.f32.mrf.mxu1 }
 0x13a   : > { %v1725_v36 = vpop.f32.mrf.mxu3  ;;  %v1006_v61 = vadd.f32 %v1005_v14, %v5296_v5  ;;  %v5869_v14 = vld [vmem:[%s4807_s21 + $0x19] sm:$0xff] }
 0x13b   : > { %v1789_v52 = vadd.f32 %v1725_v36, %v1411_v60  ;;  %v1600_v60 = vunpack.c.l.b16 %v1528_v40 }
 0x13c   : > { %4104 = vmatmul.msk.bf16.gmra.mxu1 %vm676_vm0, %v892_v43  ;;  %4136 = vmatmul.msk.bf16.gmra.mxu2 %vm676_vm0, %v1237_v15  ;;  %v893_v15 = vpack.c.b16 %v877_v33, %v876_v28 }
 0x13d   : > { %v5842_v20 = vadd.f32 %v2103_v42, %v1789_v52  ;;  %v2106_v23 = vpop.f32.mrf.mxu0  ;;  %v1149_v52 = vpack.c.bf16 %v5781_v6, %v5781_v6  ;;  %v1222_v6 = vunpack.c.l.b16 %v1150_v30 }
 0x13f   : > { %4168 = vmatmul.msk.bf16.gmra.mxu3 %vm676_vm0, %v1615_v10  ;;  %v1350_v29 = vpop.f32.mrf.mxu2  ;;  %4200 = vmatmul.msk.bf16.gmra.mxu0 %vm676_vm0, %v1993_v12  ;;  %v1527_v10 = vpack.c.bf16 %v5791_v47, %v5791_v47  ;;  %v1221_v54 = vunpack.c.l.b16 %v1149_v52  ;;  %v1977_v12 = vunpack.c.l.b16 %v1905_v62 }
 0x140   : > { %v1412_v17 = vadd.f32 %v1350_v29, %v1006_v61  ;;  %v1978_v61 = vunpack.c.l.b16 %v1906_v59  ;;  %v5903_v59 = vld [vmem:[%s4737_s30 + $0x31] sm:$0xff] }
 0x141   : > { %v1007_v37 = vpop.f32.mrf.mxu1  ;;  %v1599_v3 = vunpack.c.l.b16 %v1527_v10  ;;  %v1238_v36 = vpack.c.b16 %v1222_v6, %v1221_v54  ;;  %v5896_v10 = vld [vmem:[%s4619_s14 + $0x28] sm:$0xff]  ;;  %v4517_v6 = vld [vmem:[%s4619_s14 + $0x10] sm:$0xff] }
 0x142   : > { %v1728_v5 = vpop.f32.mrf.mxu3  ;;  %v1008_v4 = vadd.f32 %v1007_v37, %v5341_v31  ;;  %v2222_v31 = vmax.f32 %v4941_v19, %v5869_v14  ;;  %v1994_v11 = vpack.c.b16 %v1978_v61, %v1977_v12  ;;  %v3011_v62 = vpack.c.bf16 %v4517_v6, %v4517_v6  ;;  %v5937_v6 = vld [vmem:[%s4737_s30 + $0x48] sm:$0xff] }
 0x143   : > { %v1790_v38 = vadd.f32 %v1728_v5, %v1412_v17  ;;  %v1616_v29 = vpack.c.b16 %v1600_v60, %v1599_v3  ;;  %v5881_v17 = vld [vmem:[%s4737_s30 + $0x30] sm:$0xff]  ;;  %v2603_v5 = vmax.f32 %v2223_v50, %v5884_v32  ;;  %v4518_v3 = vld [vmem:[%s4619_s14 + $0x18] sm:$0xff] }
 0x144   : > { %v2602_v46 = vmax.f32 %v2222_v31, %v5881_v17  ;;  %v3012_v60 = vpack.c.bf16 %v4518_v3, %v4518_v3  ;;  %v3083_v50 = vunpack.c.l.b16 %v3011_v62  ;;  %v5940_v62 = vld [vmem:[%s4737_s30 + $0x50] sm:$0xff]  ;;  %v2255_v3 = vpack.c.bf16 %v5872_v21, %v5872_v21 }
 0x145   : > { %v5861_v42 = vadd.f32 %v2106_v23, %v1790_v38  ;;  %v2108_v47 = vpop.f32.mrf.mxu0  ;;  %v5893_v38 = vld [vmem:[%s4619_s14 + $0x20] sm:$0xff] }
 0x146   : > { %v2981_v28 = vmax.f32 %v2602_v46, %v5893_v38  ;;  %v5924_v46 = vld [vmem:[%s4807_s21 + $0x39] sm:$0xff] }
 0x147   : > { %v1352_v8 = vpop.f32.mrf.mxu2 }
 0x148   : > { %v1413_v43 = vadd.f32 %v1352_v8, %v1008_v4  ;;  %v5906_v4 = vld [vmem:[%s4737_s30 + $0x39] sm:$0xff]  ;;  %v3358_v8 = vmax.f32 %v2981_v28, %v5903_v59 }
 0x149   : > { %v1010_v51 = vpop.f32.mrf.mxu1 }
 0x14a   : > { %v1730_v1 = vpop.f32.mrf.mxu3  ;;  %v1011_v19 = vadd.f32 %v1010_v51, %v5382_v35  ;;  %v2982_v35 = vmax.f32 %v2603_v5, %v5896_v10  ;;  %3771 = vst.msk [vmem:[%s4895_s17 + $0x10] sm:$0xff] %vm676_vm0, %v3358_v8  ;;  %v4520_v51 = vld [vmem:[%s4737_s30 + $0x21] sm:$0xff]  ;;  %v5958_v8 = vld [vmem:[%s4619_s14 + $0x38] sm:$0xff] }
 0x14b   : > { %v1791_v23 = vadd.f32 %v1730_v1, %v1413_v43  ;;  %v3389_v12 = vpack.c.bf16 %v4520_v51, %v4520_v51 }
 0x14c   : > { %4105 = vmatmul.msk.bf16.gmra.mxu1 %vm676_vm0, %v893_v15  ;;  %4137 = vmatmul.msk.bf16.gmra.mxu2 %vm676_vm0, %v1238_v36  ;;  %v3359_v43 = vmax.f32 %v2982_v35, %v5906_v4  ;;  %v4519_v36 = vld [vmem:[%s4737_s30 + $0x19] sm:$0xff] }
 0x14d   : > { %v5886_v52 = vadd.f32 %v2108_v47, %v1791_v23  ;;  %v2111_v30 = vpop.f32.mrf.mxu0  ;;  %v3388_v1 = vpack.c.bf16 %v4519_v36, %v4519_v36  ;;  %v3084_v23 = vunpack.c.l.b16 %v3012_v60  ;;  %v2634_v60 = vpack.c.bf16 %v5881_v17, %v5881_v17 }
 0x14e   : > { %3772 = vst.msk [vmem:[%s4895_s17 + $0x18] sm:$0xff] %vm676_vm0, %v3359_v43  ;;  %v2635_v36 = vpack.c.bf16 %v5884_v32, %v5884_v32  ;;  %v3013_v17 = vpack.c.bf16 %v5893_v38, %v5893_v38  ;;  %v3014_v32 = vpack.c.bf16 %v5896_v10, %v5896_v10  ;;  %v3391_v10 = vpack.c.bf16 %v5906_v4, %v5906_v4 }
 0x14f   : > { %4169 = vmatmul.msk.bf16.gmra.mxu3 %vm676_vm0, %v1616_v29  ;;  %v1355_v37 = vpop.f32.mrf.mxu2  ;;  %4201 = vmatmul.msk.bf16.gmra.mxu0 %vm676_vm0, %v1994_v11 }
 0x150   : > { %v1414_v40 = vadd.f32 %v1355_v37, %v1011_v19  ;;  %v5921_v19 = vld [vmem:[%s4807_s21 + $0x31] sm:$0xff]  ;;  %v3460_v37 = vunpack.c.l.b16 %v3388_v1 }
 0x151   : > { %v1012_v54 = vpop.f32.mrf.mxu1  ;;  %v2224_v28 = vmax.f32 %v4988_v44, %v5921_v19 }
 0x152   : > { %v1733_v33 = vpop.f32.mrf.mxu3  ;;  %v1013_v61 = vadd.f32 %v1012_v54, %v5424_v56  ;;  %v2225_v56 = vmax.f32 %v4990_v45, %v5924_v46 }
 0x153   : > { %v1792_v47 = vadd.f32 %v1733_v33, %v1414_v40  ;;  %v3461_v40 = vunpack.c.l.b16 %v3389_v12  ;;  %v3115_v33 = vpack.c.b16 %v3084_v23, %v3083_v50  ;;  %v2604_v26 = vmax.f32 %v2224_v28, %v5937_v6  ;;  %v5968_v12 = vld [vmem:[%s4737_s30 + $0x49] sm:$0xff] }
 0x154   : > { %v2605_v16 = vmax.f32 %v2225_v56, %v5940_v62  ;;  %v3085_v56 = vunpack.c.l.b16 %v3013_v17 }
 0x155   : > { %v5913_v15 = vadd.f32 %v2111_v30, %v1792_v47  ;;  %v2113_v31 = vpop.f32.mrf.mxu0  ;;  %v3492_v54 = vpack.c.b16 %v3461_v40, %v3460_v37  ;;  %v3390_v37 = vpack.c.bf16 %v5903_v59, %v5903_v59 }
 0x156   : > { %v2984_v51 = vmax.f32 %v2605_v16, %v5958_v8  ;;  %v5992_v16 = vld [vmem:[%s4807_s21 + $0x51] sm:$0xff] }
 0x157   : > { %v1357_v29 = vpop.f32.mrf.mxu2  ;;  %v3462_v4 = vunpack.c.l.b16 %v3390_v37 }
 0x158   : > { %v1415_v11 = vadd.f32 %v1357_v29, %v1013_v61  ;;  %v5971_v61 = vld [vmem:[%s4737_s30 + $0x51] sm:$0xff] }
 0x159   : > { %v1015_v5 = vpop.f32.mrf.mxu1  ;;  %v3361_v23 = vmax.f32 %v2984_v51, %v5971_v61  ;;  %v6004_v51 = vld [vmem:[%s4737_s30 + $0x68] sm:$0xff] }
 0x15a   : > { %v1735_v30 = vpop.f32.mrf.mxu3  ;;  %v1016_v45 = vadd.f32 %v1015_v5, %v5161_v22  ;;  %v5955_v22 = vld [vmem:[%s4619_s14 + $0x30] sm:$0xff]  ;;  %v2707_v5 = vunpack.c.l.b16 %v2635_v36 }
 0x15b   : > { %v1793_v35 = vadd.f32 %v1735_v30, %v1415_v11  ;;  %v2983_v1 = vmax.f32 %v2604_v26, %v5955_v22  ;;  %v2327_v11 = vunpack.c.l.b16 %v2255_v3  ;;  %v2706_v30 = vunpack.c.l.b16 %v2634_v60  ;;  %3774 = vst.msk [vmem:[%s4895_s17 + $0x28] sm:$0xff] %vm676_vm0, %v3361_v23  ;;  %v5989_v26 = vld [vmem:[%s4807_s21 + $0x49] sm:$0xff] }
 0x15c   : > { %4218 = vmatmul.msk.bf16.vlgmr.msra.gmra.mxu1 %vm676_vm0, %v2356_v39  ;;  %4282 = vmatmul.msk.bf16.vlgmr.msra.gmra.mxu2 %vm676_vm0, %v5011_v58  ;;  %v2254_v58 = vpack.c.bf16 %v5869_v14, %v5869_v14  ;;  %v2227_v3 = vmax.f32 %v5051_v41, %v5992_v16  ;;  %v2636_v23 = vpack.c.bf16 %v5937_v6, %v5937_v6 }
 0x15d   : > { %v5942_v44 = vadd.f32 %v2113_v31, %v1793_v35  ;;  %v2116_v47 = vpop.f32.mrf.mxu0  ;;  %v3360_v50 = vmax.f32 %v2983_v1, %v5968_v12  ;;  %v3086_v35 = vunpack.c.l.b16 %v3014_v32  ;;  %v6001_v1 = vld [vmem:[%s4737_s30 + $0x60] sm:$0xff]  ;;  %v2256_v32 = vpack.c.bf16 %v5921_v19, %v5921_v19 }
 0x15e   : > { %v2326_v29 = vunpack.c.l.b16 %v2254_v58  ;;  %v3463_v58 = vunpack.c.l.b16 %v3391_v10  ;;  %v2607_v17 = vmax.f32 %v2227_v3, %v6004_v51  ;;  %v3015_v6 = vpack.c.bf16 %v5955_v22, %v5955_v22  ;;  %v6032_v10 = vld [vmem:[%s4737_s30 + $0x61] sm:$0xff] }
 0x15f   : > { %4346 = vmatmul.msk.bf16.vlgmr.msra.gmra.mxu3 %vm676_vm0, %v3115_v33  ;;  %v1360_v39 = vpop.f32.mrf.mxu2  ;;  %4410 = vmatmul.msk.bf16.vlgmr.msra.gmra.mxu0 %vm676_vm0, %v3492_v54  ;;  %3773 = vst.msk [vmem:[%s4895_s17 + $0x20] sm:$0xff] %vm676_vm0, %v3360_v50  ;;  %v2257_v50 = vpack.c.bf16 %v5924_v46, %v5924_v46 }
 0x160   : > { %v1416_v43 = vadd.f32 %v1360_v39, %v1016_v45  ;;  %v2357_v45 = vpack.c.b16 %v2327_v11, %v2326_v29  ;;  %v3493_v36 = vpack.c.b16 %v3463_v58, %v3462_v4  ;;  %v6022_v29 = vld [vmem:[%s4619_s14 + $0x48] sm:$0xff]  ;;  %v3087_v58 = vunpack.c.l.b16 %v3015_v6 }
 0x161   : > { %v1017_v21 = vpop.f32.mrf.mxu1  ;;  %v2986_v37 = vmax.f32 %v2607_v17, %v6022_v29 }
 0x162   : > { %v1738_v14 = vpop.f32.mrf.mxu3  ;;  %v1018_v40 = vadd.f32 %v1017_v21, %v5202_v48  ;;  %v2226_v48 = vmax.f32 %v5048_v34, %v5989_v26 }
 0x163   : > { %v1794_v31 = vadd.f32 %v1738_v14, %v1416_v43  ;;  %v3116_v43 = vpack.c.b16 %v3086_v35, %v3085_v56 }
 0x164   : > { %v2606_v41 = vmax.f32 %v2226_v48, %v6001_v1 }
 0x165   : > { %v5979_v38 = vadd.f32 %v2116_v47, %v1794_v31  ;;  %v2118_v28 = vpop.f32.mrf.mxu0  ;;  %v2737_v47 = vpack.c.b16 %v2707_v5, %v2706_v30  ;;  %v2637_v30 = vpack.c.bf16 %v5940_v62, %v5940_v62  ;;  %v3016_v62 = vpack.c.bf16 %v5958_v8, %v5958_v8 }
 0x166   : > { %v3393_v8 = vpack.c.bf16 %v5971_v61, %v5971_v61 }
 0x167   : > { %v1362_v33 = vpop.f32.mrf.mxu2  ;;  %v3088_v48 = vunpack.c.l.b16 %v3016_v62  ;;  %v2259_v62 = vpack.c.bf16 %v5992_v16, %v5992_v16 }
 0x168   : > { %v1417_v54 = vadd.f32 %v1362_v33, %v1018_v40  ;;  %v6035_v40 = vld [vmem:[%s4737_s30 + $0x69] sm:$0xff]  ;;  %v2328_v33 = vunpack.c.l.b16 %v2256_v32  ;;  %v3465_v17 = vunpack.c.l.b16 %v3393_v8  ;;  %v6096_v8 = vld [vmem:[%s4737_s30 + $0x79] sm:$0xff] }
 0x169   : > { %v1020_v39 = vpop.f32.mrf.mxu1  ;;  %v3363_v35 = vmax.f32 %v2986_v37, %v6035_v40  ;;  %v6834_v37 = vld [vmem:[#allocation12_spill] sm:$0xff] }
 0x16a   : > { %v1740_v59 = vpop.f32.mrf.mxu3  ;;  %v1021_v34 = vadd.f32 %v1020_v39, %v5223_v13  ;;  %v6019_v13 = vld [vmem:[%s4619_s14 + $0x40] sm:$0xff] }
 0x16b   : > { %v1795_v60 = vadd.f32 %v1740_v59, %v1417_v54  ;;  %v2985_v5 = vmax.f32 %v2606_v41, %v6019_v13  ;;  %v2329_v54 = vunpack.c.l.b16 %v2257_v50  ;;  %v3392_v59 = vpack.c.bf16 %v5968_v12, %v5968_v12  ;;  %3776 = vst.msk [vmem:[%s4895_s17 + $0x38] sm:$0xff] %vm676_vm0, %v3363_v35  ;;  %v6083_v35 = vld [vmem:[%s4619_s14 + $0x50] sm:$0xff] }
 0x16c   : > { %4219 = vmatmul.msk.bf16.gmra.mxu1 %vm676_vm0, %v2357_v45  ;;  %4283 = vmatmul.msk.bf16.gmra.mxu2 %vm676_vm0, %v2737_v47  ;;  %v2708_v45 = vunpack.c.l.b16 %v2636_v23  ;;  %v2709_v47 = vunpack.c.l.b16 %v2637_v30  ;;  %v3117_v50 = vpack.c.b16 %v3088_v48, %v3087_v58  ;;  %v6068_v30 = vld [vmem:[%s4737_s30 + $0x80] sm:$0xff] }
 0x16d   : > { %v6006_v14 = vadd.f32 %v2118_v28, %v1795_v60  ;;  %v2121_v21 = vpop.f32.mrf.mxu0  ;;  %v3362_v56 = vmax.f32 %v2985_v5, %v6032_v10  ;;  %v3464_v61 = vunpack.c.l.b16 %v3392_v59 }
 0x16f   : > { %4347 = vmatmul.msk.bf16.gmra.mxu3 %vm676_vm0, %v3116_v43  ;;  %v1365_v31 = vpop.f32.mrf.mxu2  ;;  %4411 = vmatmul.msk.bf16.gmra.mxu0 %vm676_vm0, %v3493_v36  ;;  %3775 = vst.msk [vmem:[%s4895_s17 + $0x30] sm:$0xff] %vm676_vm0, %v3362_v56  ;;  %v2358_v43 = vpack.c.b16 %v2329_v54, %v2328_v33  ;;  %v2738_v36 = vpack.c.b16 %v2709_v47, %v2708_v45  ;;  %v6086_v33 = vld [vmem:[%s4619_s14 + $0x58] sm:$0xff] }
 0x170   : > { %v1418_v11 = vadd.f32 %v1365_v31, %v1021_v34  ;;  %v6053_v34 = vld [vmem:[%s4807_s21 + $0x61] sm:$0xff]  ;;  %v3494_v23 = vpack.c.b16 %v3465_v17, %v3464_v61  ;;  %v2638_v56 = vpack.c.bf16 %v6001_v1, %v6001_v1  ;;  %v2639_v45 = vpack.c.bf16 %v6004_v51, %v6004_v51 }
 0x171   : > { %v1022_v46 = vpop.f32.mrf.mxu1  ;;  %v3017_v1 = vpack.c.bf16 %v6019_v13, %v6019_v13  ;;  %v3018_v51 = vpack.c.bf16 %v6022_v29, %v6022_v29  ;;  %v3395_v29 = vpack.c.bf16 %v6035_v40, %v6035_v40 }
 0x172   : > { %v1743_v19 = vpop.f32.mrf.mxu3  ;;  %v1023_v39 = vadd.f32 %v1022_v46, %v5286_v55  ;;  %v2228_v55 = vmax.f32 %v5101_v7, %v6053_v34 }
 0x173   : > { %v1796_v28 = vadd.f32 %v1743_v19, %v1418_v11  ;;  %v6065_v11 = vld [vmem:[%s4737_s30 + $0x78] sm:$0xff] }
 0x175   : > { %v6043_v22 = vadd.f32 %v2121_v21, %v1796_v28  ;;  %v2123_v4 = vpop.f32.mrf.mxu0  ;;  %v6056_v21 = vld [vmem:[%s4807_s21 + $0x69] sm:$0xff]  ;;  %v2258_v28 = vpack.c.bf16 %v5989_v26, %v5989_v26 }
 0x176   : > { %v2229_v31 = vmax.f32 %v5103_v9, %v6056_v21  ;;  %v2608_v9 = vmax.f32 %v2228_v55, %v6065_v11  ;;  %v3089_v55 = vunpack.c.l.b16 %v3017_v1  ;;  %v6838_v1 = vld [vmem:[#allocation18_spill] sm:$0xff] }
 0x177   : > { %v1367_v3 = vpop.f32.mrf.mxu2 }
 0x178   : > { %v1419_v60 = vadd.f32 %v1367_v3, %v1023_v39  ;;  %v2609_v46 = vmax.f32 %v2229_v31, %v6068_v30  ;;  %v2987_v47 = vmax.f32 %v2608_v9, %v6083_v35  ;;  %v6099_v39 = vld [vmem:[%s4737_s30 + $0x81] sm:$0xff]  ;;  %v2330_v3 = vunpack.c.l.b16 %v2258_v28 }
 0x179   : > { %v1025_v41 = vpop.f32.mrf.mxu1  ;;  %v3090_v31 = vunpack.c.l.b16 %v3018_v51 }
 0x17a   : > { %v1745_v12 = vpop.f32.mrf.mxu3  ;;  %v1026_v7 = vadd.f32 %v1025_v41, %v6834_v37  ;;  %v2988_v59 = vmax.f32 %v2609_v46, %v6086_v33  ;;  %v3364_v58 = vmax.f32 %v2987_v47, %v6096_v8  ;;  %v6835_v41 = vld [vmem:[#allocation16_spill] sm:$0xff]  ;;  %v3467_v46 = vunpack.c.l.b16 %v3395_v29  ;;  %v6150_v29 = vld [vmem:[%s4619_s14 + $0x68] sm:$0xff] }
 0x17b   : > { %v1797_v32 = vadd.f32 %v1745_v12, %v1419_v60  ;;  %v2331_v60 = vunpack.c.l.b16 %v2259_v62  ;;  %v3394_v12 = vpack.c.bf16 %v6032_v10, %v6032_v10  ;;  %v6837_v62 = vld [vmem:[#allocation3_spill] sm:$0xff] }
 0x17c   : > { %4220 = vmatmul.msk.bf16.gmra.mxu1 %vm676_vm0, %v2358_v43  ;;  %4284 = vmatmul.msk.bf16.gmra.mxu2 %vm676_vm0, %v2738_v36  ;;  %v3365_v48 = vmax.f32 %v2988_v59, %v6099_v39  ;;  %v2710_v43 = vunpack.c.l.b16 %v2638_v56  ;;  %v2711_v36 = vunpack.c.l.b16 %v2639_v45  ;;  %3777 = vst.msk [vmem:[%s4895_s17 + $0x40] sm:$0xff] %vm676_vm0, %v3364_v58  ;;  %v3118_v45 = vpack.c.b16 %v3090_v31, %v3089_v55  ;;  %v6129_v59 = vld [vmem:[%s4737_s30 + $0x90] sm:$0xff] }
 0x17d   : > { %v6070_v5 = vadd.f32 %v2123_v4, %v1797_v32  ;;  %v2126_v19 = vpop.f32.mrf.mxu0  ;;  %v3466_v40 = vunpack.c.l.b16 %v3394_v12  ;;  %v6147_v12 = vld [vmem:[%s4619_s14 + $0x60] sm:$0xff]  ;;  %v6160_v31 = vld [vmem:[%s4737_s30 + $0x91] sm:$0xff] }
 0x17e   : > { %3778 = vst.msk [vmem:[%s4895_s17 + $0x48] sm:$0xff] %vm676_vm0, %v3365_v48  ;;  %v2739_v37 = vpack.c.b16 %v2711_v36, %v2710_v43  ;;  %v2261_v43 = vpack.c.bf16 %v6056_v21, %v6056_v21  ;;  %v2640_v36 = vpack.c.bf16 %v6065_v11, %v6065_v11  ;;  %v3019_v11 = vpack.c.bf16 %v6083_v35, %v6083_v35 }
 0x17f   : > { %4348 = vmatmul.msk.bf16.gmra.mxu3 %vm676_vm0, %v3117_v50  ;;  %v1370_v6 = vpop.f32.mrf.mxu2  ;;  %4412 = vmatmul.msk.bf16.gmra.mxu0 %vm676_vm0, %v3494_v23  ;;  %v2359_v23 = vpack.c.b16 %v2331_v60, %v2330_v3  ;;  %v3495_v47 = vpack.c.b16 %v3467_v46, %v3466_v40  ;;  %v2260_v60 = vpack.c.bf16 %v6053_v34, %v6053_v34 }
 0x180   : > { %v1420_v54 = vadd.f32 %v1370_v6, %v1026_v7  ;;  %v6117_v7 = vld [vmem:[%s4807_s21 + $0x79] sm:$0xff]  ;;  %v2712_v40 = vunpack.c.l.b16 %v2640_v36 }
 0x181   : > { %v1027_v16 = vpop.f32.mrf.mxu1  ;;  %v6836_v6 = vld [vmem:[#allocation2_spill] sm:$0xff] }
 0x182   : > { %v1748_v26 = vpop.f32.mrf.mxu3  ;;  %v1028_v61 = vadd.f32 %v1027_v16, %v6835_v41  ;;  %v2230_v28 = vmax.f32 %v6836_v6, %v6117_v7  ;;  %v3396_v6 = vpack.c.bf16 %v6096_v8, %v6096_v8 }
 0x183   : > { %v1798_v4 = vadd.f32 %v1748_v26, %v1420_v54  ;;  %v6132_v26 = vld [vmem:[%s4737_s30 + $0x98] sm:$0xff] }
 0x184   : > { %v2610_v58 = vmax.f32 %v2230_v28, %v6129_v59  ;;  %v6839_v28 = vld [vmem:[#allocation22_spill] sm:$0xff] }
 0x185   : > { %v6107_v13 = vadd.f32 %v2126_v19, %v1798_v4  ;;  %v2128_v17 = vpop.f32.mrf.mxu0  ;;  %v6120_v19 = vld [vmem:[%s4807_s21 + $0x81] sm:$0xff] }
 0x186   : > { %v2231_v56 = vmax.f32 %v6837_v62, %v6120_v19 }
 0x187   : > { %v1372_v32 = vpop.f32.mrf.mxu2 }
 0x188   : > { %v1421_v50 = vadd.f32 %v1372_v32, %v1028_v61  ;;  %v2611_v48 = vmax.f32 %v2231_v56, %v6132_v26  ;;  %v2641_v61 = vpack.c.bf16 %v6068_v30, %v6068_v30  ;;  %v6163_v32 = vld [vmem:[%s4737_s30 + $0x99] sm:$0xff]  ;;  %v3020_v30 = vpack.c.bf16 %v6086_v33, %v6086_v33 }
 0x189   : > { %v1030_v9 = vpop.f32.mrf.mxu1  ;;  %v3397_v33 = vpack.c.bf16 %v6099_v39, %v6099_v39  ;;  %v3468_v39 = vunpack.c.l.b16 %v3396_v6  ;;  %v2263_v6 = vpack.c.bf16 %v6120_v19, %v6120_v19 }
 0x18a   : > { %v1750_v10 = vpop.f32.mrf.mxu3  ;;  %v1031_v4 = vadd.f32 %v1030_v9, %v6838_v1  ;;  %v2990_v55 = vmax.f32 %v2611_v48, %v6150_v29  ;;  %v2333_v9 = vunpack.c.l.b16 %v2261_v43  ;;  %v2713_v46 = vunpack.c.l.b16 %v2641_v61  ;;  %v6184_v48 = vld [vmem:[%s4807_s21 + $0x99] sm:$0xff] }
 0x18b   : > { %v1799_v54 = vadd.f32 %v1750_v10, %v1421_v50  ;;  %v2332_v10 = vunpack.c.l.b16 %v2260_v60  ;;  %v3469_v60 = vunpack.c.l.b16 %v3397_v33  ;;  %v6840_v43 = vld [vmem:[#allocation5_spill] sm:$0xff]  ;;  %v2642_v33 = vpack.c.bf16 %v6129_v59, %v6129_v59 }
 0x18c   : > { %4221 = vmatmul.msk.bf16.gmra.mxu1 %vm676_vm0, %v2359_v23  ;;  %4285 = vmatmul.msk.bf16.gmra.mxu2 %vm676_vm0, %v2739_v37  ;;  %v3367_v37 = vmax.f32 %v2990_v55, %v6163_v32  ;;  %v3021_v59 = vpack.c.bf16 %v6147_v12, %v6147_v12 }
 0x18d   : > { %v6134_v16 = vadd.f32 %v2128_v17, %v1799_v54  ;;  %v2131_v51 = vpop.f32.mrf.mxu0  ;;  %v2989_v17 = vmax.f32 %v2610_v58, %v6147_v12  ;;  %v3091_v54 = vunpack.c.l.b16 %v3019_v11  ;;  %v6181_v58 = vld [vmem:[%s4807_s21 + $0x91] sm:$0xff] }
 0x18e   : > { %3780 = vst.msk [vmem:[%s4895_s17 + $0x58] sm:$0xff] %vm676_vm0, %v3367_v37  ;;  %v2232_v36 = vmax.f32 %v6840_v43, %v6181_v58  ;;  %v6196_v11 = vld [vmem:[%s4737_s30 + $0xb0] sm:$0xff]  ;;  %v2714_v43 = vunpack.c.l.b16 %v2642_v33 }
 0x18f   : > { %4349 = vmatmul.msk.bf16.gmra.mxu3 %vm676_vm0, %v3118_v45  ;;  %v1375_v3 = vpop.f32.mrf.mxu2  ;;  %4413 = vmatmul.msk.bf16.gmra.mxu0 %vm676_vm0, %v3495_v47  ;;  %v3366_v23 = vmax.f32 %v2989_v17, %v6160_v31  ;;  %v3092_v45 = vunpack.c.l.b16 %v3020_v30  ;;  %v6842_v30 = vld [vmem:[#allocation4_spill] sm:$0xff] }
 0x190   : > { %v1422_v41 = vadd.f32 %v1375_v3, %v1031_v4  ;;  %v2360_v4 = vpack.c.b16 %v2333_v9, %v2332_v10 }
 0x191   : > { %v1032_v21 = vpop.f32.mrf.mxu1  ;;  %3779 = vst.msk [vmem:[%s4895_s17 + $0x50] sm:$0xff] %vm676_vm0, %v3366_v23  ;;  %v3119_v55 = vpack.c.b16 %v3092_v45, %v3091_v54  ;;  %v2643_v54 = vpack.c.bf16 %v6132_v26, %v6132_v26  ;;  %v3022_v26 = vpack.c.bf16 %v6150_v29, %v6150_v29  ;;  %v3399_v29 = vpack.c.bf16 %v6163_v32, %v6163_v32 }
 0x192   : > { %v1753_v34 = vpop.f32.mrf.mxu3  ;;  %v1033_v62 = vadd.f32 %v1032_v21, %v6839_v28  ;;  %v6193_v21 = vld [vmem:[%s4737_s30 + $0xa8] sm:$0xff]  ;;  %v6211_v28 = vld [vmem:[%s4619_s14 + $0x70] sm:$0xff] }
 0x193   : > { %v1800_v50 = vadd.f32 %v1753_v34, %v1422_v41  ;;  %v6841_v41 = vld [vmem:[#allocation6_spill] sm:$0xff]  ;;  %v3496_v34 = vpack.c.b16 %v3469_v60, %v3468_v39  ;;  %v2612_v10 = vmax.f32 %v2232_v36, %v6193_v21  ;;  %v2335_v60 = vunpack.c.l.b16 %v2263_v6 }
 0x194   : > { %v2233_v61 = vmax.f32 %v6841_v41, %v6184_v48  ;;  %v2715_v36 = vunpack.c.l.b16 %v2643_v54  ;;  %v3398_v41 = vpack.c.bf16 %v6160_v31, %v6160_v31  ;;  %v3471_v33 = vunpack.c.l.b16 %v3399_v29 }
 0x195   : > { %v6171_v35 = vadd.f32 %v2131_v51, %v1800_v50  ;;  %v2133_v56 = vpop.f32.mrf.mxu0  ;;  %v2740_v51 = vpack.c.b16 %v2713_v46, %v2712_v40  ;;  %v2262_v46 = vpack.c.bf16 %v6117_v7, %v6117_v7  ;;  %v2991_v45 = vmax.f32 %v2612_v10, %v6211_v28 }
 0x196   : > { %v2613_v9 = vmax.f32 %v2233_v61, %v6196_v11  ;;  %v6843_v61 = vld [vmem:[#allocation7_spill] sm:$0xff]  ;;  %v3470_v32 = vunpack.c.l.b16 %v3398_v41  ;;  %v2264_v29 = vpack.c.bf16 %v6181_v58, %v6181_v58 }
 0x197   : > { %v1377_v47 = vpop.f32.mrf.mxu2  ;;  %v2334_v39 = vunpack.c.l.b16 %v2262_v46  ;;  %v6248_v46 = vld [vmem:[%s4807_s21 + $0xb1] sm:$0xff] }
 0x198   : > { %v1423_v1 = vadd.f32 %v1377_v47, %v1033_v62  ;;  %v6214_v62 = vld [vmem:[%s4619_s14 + $0x78] sm:$0xff] }
 0x199   : > { %v1035_v3 = vpop.f32.mrf.mxu1  ;;  %v2992_v47 = vmax.f32 %v2613_v9, %v6214_v62  ;;  %v2361_v9 = vpack.c.b16 %v2335_v60, %v2334_v39 }
 0x19a   : > { %v1755_v8 = vpop.f32.mrf.mxu3  ;;  %v1036_v23 = vadd.f32 %v1035_v3, %v6842_v30  ;;  %v3094_v30 = vunpack.c.l.b16 %v3022_v26  ;;  %v6260_v26 = vld [vmem:[%s4737_s30 + $0xc8] sm:$0xff] }
 0x19b   : > { %v1801_v17 = vadd.f32 %v1755_v8, %v1423_v1  ;;  %v6224_v1 = vld [vmem:[%s4737_s30 + $0xa9] sm:$0xff] }
 0x19c   : > { %4222 = vmatmul.msk.bf16.gmra.mxu1 %vm676_vm0, %v2360_v4  ;;  %4286 = vmatmul.msk.bf16.gmra.mxu2 %vm676_vm0, %v2740_v51  ;;  %v6227_v4 = vld [vmem:[%s4737_s30 + $0xb1] sm:$0xff]  ;;  %v3368_v8 = vmax.f32 %v2991_v45, %v6224_v1  ;;  %v6845_v45 = vld [vmem:[#allocation10_spill] sm:$0xff] }
 0x19d   : > { %v6198_v50 = vadd.f32 %v2133_v56, %v1801_v17  ;;  %v2136_v37 = vpop.f32.mrf.mxu0  ;;  %v3369_v3 = vmax.f32 %v2992_v47, %v6227_v4  ;;  %v2235_v47 = vmax.f32 %v6845_v45, %v6248_v46 }
 0x19e   : > { %3781 = vst.msk [vmem:[%s4895_s17 + $0x60] sm:$0xff] %vm676_vm0, %v3368_v8 }
 0x19f   : > { %4350 = vmatmul.msk.bf16.gmra.mxu3 %vm676_vm0, %v3119_v55  ;;  %v1380_v40 = vpop.f32.mrf.mxu2  ;;  %4414 = vmatmul.msk.bf16.gmra.mxu0 %vm676_vm0, %v3496_v34  ;;  %3782 = vst.msk [vmem:[%s4895_s17 + $0x68] sm:$0xff] %vm676_vm0, %v3369_v3  ;;  %v3093_v34 = vunpack.c.l.b16 %v3021_v59  ;;  %v3497_v59 = vpack.c.b16 %v3471_v33, %v3470_v32  ;;  %v6846_v3 = vld [vmem:[#allocation8_spill] sm:$0xff] }
 0x1a0   : > { %v1424_v56 = vadd.f32 %v1380_v40, %v1036_v23  ;;  %v6245_v40 = vld [vmem:[%s4807_s21 + $0xa9] sm:$0xff] }
 0x1a1   : > { %v1037_v19 = vpop.f32.mrf.mxu1 }
 0x1a2   : > { %v1758_v7 = vpop.f32.mrf.mxu3  ;;  %v1038_v17 = vadd.f32 %v1037_v19, %v6843_v61  ;;  %v3120_v19 = vpack.c.b16 %v3094_v30, %v3093_v34  ;;  %v2265_v61 = vpack.c.bf16 %v6184_v48, %v6184_v48  ;;  %v6278_v34 = vld [vmem:[%s4619_s14 + $0x88] sm:$0xff] }
 0x1a3   : > { %v1802_v51 = vadd.f32 %v1758_v7, %v1424_v56  ;;  %v6844_v56 = vld [vmem:[#allocation9_spill] sm:$0xff] }
 0x1a4   : > { %v2234_v54 = vmax.f32 %v6844_v56, %v6245_v40  ;;  %v2336_v56 = vunpack.c.l.b16 %v2264_v29 }
 0x1a5   : > { %v6235_v12 = vadd.f32 %v2136_v37, %v1802_v51  ;;  %v2138_v55 = vpop.f32.mrf.mxu0  ;;  %v2741_v37 = vpack.c.b16 %v2715_v36, %v2714_v43  ;;  %v6257_v51 = vld [vmem:[%s4737_s30 + $0xc0] sm:$0xff]  ;;  %v2615_v36 = vmax.f32 %v2235_v47, %v6260_v26 }
 0x1a6   : > { %v2614_v43 = vmax.f32 %v2234_v54, %v6257_v51  ;;  %v2337_v54 = vunpack.c.l.b16 %v2265_v61 }
 0x1a7   : > { %v1382_v23 = vpop.f32.mrf.mxu2 }
 0x1a8   : > { %v1425_v10 = vadd.f32 %v1382_v23, %v1038_v17  ;;  %v2644_v17 = vpack.c.bf16 %v6193_v21, %v6193_v21  ;;  %v2645_v23 = vpack.c.bf16 %v6196_v11, %v6196_v11  ;;  %v3023_v21 = vpack.c.bf16 %v6211_v28, %v6211_v28 }
 0x1a9   : > { %v1040_v6 = vpop.f32.mrf.mxu1  ;;  %v3024_v11 = vpack.c.bf16 %v6214_v62, %v6214_v62  ;;  %v3400_v28 = vpack.c.bf16 %v6224_v1, %v6224_v1  ;;  %v6847_v62 = vld [vmem:[#allocation11_spill] sm:$0xff]  ;;  %v2362_v29 = vpack.c.b16 %v2337_v54, %v2336_v56  ;;  %v6850_v56 = vld [vmem:[#allocation14_spill] sm:$0xff] }
 0x1aa   : > { %v1760_v31 = vpop.f32.mrf.mxu3  ;;  %v1041_v39 = vadd.f32 %v1040_v6, %v6846_v3  ;;  %v2716_v45 = vunpack.c.l.b16 %v2644_v17  ;;  %v2717_v47 = vunpack.c.l.b16 %v2645_v23 }
 0x1ab   : > { %v1803_v7 = vadd.f32 %v1760_v31, %v1425_v10  ;;  %v6291_v31 = vld [vmem:[%s4737_s30 + $0xc9] sm:$0xff] }
 0x1ac   : > { %4223 = vmatmul.msk.bf16.gmra.mxu1 %vm676_vm0, %v2361_v9  ;;  %4287 = vmatmul.msk.bf16.gmra.mxu2 %vm676_vm0, %v2741_v37  ;;  %v2994_v9 = vmax.f32 %v2615_v36, %v6278_v34  ;;  %v6288_v37 = vld [vmem:[%s4737_s30 + $0xc1] sm:$0xff] }
 0x1ad   : > { %v6262_v8 = vadd.f32 %v2138_v55, %v1803_v7  ;;  %v2141_v60 = vpop.f32.mrf.mxu0  ;;  %v6275_v55 = vld [vmem:[%s4619_s14 + $0x80] sm:$0xff] }
 0x1ae   : > { %v2993_v10 = vmax.f32 %v2614_v43, %v6275_v55  ;;  %v3371_v33 = vmax.f32 %v2994_v9, %v6291_v31  ;;  %v3096_v43 = vunpack.c.l.b16 %v3024_v11  ;;  %v6311_v9 = vld [vmem:[%s4807_s21 + $0xc1] sm:$0xff] }
 0x1af   : > { %4351 = vmatmul.msk.bf16.gmra.mxu3 %vm676_vm0, %v3120_v19  ;;  %v1385_v41 = vpop.f32.mrf.mxu2  ;;  %4415 = vmatmul.msk.bf16.gmra.mxu0 %vm676_vm0, %v3497_v59  ;;  %v3401_v19 = vpack.c.bf16 %v6227_v4, %v6227_v4 }
 0x1b0   : > { %v1426_v30 = vadd.f32 %v1385_v41, %v1041_v39  ;;  %v3370_v32 = vmax.f32 %v2993_v10, %v6288_v37  ;;  %3784 = vst.msk [vmem:[%s4895_s17 + $0x78] sm:$0xff] %vm676_vm0, %v3371_v33  ;;  %v3095_v39 = vunpack.c.l.b16 %v3023_v21  ;;  %v6848_v21 = vld [vmem:[#allocation15_spill] sm:$0xff] }
 0x1b1   : > { %v1042_v48 = vpop.f32.mrf.mxu1  ;;  %v3473_v1 = vunpack.c.l.b16 %v3401_v19  ;;  %v2646_v19 = vpack.c.bf16 %v6257_v51, %v6257_v51  ;;  %v3025_v51 = vpack.c.bf16 %v6275_v55, %v6275_v55  ;;  %v6357_v55 = vld [vmem:[%s4737_s30 + $0xe1] sm:$0xff] }
 0x1b2   : > { %v1763_v58 = vpop.f32.mrf.mxu3  ;;  %3783 = vst.msk [vmem:[%s4895_s17 + $0x70] sm:$0xff] %vm676_vm0, %v3370_v32  ;;  %v1043_v59 = vadd.f32 %v1042_v48, %v6847_v62  ;;  %v3121_v10 = vpack.c.b16 %v3096_v43, %v3095_v39  ;;  %v6849_v32 = vld [vmem:[#allocation13_spill] sm:$0xff]  ;;  %v2647_v39 = vpack.c.bf16 %v6260_v26, %v6260_v26  ;;  %v3026_v26 = vpack.c.bf16 %v6278_v34, %v6278_v34 }
 0x1b3   : > { %v1804_v6 = vadd.f32 %v1763_v58, %v1426_v30  ;;  %v3472_v30 = vunpack.c.l.b16 %v3400_v28  ;;  %v6314_v58 = vld [vmem:[%s4807_s21 + $0xc9] sm:$0xff]  ;;  %v2236_v33 = vmax.f32 %v6849_v32, %v6311_v9  ;;  %v2267_v28 = vpack.c.bf16 %v6248_v46, %v6248_v46  ;;  %v6331_v62 = vld [vmem:[%s4737_s30 + $0xd8] sm:$0xff] }
 0x1b4   : > { %v2237_v54 = vmax.f32 %v6850_v56, %v6314_v58  ;;  %v3402_v34 = vpack.c.bf16 %v6288_v37, %v6288_v37  ;;  %v6851_v56 = vld [vmem:[#allocation17_spill] sm:$0xff] }
 0x1b5   : > { %v6299_v7 = vadd.f32 %v2141_v60, %v1804_v6  ;;  %v2143_v3 = vpop.f32.mrf.mxu0  ;;  %v2742_v60 = vpack.c.b16 %v2717_v47, %v2716_v45  ;;  %v3498_v4 = vpack.c.b16 %v3473_v1, %v3472_v30  ;;  %v2266_v47 = vpack.c.bf16 %v6245_v40, %v6245_v40 }
 0x1b6   : > { %v2616_v43 = vmax.f32 %v2236_v33, %v6331_v62  ;;  %v2339_v1 = vunpack.c.l.b16 %v2267_v28  ;;  %v3403_v33 = vpack.c.bf16 %v6291_v31, %v6291_v31  ;;  %v3098_v28 = vunpack.c.l.b16 %v3026_v26 }
 0x1b7   : > { %v1387_v36 = vpop.f32.mrf.mxu2  ;;  %v2338_v30 = vunpack.c.l.b16 %v2266_v47  ;;  %v3097_v47 = vunpack.c.l.b16 %v3025_v51  ;;  %v6852_v51 = vld [vmem:[#allocation21_spill] sm:$0xff] }
 0x1b8   : > { %v1427_v41 = vadd.f32 %v1387_v36, %v1043_v59  ;;  %v6334_v59 = vld [vmem:[%s4737_s30 + $0xe0] sm:$0xff]  ;;  %v3475_v37 = vunpack.c.l.b16 %v3403_v33 }
 0x1b9   : > { %v1045_v17 = vpop.f32.mrf.mxu1  ;;  %v2617_v40 = vmax.f32 %v2237_v54, %v6334_v59 }
 0x1ba   : > { %v1765_v61 = vpop.f32.mrf.mxu3  ;;  %v1046_v6 = vadd.f32 %v1045_v17, %v6848_v21 }
 0x1bb   : > { %v1805_v23 = vadd.f32 %v1765_v61, %v1427_v41  ;;  %v6344_v41 = vld [vmem:[%s4619_s14 + $0x90] sm:$0xff] }
 0x1bc   : > { %4224 = vmatmul.msk.bf16.gmra.mxu1 %vm676_vm0, %v2362_v29  ;;  %4288 = vmatmul.msk.bf16.gmra.mxu2 %vm676_vm0, %v2742_v60  ;;  %v6347_v29 = vld [vmem:[%s4619_s14 + $0x98] sm:$0xff]  ;;  %v2995_v61 = vmax.f32 %v2616_v43, %v6344_v41 }
 0x1bd   : > { %v6316_v48 = vadd.f32 %v2143_v3, %v1805_v23  ;;  %v2146_v11 = vpop.f32.mrf.mxu0  ;;  %v2996_v17 = vmax.f32 %v2617_v40, %v6347_v29  ;;  %v2718_v23 = vunpack.c.l.b16 %v2646_v19 }
 0x1bf   : > { %4352 = vmatmul.msk.bf16.gmra.mxu3 %vm676_vm0, %v3121_v10  ;;  %v1390_v45 = vpop.f32.mrf.mxu2  ;;  %4416 = vmatmul.msk.bf16.gmra.mxu0 %vm676_vm0, %v3498_v4  ;;  %v6354_v10 = vld [vmem:[%s4737_s30 + $0xd9] sm:$0xff]  ;;  %v2719_v4 = vunpack.c.l.b16 %v2647_v39  ;;  %v2363_v39 = vpack.c.b16 %v2339_v1, %v2338_v30  ;;  %v2268_v1 = vpack.c.bf16 %v6311_v9, %v6311_v9 }
 0x1c0   : > { %v1428_v3 = vadd.f32 %v1390_v45, %v1046_v6  ;;  %v3372_v21 = vmax.f32 %v2995_v61, %v6354_v10  ;;  %v3373_v6 = vmax.f32 %v2996_v17, %v6357_v55  ;;  %v3122_v61 = vpack.c.b16 %v3098_v28, %v3097_v47  ;;  %v6390_v9 = vld [vmem:[%s4807_s21 + $0xd9] sm:$0xff]  ;;  %v6854_v47 = vld [vmem:[#allocation20_spill] sm:$0xff] }
 0x1c1   : > { %v1047_v36 = vpop.f32.mrf.mxu1 }
 0x1c2   : > { %v1768_v46 = vpop.f32.mrf.mxu3  ;;  %v1048_v54 = vadd.f32 %v1047_v36, %v6851_v56  ;;  %3785 = vst.msk [vmem:[%s4895_s17 + $0x80] sm:$0xff] %vm676_vm0, %v3372_v21  ;;  %v3027_v56 = vpack.c.bf16 %v6344_v41, %v6344_v41  ;;  %v4252_v41 = vld [vmem:[%s4737_s30 + $0xf0] sm:$0xff] }
 0x1c3   : > { %v1806_v60 = vadd.f32 %v1768_v46, %v1428_v3  ;;  %3786 = vst.msk [vmem:[%s4895_s17 + $0x88] sm:$0xff] %vm676_vm0, %v3373_v6  ;;  %v3474_v46 = vunpack.c.l.b16 %v3402_v34  ;;  %v2649_v6 = vpack.c.bf16 %v6334_v59, %v6334_v59 }
 0x1c5   : > { %v6361_v32 = vadd.f32 %v2146_v11, %v1806_v60  ;;  %v2148_v45 = vpop.f32.mrf.mxu0  ;;  %v2743_v11 = vpack.c.b16 %v2719_v4, %v2718_v23  ;;  %v3499_v31 = vpack.c.b16 %v3475_v37, %v3474_v46  ;;  %v2269_v23 = vpack.c.bf16 %v6314_v58, %v6314_v58 }
 0x1c6   : > { %v2648_v4 = vpack.c.bf16 %v6331_v62, %v6331_v62  ;;  %v3028_v62 = vpack.c.bf16 %v6347_v29, %v6347_v29  ;;  %v3099_v29 = vunpack.c.l.b16 %v3027_v56  ;;  %v6416_v56 = vld [vmem:[%s4737_s30 + $0xf9] sm:$0xff] }
 0x1c7   : > { %v1392_v19 = vpop.f32.mrf.mxu2 }
 0x1c8   : > { %v1429_v3 = vadd.f32 %v1392_v19, %v1048_v54  ;;  %v6393_v54 = vld [vmem:[%s4807_s21 + $0xe1] sm:$0xff]  ;;  %v2340_v19 = vunpack.c.l.b16 %v2268_v1 }
 0x1c9   : > { %v1050_v40 = vpop.f32.mrf.mxu1  ;;  %v2239_v28 = vmax.f32 %v6854_v47, %v6393_v54 }
 0x1ca   : > { %v1770_v43 = vpop.f32.mrf.mxu3  ;;  %v1051_v26 = vadd.f32 %v1050_v40, %v6852_v51  ;;  %v4317_v51 = vld [vmem:[%s4619_s14 + $0xa8] sm:$0xff] }
 0x1cb   : > { %v1807_v60 = vadd.f32 %v1770_v43, %v1429_v3  ;;  %v2341_v3 = vunpack.c.l.b16 %v2269_v23  ;;  %v2721_v43 = vunpack.c.l.b16 %v2649_v6  ;;  %v3100_v23 = vunpack.c.l.b16 %v3028_v62 }
 0x1cc   : > { %4225 = vmatmul.msk.bf16.gmra.mxu1 %vm676_vm0, %v2363_v39  ;;  %4289 = vmatmul.msk.bf16.gmra.mxu2 %vm676_vm0, %v2743_v11  ;;  %v2720_v39 = vunpack.c.l.b16 %v2648_v4  ;;  %v4253_v11 = vld [vmem:[%s4737_s30 + $0xf8] sm:$0xff] }
 0x1cd   : > { %v6374_v36 = vadd.f32 %v2148_v45, %v1807_v60  ;;  %v2151_v17 = vpop.f32.mrf.mxu0  ;;  %v6853_v45 = vld [vmem:[#allocation19_spill] sm:$0xff]  ;;  %v2619_v46 = vmax.f32 %v2239_v28, %v4253_v11  ;;  %v3404_v60 = vpack.c.bf16 %v6354_v10, %v6354_v10 }
 0x1ce   : > { %v2238_v59 = vmax.f32 %v6853_v45, %v6390_v9 }
 0x1cf   : > { %4353 = vmatmul.msk.bf16.gmra.mxu3 %vm676_vm0, %v3122_v61  ;;  %v1395_v30 = vpop.f32.mrf.mxu2  ;;  %4417 = vmatmul.msk.bf16.gmra.mxu0 %vm676_vm0, %v3499_v31  ;;  %v3405_v61 = vpack.c.bf16 %v6357_v55, %v6357_v55  ;;  %v4316_v31 = vld [vmem:[%s4619_s14 + $0xa0] sm:$0xff]  ;;  %v3476_v47 = vunpack.c.l.b16 %v3404_v60 }
 0x1d0   : > { %v1430_v21 = vadd.f32 %v1395_v30, %v1051_v26  ;;  %v2618_v40 = vmax.f32 %v2238_v59, %v4252_v41  ;;  %v6855_v26 = vld [vmem:[#allocation23_spill] sm:$0xff] }
 0x1d1   : > { %v1052_v33 = vpop.f32.mrf.mxu1  ;;  %v3477_v62 = vunpack.c.l.b16 %v3405_v61  ;;  %v2271_v61 = vpack.c.bf16 %v6393_v54, %v6393_v54  ;;  %v6858_v54 = vld [vmem:[#allocation24_spill] sm:$0xff] }
 0x1d2   : > { %v1773_v34 = vpop.f32.mrf.mxu3  ;;  %v1053_v30 = vadd.f32 %v1052_v33, %v6855_v26  ;;  %v2997_v4 = vmax.f32 %v2618_v40, %v4316_v31  ;;  %v3123_v40 = vpack.c.b16 %v3100_v23, %v3099_v29  ;;  %v2270_v29 = vpack.c.bf16 %v6390_v9, %v6390_v9  ;;  %v6444_v9 = vld [vmem:[%s6796_s5] ss:$0 sm:$0xff] }
 0x1d3   : > { %v1808_v58 = vadd.f32 %v1773_v34, %v1430_v21  ;;  %v2998_v21 = vmax.f32 %v2619_v46, %v4317_v51  ;;  %v6413_v34 = vld [vmem:[%s4737_s30 + $0xf1] sm:$0xff]  ;;  %v2650_v26 = vpack.c.bf16 %v4252_v41, %v4252_v41 }
 0x1d4   : > { %v3374_v55 = vmax.f32 %v2997_v4, %v6413_v34 }
 0x1d5   : > { %v6403_v37 = vadd.f32 %v2151_v17, %v1808_v58  ;;  %v2153_v1 = vpop.f32.mrf.mxu0  ;;  %v2364_v17 = vpack.c.b16 %v2341_v3, %v2340_v19  ;;  %v2744_v58 = vpack.c.b16 %v2721_v43, %v2720_v39  ;;  %v3375_v45 = vmax.f32 %v2998_v21, %v6416_v56  ;;  %v6857_v39 = vld [vmem:[#allocation26_spill] sm:$0xff] }
 0x1d6   : > { %3787 = vst.msk [vmem:[%s4895_s17 + $0x90] sm:$0xff] %vm676_vm0, %v3374_v55  ;;  %v3500_v19 = vpack.c.b16 %v3477_v62, %v3476_v47  ;;  %v3029_v21 = vpack.c.bf16 %v4316_v31, %v4316_v31  ;;  %v2342_v31 = vunpack.c.l.b16 %v2270_v29  ;;  %v6454_v47 = vld [vmem:[%s4737_s30 + $0x110] sm:$0xff] }
 0x1d7   : > { %v1397_v6 = vpop.f32.mrf.mxu2  ;;  %3788 = vst.msk [vmem:[%s4895_s17 + $0x98] sm:$0xff] %vm676_vm0, %v3375_v45  ;;  %v2722_v45 = vunpack.c.l.b16 %v2650_v26  ;;  %v4318_v29 = vld [vmem:[%s4619_s14 + $0xb0] sm:$0xff] }
 0x1d8   : > { %v1431_v10 = vadd.f32 %v1397_v6, %v1053_v30  ;;  %v2651_v30 = vpack.c.bf16 %v4253_v11, %v4253_v11  ;;  %v3030_v6 = vpack.c.bf16 %v4317_v51, %v4317_v51  ;;  %v6859_v11 = vld [vmem:[#allocation25_spill] sm:$0xff]  ;;  %v2343_v51 = vunpack.c.l.b16 %v2271_v61 }
 0x1d9   : > { %v2453_v33 = vpop.f32.mrf.mxu1  ;;  %v4319_v61 = vld [vmem:[%s4619_s14 + $0xb8] sm:$0xff] }
 0x1da   : > { %v1775_v59 = vpop.f32.mrf.mxu3  ;;  %v2533_v43 = vadd.f32 %v2453_v33, %v6857_v39  ;;  %v6451_v33 = vld [vmem:[%s4737_s30 + $0x108] sm:$0xff]  ;;  %v3102_v39 = vunpack.c.l.b16 %v3030_v6 }
 0x1db   : > { %v1809_v28 = vadd.f32 %v1775_v59, %v1431_v10  ;;  %v6439_v10 = vld [vmem:[%s4807_s21 + $0xf9] sm:$0xff]  ;;  %v2723_v59 = vunpack.c.l.b16 %v2651_v30 }
 0x1dc   : > { %4226 = vmatmul.msk.bf16.gmra.mxu1 %vm676_vm0, %v2364_v17  ;;  %4290 = vmatmul.msk.bf16.gmra.mxu2 %vm676_vm0, %v2744_v58  ;;  %v6436_v17 = vld [vmem:[%s4807_s21 + $0xf1] sm:$0xff]  ;;  %v2241_v55 = vmax.f32 %v6859_v11, %v6439_v10 }
 0x1dd   : > { %v6426_v3 = vadd.f32 %v2153_v1, %v1809_v28  ;;  %v3589_v46 = vpop.f32.mrf.mxu0  ;;  %v2240_v41 = vmax.f32 %v6858_v54, %v6436_v17  ;;  %v2745_v6 = vpack.c.b16 %v2723_v59, %v2722_v45 }
 0x1df   : > { %6856 = vst [vmem:[#allocation12_spill] sm:$0xff] %v6426_v3  ;;  %4354 = vmatmul.msk.bf16.gmra.mxu3 %vm676_vm0, %v3123_v40  ;;  %v2833_v60 = vpop.f32.mrf.mxu2  ;;  %4418 = vmatmul.msk.bf16.gmra.mxu0 %vm676_vm0, %v3500_v19  ;;  %v2620_v28 = vmax.f32 %v2240_v41, %v6451_v33  ;;  %v2621_v40 = vmax.f32 %v2241_v55, %v6454_v47  ;;  %v3101_v19 = vunpack.c.l.b16 %v3029_v21 }
 0x1e0   : > { %v2913_v23 = vadd.f32 %v2833_v60, %v2533_v43  ;;  %v3406_v43 = vpack.c.bf16 %v6413_v34, %v6413_v34  ;;  %v3407_v60 = vpack.c.bf16 %v6416_v56, %v6416_v56  ;;  %v2365_v34 = vpack.c.b16 %v2343_v51, %v2342_v31  ;;  %v6473_v56 = vld [vmem:[%s4737_s30 + $0x109] sm:$0xff] }
 0x1e1   : > { %v2455_v4 = vpop.f32.mrf.mxu1  ;;  %v3124_v3 = vpack.c.b16 %v3102_v39, %v3101_v19  ;;  %v2272_v39 = vpack.c.bf16 %v6436_v17, %v6436_v17  ;;  %v6500_v17 = vld [vmem:[%s4807_s21 + $0x109] sm:$0xff] }
 0x1e2   : > { %v3212_v1 = vpop.f32.mrf.mxu3 }
 0x1e3   : > { %v3292_v58 = vadd.f32 %v3212_v1, %v2913_v23  ;;  %v2999_v23 = vmax.f32 %v2620_v28, %v4318_v29  ;;  %v3000_v1 = vmax.f32 %v2621_v40, %v4319_v61  ;;  %v3479_v28 = vunpack.c.l.b16 %v3407_v60 }
 0x1e4   : > { %v2273_v60 = vpack.c.bf16 %v6439_v10, %v6439_v10 }
 0x1e5   : > { %v3669_v62 = vadd.f32 %v3589_v46, %v3292_v58  ;;  %v2534_v46 = vadd.f32 %v2455_v4, %v5529_v53  ;;  %v3591_v30 = vpop.f32.mrf.mxu0  ;;  %v6476_v58 = vld [vmem:[%s4737_s30 + $0x111] sm:$0xff]  ;;  %v3376_v4 = vmax.f32 %v2999_v23, %v6473_v56 }
 0x1e6   : > { %v3377_v41 = vmax.f32 %v3000_v1, %v6476_v58  ;;  %v3031_v1 = vpack.c.bf16 %v4318_v29, %v4318_v29  ;;  %v4256_v29 = vld [vmem:[%s4737_s30 + $0x120] sm:$0xff] }
 0x1e7   : > { %v3705_v26 = vadd.f32 %v6444_v9, %v3669_v62  ;;  %v2835_v21 = vpop.f32.mrf.mxu2  ;;  %v3478_v62 = vunpack.c.l.b16 %v3406_v43  ;;  %3789 = vst.msk [vmem:[%s4895_s17 + $0xa0] sm:$0xff] %vm676_vm0, %v3376_v4  ;;  %v2345_v4 = vunpack.c.l.b16 %v2273_v60 }
 0x1e8   : > { %v2914_v53 = vadd.f32 %v2835_v21, %v2534_v46  ;;  %3790 = vst.msk [vmem:[%s4895_s17 + $0xa8] sm:$0xff] %vm676_vm0, %v3377_v41  ;;  %v2653_v46 = vpack.c.bf16 %v6454_v47, %v6454_v47  ;;  %v3032_v21 = vpack.c.bf16 %v4319_v61, %v4319_v61  ;;  %v4257_v61 = vld [vmem:[%s4737_s30 + $0x128] sm:$0xff] }
 0x1e9   : > { %v3737_v54 = vmax.f32 %v3705_v26, 0.0  ;;  %v2458_v55 = vpop.f32.mrf.mxu1  ;;  %v3501_v51 = vpack.c.b16 %v3479_v28, %v3478_v62  ;;  %v2652_v26 = vpack.c.bf16 %v6451_v33, %v6451_v33  ;;  %v6860_v33 = vld [vmem:[#allocation27_spill] sm:$0xff] }
 0x1ea   : > { %v3214_v11 = vpop.f32.mrf.mxu3  ;;  %v2535_v59 = vadd.f32 %v2458_v55, %v5563_v0  ;;  %v2242_v47 = vmax.f32 %v6860_v33, %v6500_v17 }
 0x1eb   : > { %3801 = vst [vmem:[%s6470_s16] sm:$0xff] %v3737_v54  ;;  %v3293_v40 = vadd.f32 %v3214_v11, %v2914_v53  ;;  %v2344_v53 = vunpack.c.l.b16 %v2272_v39  ;;  %v2724_v41 = vunpack.c.l.b16 %v2652_v26  ;;  %v2725_v11 = vunpack.c.l.b16 %v2653_v46 }
 0x1ec   : > { %4227 = vmatmul.msk.bf16.gmra.mxu1 %vm676_vm0, %v2365_v34  ;;  %4291 = vmatmul.msk.bf16.gmra.mxu2 %vm676_vm0, %v2745_v6  ;;  %v6503_v34 = vld [vmem:[%s4807_s21 + $0x111] sm:$0xff]  ;;  %v2622_v62 = vmax.f32 %v2242_v47, %v4256_v29 }
 0x1ed   : > { %v3670_v31 = vadd.f32 %v3591_v30, %v3293_v40  ;;  %v3594_v43 = vpop.f32.mrf.mxu0  ;;  %v6861_v6 = vld [vmem:[#allocation28_spill] sm:$0xff]  ;;  %v3103_v40 = vunpack.c.l.b16 %v3031_v1  ;;  %v6521_v1 = vld [vmem:[%s4737_s30 + $0x121] sm:$0xff] }
 0x1ee   : > { %v2243_v54 = vmax.f32 %v6861_v6, %v6503_v34 }
 0x1ef   : > { %v3706_v45 = vadd.f32 %v6444_v9, %v3670_v31  ;;  %4355 = vmatmul.msk.bf16.gmra.mxu3 %vm676_vm0, %v3124_v3  ;;  %v2838_v19 = vpop.f32.mrf.mxu2  ;;  %4419 = vmatmul.msk.bf16.gmra.mxu0 %vm676_vm0, %v3501_v51  ;;  %v3104_v31 = vunpack.c.l.b16 %v3032_v21  ;;  %v3408_v51 = vpack.c.bf16 %v6473_v56, %v6473_v56  ;;  %v6524_v56 = vld [vmem:[%s4737_s30 + $0x129] sm:$0xff] }
 0x1f0   : > { %v2915_v0 = vadd.f32 %v2838_v19, %v2535_v59  ;;  %v2623_v28 = vmax.f32 %v2243_v54, %v4257_v61  ;;  %v4320_v59 = vld [vmem:[%s4619_s14 + $0xc0] sm:$0xff]  ;;  %v4321_v19 = vld [vmem:[%s4619_s14 + $0xc8] sm:$0xff] }
 0x1f1   : > { %v3738_v30 = vmax.f32 %v3706_v45, 0.0  ;;  %v2460_v23 = vpop.f32.mrf.mxu1  ;;  %v3409_v45 = vpack.c.bf16 %v6476_v58, %v6476_v58  ;;  %v3480_v47 = vunpack.c.l.b16 %v3408_v51  ;;  %v2654_v51 = vpack.c.bf16 %v4256_v29, %v4256_v29 }
 0x1f2   : > { %v3217_v3 = vpop.f32.mrf.mxu3  ;;  %v2536_v60 = vadd.f32 %v2460_v23, %v5593_v24  ;;  %v3002_v46 = vmax.f32 %v2623_v28, %v4321_v19 }
 0x1f3   : > { %3802 = vst [vmem:[%s6470_s16 + $0x8] sm:$0xff] %v3738_v30  ;;  %v3294_v10 = vadd.f32 %v3217_v3, %v2915_v0  ;;  %v2366_v0 = vpack.c.b16 %v2345_v4, %v2344_v53  ;;  %v2746_v3 = vpack.c.b16 %v2725_v11, %v2724_v41  ;;  %v3481_v6 = vunpack.c.l.b16 %v3409_v45 }
 0x1f4   : > { %v3379_v33 = vmax.f32 %v3002_v46, %v6524_v56  ;;  %v2655_v45 = vpack.c.bf16 %v4257_v61, %v4257_v61  ;;  %v3034_v46 = vpack.c.bf16 %v4321_v19, %v4321_v19  ;;  %v6863_v61 = vld [vmem:[#allocation30_spill] sm:$0xff] }
 0x1f5   : > { %v3671_v55 = vadd.f32 %v3594_v43, %v3294_v10  ;;  %v3596_v26 = vpop.f32.mrf.mxu0  ;;  %v3001_v43 = vmax.f32 %v2622_v62, %v4320_v59  ;;  %v3502_v4 = vpack.c.b16 %v3481_v6, %v3480_v47  ;;  %v4259_v19 = vld [vmem:[%s4737_s30 + $0x140] sm:$0xff] }
 0x1f6   : > { %3792 = vst.msk [vmem:[%s4895_s17 + $0xb8] sm:$0xff] %vm676_vm0, %v3379_v33  ;;  %v2727_v33 = vunpack.c.l.b16 %v2655_v45 }
 0x1f7   : > { %v3707_v39 = vadd.f32 %v6444_v9, %v3671_v55  ;;  %v2840_v30 = vpop.f32.mrf.mxu2  ;;  %v3378_v10 = vmax.f32 %v3001_v43, %v6521_v1  ;;  %v3125_v55 = vpack.c.b16 %v3104_v31, %v3103_v40  ;;  %v2274_v40 = vpack.c.bf16 %v6500_v17, %v6500_v17 }
 0x1f8   : > { %v2916_v21 = vadd.f32 %v2840_v30, %v2536_v60  ;;  %v2275_v31 = vpack.c.bf16 %v6503_v34, %v6503_v34  ;;  %v3033_v43 = vpack.c.bf16 %v4320_v59, %v4320_v59  ;;  %v6544_v30 = vld [vmem:[%s4807_s21 + $0x121] sm:$0xff]  ;;  %v6862_v34 = vld [vmem:[#allocation29_spill] sm:$0xff] }
 0x1f9   : > { %v3739_v58 = vmax.f32 %v3707_v39, 0.0  ;;  %v2463_v23 = vpop.f32.mrf.mxu1  ;;  %3791 = vst.msk [vmem:[%s4895_s17 + $0xb0] sm:$0xff] %vm676_vm0, %v3378_v10  ;;  %v2244_v29 = vmax.f32 %v6862_v34, %v6544_v30  ;;  %v2726_v10 = vunpack.c.l.b16 %v2654_v51  ;;  %v4258_v59 = vld [vmem:[%s4737_s30 + $0x138] sm:$0xff] }
 0x1fa   : > { %v3219_v24 = vpop.f32.mrf.mxu3  ;;  %v2537_v11 = vadd.f32 %v2463_v23, %v5636_v57  ;;  %v3105_v6 = vunpack.c.l.b16 %v3033_v43 }
 0x1fb   : > { %3803 = vst [vmem:[%s6470_s16 + $0x10] sm:$0xff] %v3739_v58  ;;  %v3295_v54 = vadd.f32 %v3219_v24, %v2916_v21  ;;  %v2346_v58 = vunpack.c.l.b16 %v2274_v40  ;;  %v2347_v21 = vunpack.c.l.b16 %v2275_v31  ;;  %v2624_v23 = vmax.f32 %v2244_v29, %v4258_v59 }
 0x1fc   : > { %4228 = vmatmul.msk.bf16.gmra.mxu1 %vm676_vm0, %v2366_v0  ;;  %4292 = vmatmul.msk.bf16.gmra.mxu2 %vm676_vm0, %v2746_v3  ;;  %v6547_v0 = vld [vmem:[%s4807_s21 + $0x129] sm:$0xff] }
 0x1fd   : > { %v3672_v53 = vadd.f32 %v3596_v26, %v3295_v54  ;;  %v3599_v62 = vpop.f32.mrf.mxu0  ;;  %v2245_v3 = vmax.f32 %v6863_v61, %v6547_v0  ;;  %v3106_v54 = vunpack.c.l.b16 %v3034_v46  ;;  %v2367_v45 = vpack.c.b16 %v2347_v21, %v2346_v58 }
 0x1ff   : > { %v3708_v41 = vadd.f32 %v6444_v9, %v3672_v53  ;;  %4356 = vmatmul.msk.bf16.gmra.mxu3 %vm676_vm0, %v3125_v55  ;;  %v2843_v28 = vpop.f32.mrf.mxu2  ;;  %4420 = vmatmul.msk.bf16.gmra.mxu0 %vm676_vm0, %v3502_v4  ;;  %v2625_v47 = vmax.f32 %v2245_v3, %v4259_v19  ;;  %v3410_v55 = vpack.c.bf16 %v6521_v1, %v6521_v1  ;;  %v4322_v4 = vld [vmem:[%s4619_s14 + $0xd0] sm:$0xff]  ;;  %v6568_v1 = vld [vmem:[%s4737_s30 + $0x141] sm:$0xff] }
 0x200   : > { %v2917_v60 = vadd.f32 %v2843_v28, %v2537_v11  ;;  %v3411_v53 = vpack.c.bf16 %v6524_v56, %v6524_v56  ;;  %v3126_v61 = vpack.c.b16 %v3106_v54, %v3105_v6  ;;  %v2656_v6 = vpack.c.bf16 %v4258_v59, %v4258_v59  ;;  %v6864_v59 = vld [vmem:[#allocation31_spill] sm:$0xff] }
 0x201   : > { %v3740_v39 = vmax.f32 %v3708_v41, 0.0  ;;  %v2465_v26 = vpop.f32.mrf.mxu1  ;;  %v4323_v41 = vld [vmem:[%s4619_s14 + $0xd8] sm:$0xff]  ;;  %v2657_v54 = vpack.c.bf16 %v4259_v19, %v4259_v19 }
 0x202   : > { %v3222_v57 = vpop.f32.mrf.mxu3  ;;  %v2538_v28 = vadd.f32 %v2465_v26, %v5669_v49  ;;  %v3004_v31 = vmax.f32 %v2625_v47, %v4323_v41  ;;  %v3483_v34 = vunpack.c.l.b16 %v3411_v53  ;;  %v2277_v47 = vpack.c.bf16 %v6547_v0, %v6547_v0 }
 0x203   : > { %3804 = vst [vmem:[%s6470_s16 + $0x18] sm:$0xff] %v3740_v39  ;;  %v3296_v17 = vadd.f32 %v3222_v57, %v2917_v60  ;;  %v2747_v39 = vpack.c.b16 %v2727_v33, %v2726_v10  ;;  %v6565_v60 = vld [vmem:[%s4737_s30 + $0x139] sm:$0xff] }
 0x204   : > { %v3381_v46 = vmax.f32 %v3004_v31, %v6568_v1  ;;  %v6591_v31 = vld [vmem:[%s4807_s21 + $0x141] sm:$0xff] }
 0x205   : > { %v3673_v24 = vadd.f32 %v3599_v62, %v3296_v17  ;;  %v3601_v40 = vpop.f32.mrf.mxu0  ;;  %v3003_v62 = vmax.f32 %v2624_v23, %v4322_v4  ;;  %v3482_v17 = vunpack.c.l.b16 %v3410_v55  ;;  %v2276_v23 = vpack.c.bf16 %v6544_v30, %v6544_v30 }
 0x206   : > { %3794 = vst.msk [vmem:[%s4895_s17 + $0xc8] sm:$0xff] %vm676_vm0, %v3381_v46  ;;  %v2247_v19 = vmax.f32 %v6864_v59, %v6591_v31 }
 0x207   : > { %v3709_v11 = vadd.f32 %v6444_v9, %v3673_v24  ;;  %v2845_v51 = vpop.f32.mrf.mxu2  ;;  %v3380_v43 = vmax.f32 %v3003_v62, %v6565_v60  ;;  %v3503_v58 = vpack.c.b16 %v3483_v34, %v3482_v17  ;;  %v6588_v62 = vld [vmem:[%s4807_s21 + $0x139] sm:$0xff]  ;;  %v3413_v17 = vpack.c.bf16 %v6568_v1, %v6568_v1 }
 0x208   : > { %v2918_v57 = vadd.f32 %v2845_v51, %v2538_v28  ;;  %v3035_v28 = vpack.c.bf16 %v4322_v4, %v4322_v4  ;;  %v2246_v0 = vmax.f32 %v5689_v18, %v6588_v62  ;;  %v2348_v51 = vunpack.c.l.b16 %v2276_v23  ;;  %v4260_v4 = vld [vmem:[%s4737_s30 + $0x150] sm:$0xff]  ;;  %v4324_v34 = vld [vmem:[%s4619_s14 + $0xe0] sm:$0xff] }
 0x209   : > { %v3741_v56 = vmax.f32 %v3709_v11, 0.0  ;;  %v2468_v26 = vpop.f32.mrf.mxu1  ;;  %3793 = vst.msk [vmem:[%s4895_s17 + $0xc0] sm:$0xff] %vm676_vm0, %v3380_v43  ;;  %v3412_v18 = vpack.c.bf16 %v6565_v60, %v6565_v60  ;;  %v6612_v60 = vld [vmem:[%s4737_s30 + $0x159] sm:$0xff] }
 0x20a   : > { %v3224_v49 = vpop.f32.mrf.mxu3  ;;  %v2539_v10 = vadd.f32 %v2468_v26, %v5700_v63  ;;  %v2626_v43 = vmax.f32 %v2246_v0, %v4260_v4 }
 0x20b   : > { %3805 = vst [vmem:[%s6470_s16 + $0x20] sm:$0xff] %v3741_v56  ;;  %v3297_v29 = vadd.f32 %v3224_v49, %v2918_v57  ;;  %v2729_v56 = vunpack.c.l.b16 %v2657_v54  ;;  %v3107_v49 = vunpack.c.l.b16 %v3035_v28 }
 0x20c   : > { %4229 = vmatmul.msk.bf16.gmra.mxu1 %vm676_vm0, %v2367_v45  ;;  %4293 = vmatmul.msk.bf16.gmra.mxu2 %vm676_vm0, %v2747_v39  ;;  %v2349_v45 = vunpack.c.l.b16 %v2277_v47  ;;  %v2728_v39 = vunpack.c.l.b16 %v2656_v6  ;;  %v6609_v47 = vld [vmem:[%s4737_s30 + $0x151] sm:$0xff] }
 0x20d   : > { %v3674_v3 = vadd.f32 %v3601_v40, %v3297_v29  ;;  %v3604_v33 = vpop.f32.mrf.mxu0  ;;  %v3036_v40 = vpack.c.bf16 %v4323_v41, %v4323_v41  ;;  %v4261_v41 = vld [vmem:[%s4737_s30 + $0x158] sm:$0xff]  ;;  %v4325_v29 = vld [vmem:[%s4619_s14 + $0xe8] sm:$0xff] }
 0x20e   : > { %v2627_v46 = vmax.f32 %v2247_v19, %v4261_v41  ;;  %v2748_v23 = vpack.c.b16 %v2729_v56, %v2728_v39  ;;  %v6865_v19 = vld [vmem:[#allocation34_spill] sm:$0xff]  ;;  %v2278_v56 = vpack.c.bf16 %v6588_v62, %v6588_v62 }
 0x20f   : > { %v3710_v21 = vadd.f32 %v6444_v9, %v3674_v3  ;;  %4357 = vmatmul.msk.bf16.gmra.mxu3 %vm676_vm0, %v3126_v61  ;;  %v2848_v24 = vpop.f32.mrf.mxu2  ;;  %4421 = vmatmul.msk.bf16.gmra.mxu0 %vm676_vm0, %v3503_v58  ;;  %v3108_v26 = vunpack.c.l.b16 %v3036_v40 }
 0x210   : > { %v2919_v53 = vadd.f32 %v2848_v24, %v2539_v10  ;;  %v3006_v10 = vmax.f32 %v2627_v46, %v4325_v29  ;;  %v2368_v24 = vpack.c.b16 %v2349_v45, %v2348_v51  ;;  %v2659_v46 = vpack.c.bf16 %v4261_v41, %v4261_v41  ;;  %v6867_v41 = vld [vmem:[#allocation33_spill] sm:$0xff] }
 0x211   : > { %v3742_v55 = vmax.f32 %v3710_v21, 0.0  ;;  %v2470_v11 = vpop.f32.mrf.mxu1  ;;  %v3005_v21 = vmax.f32 %v2626_v43, %v4324_v34  ;;  %v3127_v40 = vpack.c.b16 %v3108_v26, %v3107_v49  ;;  %v2658_v43 = vpack.c.bf16 %v4260_v4, %v4260_v4 }
 0x212   : > { %v3227_v63 = vpop.f32.mrf.mxu3  ;;  %v2540_v3 = vadd.f32 %v2470_v11, %v5732_v2  ;;  %v3485_v11 = vunpack.c.l.b16 %v3413_v17 }
 0x213   : > { %3806 = vst [vmem:[%s6470_s16 + $0x28] sm:$0xff] %v3742_v55  ;;  %v3298_v30 = vadd.f32 %v3227_v63, %v2919_v53  ;;  %v3382_v54 = vmax.f32 %v3005_v21, %v6609_v47  ;;  %v3383_v55 = vmax.f32 %v3006_v10, %v6612_v60  ;;  %v3484_v63 = vunpack.c.l.b16 %v3412_v18  ;;  %v6635_v21 = vld [vmem:[%s4807_s21 + $0x159] sm:$0xff] }
 0x214   : > { %v2249_v10 = vmax.f32 %v6867_v41, %v6635_v21 }
 0x215   : > { %v3675_v57 = vadd.f32 %v3604_v33, %v3298_v30  ;;  %v3606_v58 = vpop.f32.mrf.mxu0  ;;  %3795 = vst.msk [vmem:[%s4895_s17 + $0xd0] sm:$0xff] %vm676_vm0, %v3382_v54  ;;  %v3504_v0 = vpack.c.b16 %v3485_v11, %v3484_v63  ;;  %v3414_v63 = vpack.c.bf16 %v6609_v47, %v6609_v47  ;;  %v3415_v11 = vpack.c.bf16 %v6612_v60, %v6612_v60  ;;  %v6656_v47 = vld [vmem:[%s4737_s30 + $0x171] sm:$0xff] }
 0x216   : > { %3796 = vst.msk [vmem:[%s4895_s17 + $0xd8] sm:$0xff] %vm676_vm0, %v3383_v55 }
 0x217   : > { %v3711_v61 = vadd.f32 %v6444_v9, %v3675_v57  ;;  %v2850_v33 = vpop.f32.mrf.mxu2  ;;  %v2279_v57 = vpack.c.bf16 %v6591_v31, %v6591_v31  ;;  %v6866_v31 = vld [vmem:[#allocation32_spill] sm:$0xff] }
 0x218   : > { %v2920_v6 = vadd.f32 %v2850_v33, %v2540_v3  ;;  %v3038_v3 = vpack.c.bf16 %v4325_v29, %v4325_v29  ;;  %v2350_v33 = vunpack.c.l.b16 %v2278_v56  ;;  %v4263_v29 = vld [vmem:[%s4737_s30 + $0x170] sm:$0xff] }
 0x219   : > { %v3743_v1 = vmax.f32 %v3711_v61, 0.0  ;;  %v2473_v53 = vpop.f32.mrf.mxu1  ;;  %v3037_v61 = vpack.c.bf16 %v4324_v34, %v4324_v34  ;;  %v4262_v34 = vld [vmem:[%s4737_s30 + $0x168] sm:$0xff]  ;;  %v2629_v55 = vmax.f32 %v2249_v10, %v4263_v29 }
 0x21a   : > { %v3229_v2 = vpop.f32.mrf.mxu3  ;;  %v2541_v51 = vadd.f32 %v2473_v53, %v6865_v19  ;;  %v3110_v53 = vunpack.c.l.b16 %v3038_v3 }
 0x21b   : > { %3807 = vst [vmem:[%s6470_s16 + $0x30] sm:$0xff] %v3743_v1  ;;  %v3299_v28 = vadd.f32 %v3229_v2, %v2920_v6  ;;  %v2731_v1 = vunpack.c.l.b16 %v2659_v46  ;;  %v3109_v2 = vunpack.c.l.b16 %v3037_v61 }
 0x21c   : > { %4230 = vmatmul.msk.bf16.gmra.mxu1 %vm676_vm0, %v2368_v24  ;;  %4294 = vmatmul.msk.bf16.gmra.mxu2 %vm676_vm0, %v2748_v23  ;;  %v2351_v24 = vunpack.c.l.b16 %v2279_v57  ;;  %v2730_v23 = vunpack.c.l.b16 %v2658_v43  ;;  %v6653_v57 = vld [vmem:[%s4737_s30 + $0x169] sm:$0xff] }
 0x21d   : > { %v3676_v30 = vadd.f32 %v3606_v58, %v3299_v28  ;;  %v3609_v45 = vpop.f32.mrf.mxu0  ;;  %v6632_v58 = vld [vmem:[%s4807_s21 + $0x151] sm:$0xff]  ;;  %v3128_v3 = vpack.c.b16 %v3110_v53, %v3109_v2 }
 0x21e   : > { %v2248_v4 = vmax.f32 %v6866_v31, %v6632_v58  ;;  %v4326_v28 = vld [vmem:[%s4619_s14 + $0xf0] sm:$0xff]  ;;  %v2749_v56 = vpack.c.b16 %v2731_v1, %v2730_v23  ;;  %v2281_v23 = vpack.c.bf16 %v6635_v21, %v6635_v21  ;;  %v2660_v1 = vpack.c.bf16 %v4262_v34, %v4262_v34  ;;  %v6868_v21 = vld [vmem:[#allocation35_spill] sm:$0xff] }
 0x21f   : > { %v3712_v59 = vadd.f32 %v6444_v9, %v3676_v30  ;;  %4358 = vmatmul.msk.bf16.gmra.mxu3 %vm676_vm0, %v3127_v40  ;;  %v2853_v39 = vpop.f32.mrf.mxu2  ;;  %4422 = vmatmul.msk.bf16.gmra.mxu0 %vm676_vm0, %v3504_v0  ;;  %v4327_v40 = vld [vmem:[%s4619_s14 + $0xf8] sm:$0xff]  ;;  %v3039_v53 = vpack.c.bf16 %v4326_v28, %v4326_v28 }
 0x220   : > { %v2921_v26 = vadd.f32 %v2853_v39, %v2541_v51  ;;  %v2628_v54 = vmax.f32 %v2248_v4, %v4262_v34  ;;  %v3008_v51 = vmax.f32 %v2629_v55, %v4327_v40  ;;  %v2369_v39 = vpack.c.b16 %v2351_v24, %v2350_v33 }
 0x221   : > { %v3744_v49 = vmax.f32 %v3712_v59, 0.0  ;;  %v2475_v17 = vpop.f32.mrf.mxu1  ;;  %v2280_v24 = vpack.c.bf16 %v6632_v58, %v6632_v58 }
 0x222   : > { %v3232_v18 = vpop.f32.mrf.mxu3  ;;  %v2542_v0 = vadd.f32 %v2475_v17, %v5796_v27  ;;  %v3007_v19 = vmax.f32 %v2628_v54, %v4326_v28  ;;  %v3487_v17 = vunpack.c.l.b16 %v3415_v11  ;;  %v6676_v11 = vld [vmem:[%s4807_s21 + $0x169] sm:$0xff]  ;;  %v4264_v28 = vld [vmem:[%s4737_s30 + $0x180] sm:$0xff] }
 0x223   : > { %3808 = vst [vmem:[%s6470_s16 + $0x38] sm:$0xff] %v3744_v49  ;;  %v3300_v62 = vadd.f32 %v3232_v18, %v2921_v26  ;;  %v3385_v49 = vmax.f32 %v3008_v51, %v6656_v47  ;;  %v3486_v18 = vunpack.c.l.b16 %v3414_v63  ;;  %v3040_v63 = vpack.c.bf16 %v4327_v40, %v4327_v40  ;;  %v4265_v40 = vld [vmem:[%s4737_s30 + $0x188] sm:$0xff] }
 0x224   : > { %v3384_v46 = vmax.f32 %v3007_v19, %v6653_v57  ;;  %v2250_v34 = vmax.f32 %v6868_v21, %v6676_v11  ;;  %v2353_v19 = vunpack.c.l.b16 %v2281_v23  ;;  %v2732_v51 = vunpack.c.l.b16 %v2660_v1 }
 0x225   : > { %v3677_v6 = vadd.f32 %v3609_v45, %v3300_v62  ;;  %v3611_v59 = vpop.f32.mrf.mxu0  ;;  %3798 = vst.msk [vmem:[%s4895_s17 + $0xe8] sm:$0xff] %vm676_vm0, %v3385_v49  ;;  %v3505_v31 = vpack.c.b16 %v3487_v17, %v3486_v18  ;;  %v3416_v49 = vpack.c.bf16 %v6653_v57, %v6653_v57  ;;  %v4329_v18 = vld [vmem:[%s4619_s14 + $0x108] sm:$0xff] }
 0x226   : > { %3797 = vst.msk [vmem:[%s4895_s17 + $0xe0] sm:$0xff] %vm676_vm0, %v3384_v46  ;;  %v3112_v46 = vunpack.c.l.b16 %v3040_v63 }
 0x227   : > { %v3713_v30 = vadd.f32 %v6444_v9, %v3677_v6  ;;  %v2855_v45 = vpop.f32.mrf.mxu2  ;;  %v2661_v6 = vpack.c.bf16 %v4263_v29, %v4263_v29  ;;  %v6869_v29 = vld [vmem:[#allocation36_spill] sm:$0xff] }
 0x228   : > { %v2922_v43 = vadd.f32 %v2855_v45, %v2542_v0 }
 0x229   : > { %v3745_v60 = vmax.f32 %v3713_v30, 0.0  ;;  %v2478_v26 = vpop.f32.mrf.mxu1  ;;  %v6679_v30 = vld [vmem:[%s4807_s21 + $0x171] sm:$0xff]  ;;  %v2733_v45 = vunpack.c.l.b16 %v2661_v6 }
 0x22a   : > { %v3234_v27 = vpop.f32.mrf.mxu3  ;;  %v2543_v41 = vadd.f32 %v2478_v26, %v5827_v25  ;;  %v2251_v0 = vmax.f32 %v6869_v29, %v6679_v30  ;;  %v4328_v26 = vld [vmem:[%s4619_s14 + $0x100] sm:$0xff] }
 0x22b   : > { %3809 = vst [vmem:[%s6470_s16 + $0x40] sm:$0xff] %v3745_v60  ;;  %v3301_v61 = vadd.f32 %v3234_v27, %v2922_v43  ;;  %v3111_v43 = vunpack.c.l.b16 %v3039_v53  ;;  %v3417_v27 = vpack.c.bf16 %v6656_v47, %v6656_v47 }
 0x22c   : > { %4231 = vmatmul.msk.bf16.gmra.mxu1 %vm676_vm0, %v2369_v39  ;;  %4295 = vmatmul.msk.bf16.gmra.mxu2 %vm676_vm0, %v2749_v56  ;;  %v2630_v56 = vmax.f32 %v2250_v34, %v4264_v28  ;;  %v2631_v60 = vmax.f32 %v2251_v0, %v4265_v40  ;;  %v2282_v0 = vpack.c.bf16 %v6676_v11, %v6676_v11 }
 0x22d   : > { %v3678_v62 = vadd.f32 %v3611_v59, %v3301_v61  ;;  %v3614_v10 = vpop.f32.mrf.mxu0  ;;  %v2352_v59 = vunpack.c.l.b16 %v2280_v24  ;;  %v4393_v24 = vld [vmem:[%s4737_s30 + $0x189] sm:$0xff] }
 0x22f   : > { %v3714_v4 = vadd.f32 %v6444_v9, %v3678_v62  ;;  %4359 = vmatmul.msk.bf16.gmra.mxu3 %vm676_vm0, %v3128_v3  ;;  %v2858_v33 = vpop.f32.mrf.mxu2  ;;  %4423 = vmatmul.msk.bf16.gmra.mxu0 %vm676_vm0, %v3505_v31  ;;  %v3009_v62 = vmax.f32 %v2630_v56, %v4328_v26  ;;  %v3010_v31 = vmax.f32 %v2631_v60, %v4329_v18 }
 0x230   : > { %v2923_v55 = vadd.f32 %v2858_v33, %v2543_v41  ;;  %v2370_v41 = vpack.c.b16 %v2353_v19, %v2352_v59  ;;  %v4392_v33 = vld [vmem:[%s4737_s30 + $0x181] sm:$0xff]  ;;  %v2283_v59 = vpack.c.bf16 %v6679_v30, %v6679_v30  ;;  %v3419_v30 = vpack.c.bf16 %v4393_v24, %v4393_v24 }
 0x231   : > { %v3746_v54 = vmax.f32 %v3714_v4, 0.0  ;;  %v2480_v2 = vpop.f32.mrf.mxu1  ;;  %v3386_v47 = vmax.f32 %v3009_v62, %v4392_v33  ;;  %v3387_v1 = vmax.f32 %v3010_v31, %v4393_v24 }
 0x232   : > { %v3237_v25 = vpop.f32.mrf.mxu3  ;;  %v2544_v61 = vadd.f32 %v2480_v2, %v5842_v20  ;;  %v3129_v2 = vpack.c.b16 %v3112_v46, %v3111_v43  ;;  %v3041_v43 = vpack.c.bf16 %v4328_v26, %v4328_v26  ;;  %v3042_v46 = vpack.c.bf16 %v4329_v18, %v4329_v18 }
 0x233   : > { %3810 = vst [vmem:[%s6470_s16 + $0x48] sm:$0xff] %v3746_v54  ;;  %v3302_v58 = vadd.f32 %v3237_v25, %v2923_v55  ;;  %v3488_v55 = vunpack.c.l.b16 %v3416_v49  ;;  %v3489_v25 = vunpack.c.l.b16 %v3417_v27  ;;  %v2354_v49 = vunpack.c.l.b16 %v2282_v0 }
 0x234   : > { %3799 = vst.msk [vmem:[%s4895_s17 + $0xf0] sm:$0xff] %vm676_vm0, %v3386_v47  ;;  %v3113_v31 = vunpack.c.l.b16 %v3041_v43 }
 0x235   : > { %v3679_v39 = vadd.f32 %v3614_v10, %v3302_v58  ;;  %v3616_v3 = vpop.f32.mrf.mxu0  ;;  %v2750_v10 = vpack.c.b16 %v2733_v45, %v2732_v51  ;;  %3800 = vst.msk [vmem:[%s4895_s17 + $0xf8] sm:$0xff] %vm676_vm0, %v3387_v1  ;;  %v3506_v63 = vpack.c.b16 %v3489_v25, %v3488_v55  ;;  %v2662_v45 = vpack.c.bf16 %v4264_v28, %v4264_v28 }
 0x237   : > { %v3715_v17 = vadd.f32 %v6444_v9, %v3679_v39  ;;  %v2860_v4 = vpop.f32.mrf.mxu2  ;;  %v2663_v39 = vpack.c.bf16 %v4265_v40, %v4265_v40 }
 0x238   : > { %v2924_v23 = vadd.f32 %v2860_v4, %v2544_v61  ;;  %v2734_v61 = vunpack.c.l.b16 %v2662_v45  ;;  %v3114_v4 = vunpack.c.l.b16 %v3042_v46 }
 0x239   : > { %v3747_v57 = vmax.f32 %v3715_v17, 0.0  ;;  %v2483_v54 = vpop.f32.mrf.mxu1  ;;  %v2355_v17 = vunpack.c.l.b16 %v2283_v59  ;;  %v2735_v11 = vunpack.c.l.b16 %v2663_v39 }
 0x23a   : > { %v3239_v6 = vpop.f32.mrf.mxu3  ;;  %v2545_v21 = vadd.f32 %v2483_v54, %v5861_v42  ;;  %v3130_v24 = vpack.c.b16 %v3114_v4, %v3113_v31 }
 0x23b   : > { %3811 = vst [vmem:[%s6470_s16 + $0x50] sm:$0xff] %v3747_v57  ;;  %v3303_v20 = vadd.f32 %v3239_v6, %v2924_v23  ;;  %v2371_v26 = vpack.c.b16 %v2355_v17, %v2354_v49  ;;  %v2751_v18 = vpack.c.b16 %v2735_v11, %v2734_v61  ;;  %v3491_v6 = vunpack.c.l.b16 %v3419_v30 }
 0x23c   : > { %4232 = vmatmul.msk.bf16.gmra.mxu1 %vm676_vm0, %v2370_v41  ;;  %4296 = vmatmul.msk.bf16.gmra.mxu2 %vm676_vm0, %v2750_v10 }
 0x23d   : > { %v3680_v53 = vadd.f32 %v3616_v3, %v3303_v20  ;;  %v3619_v34 = vpop.f32.mrf.mxu0  ;;  %v3418_v3 = vpack.c.bf16 %v4392_v33, %v4392_v33 }
 0x23f   : > { %v3716_v58 = vadd.f32 %v6444_v9, %v3680_v53  ;;  %4360 = vmatmul.msk.bf16.gmra.mxu3 %vm676_vm0, %v3129_v2  ;;  %v2863_v29 = vpop.f32.mrf.mxu2  ;;  %4424 = vmatmul.msk.bf16.gmra.mxu0 %vm676_vm0, %v3506_v63  ;;  %v3490_v1 = vunpack.c.l.b16 %v3418_v3 }
 0x240   : > { %v2925_v51 = vadd.f32 %v2863_v29, %v2545_v21 }
 0x241   : > { %v3748_v19 = vmax.f32 %v3716_v58, 0.0  ;;  %v2485_v60 = vpop.f32.mrf.mxu1 }
 0x242   : > { %v3242_v56 = vpop.f32.mrf.mxu3  ;;  %v2546_v28 = vadd.f32 %v2485_v60, %v5886_v52  ;;  %v3507_v52 = vpack.c.b16 %v3491_v6, %v3490_v1 }
 0x243   : > { %3812 = vst [vmem:[%s6470_s16 + $0x58] sm:$0xff] %v3748_v19  ;;  %v3304_v42 = vadd.f32 %v3242_v56, %v2925_v51 }
 0x245   : > { %v3681_v27 = vadd.f32 %v3619_v34, %v3304_v42  ;;  %v3621_v40 = vpop.f32.mrf.mxu0 }
 0x247   : > { %v3717_v62 = vadd.f32 %v6444_v9, %v3681_v27  ;;  %v2865_v41 = vpop.f32.mrf.mxu2 }
 0x248   : > { %v2926_v57 = vadd.f32 %v2865_v41, %v2546_v28 }
 0x249   : > { %v3749_v10 = vmax.f32 %v3717_v62, 0.0  ;;  %v2488_v47 = vpop.f32.mrf.mxu1 }
 0x24a   : > { %v3244_v23 = vpop.f32.mrf.mxu3  ;;  %v2547_v25 = vadd.f32 %v2488_v47, %v5913_v15 }
 0x24b   : > { %3813 = vst [vmem:[%s6470_s16 + $0x60] sm:$0xff] %v3749_v10  ;;  %v3305_v33 = vadd.f32 %v3244_v23, %v2926_v57 }
 0x24c   : > { %4233 = vmatmul.msk.bf16.gmra.mxu1 %vm676_vm0, %v2371_v26  ;;  %4297 = vmatmul.msk.bf16.gmra.mxu2 %vm676_vm0, %v2751_v18 }
 0x24d   : > { %v3682_v54 = vadd.f32 %v3621_v40, %v3305_v33  ;;  %v3624_v20 = vpop.f32.mrf.mxu0 }
 0x24f   : > { %v3718_v55 = vadd.f32 %v6444_v9, %v3682_v54  ;;  %4361 = vmatmul.msk.bf16.gmra.mxu3 %vm676_vm0, %v3130_v24  ;;  %v2868_v2 = vpop.f32.mrf.mxu2  ;;  %4425 = vmatmul.msk.bf16.gmra.mxu0 %vm676_vm0, %v3507_v52 }
 0x250   : > { %v2927_v63 = vadd.f32 %v2868_v2, %v2547_v25 }
 0x251   : > { %v3750_v53 = vmax.f32 %v3718_v55, 0.0  ;;  %v2490_v21 = vpop.f32.mrf.mxu1 }
 0x252   : > { %v3247_v58 = vpop.f32.mrf.mxu3  ;;  %v2548_v59 = vadd.f32 %v2490_v21, %v5942_v44 }
 0x253   : > { %3814 = vst [vmem:[%s6470_s16 + $0x68] sm:$0xff] %v3750_v53  ;;  %v3306_v34 = vadd.f32 %v3247_v58, %v2927_v63 }
 0x255   : > { %v3683_v29 = vadd.f32 %v3624_v20, %v3306_v34  ;;  %v3626_v19 = vpop.f32.mrf.mxu0 }
 0x257   : > { %v3719_v0 = vadd.f32 %v6444_v9, %v3683_v29  ;;  %v2870_v15 = vpop.f32.mrf.mxu2 }
 0x258   : > { %v2928_v45 = vadd.f32 %v2870_v15, %v2548_v59 }
 0x259   : > { %v3751_v51 = vmax.f32 %v3719_v0, 0.0  ;;  %v2493_v56 = vpop.f32.mrf.mxu1 }
 0x25a   : > { %v3249_v39 = vpop.f32.mrf.mxu3  ;;  %v2549_v46 = vadd.f32 %v2493_v56, %v5979_v38 }
 0x25b   : > { %3815 = vst [vmem:[%s6470_s16 + $0x70] sm:$0xff] %v3751_v51  ;;  %v3307_v60 = vadd.f32 %v3249_v39, %v2928_v45 }
 0x25d   : > { %v3684_v42 = vadd.f32 %v3626_v19, %v3307_v60  ;;  %v3629_v49 = vpop.f32.mrf.mxu0 }
 0x25f   : > { %v3720_v43 = vadd.f32 %v6444_v9, %v3684_v42  ;;  %v2873_v27 = vpop.f32.mrf.mxu2 }
 0x260   : > { %v2929_v61 = vadd.f32 %v2873_v27, %v2549_v46 }
 0x261   : > { %v3752_v17 = vmax.f32 %v3720_v43, 0.0  ;;  %v2495_v11 = vpop.f32.mrf.mxu1 }
 0x262   : > { %v3252_v44 = vpop.f32.mrf.mxu3  ;;  %v2550_v28 = vadd.f32 %v2495_v11, %v6006_v14 }
 0x263   : > { %3816 = vst [vmem:[%s6470_s16 + $0x78] sm:$0xff] %v3752_v17  ;;  %v3308_v3 = vadd.f32 %v3252_v44, %v2929_v61 }
 0x265   : > { %v3685_v30 = vadd.f32 %v3629_v49, %v3308_v3  ;;  %v3631_v40 = vpop.f32.mrf.mxu0 }
 0x267   : > { %v3721_v62 = vadd.f32 %v6444_v9, %v3685_v30  ;;  %v2875_v31 = vpop.f32.mrf.mxu2 }
 0x268   : > { %v2930_v41 = vadd.f32 %v2875_v31, %v2550_v28 }
 0x269   : > { %v3753_v4 = vmax.f32 %v3721_v62, 0.0  ;;  %v2498_v10 = vpop.f32.mrf.mxu1 }
 0x26a   : > { %v3254_v38 = vpop.f32.mrf.mxu3  ;;  %v2551_v23 = vadd.f32 %v2498_v10, %v6043_v22 }
 0x26b   : > { %3817 = vst [vmem:[%s6470_s16 + $0x80] sm:$0xff] %v3753_v4  ;;  %v3309_v57 = vadd.f32 %v3254_v38, %v2930_v41  ;;  %v6751_v38 = vld [vmem:[%s6796_s5] ss:$0 sm:$0xff] }
 0x26d   : > { %v3686_v26 = vadd.f32 %v3631_v40, %v3309_v57  ;;  %v3634_v47 = vpop.f32.mrf.mxu0 }
 0x26f   : > { %v3722_v18 = vadd.f32 %v6444_v9, %v3686_v26  ;;  %v2878_v1 = vpop.f32.mrf.mxu2 }
 0x270   : > { %v2931_v33 = vadd.f32 %v2878_v1, %v2551_v23 }
 0x271   : > { %v3754_v6 = vmax.f32 %v3722_v18, 0.0  ;;  %v2500_v24 = vpop.f32.mrf.mxu1 }
 0x272   : > { %v3257_v14 = vpop.f32.mrf.mxu3  ;;  %v2552_v25 = vadd.f32 %v2500_v24, %v6070_v5 }
 0x273   : > { %3818 = vst [vmem:[%s6470_s16 + $0x88] sm:$0xff] %v3754_v6  ;;  %v3310_v54 = vadd.f32 %v3257_v14, %v2931_v33 }
 0x275   : > { %v3687_v52 = vadd.f32 %v3634_v47, %v3310_v54  ;;  %v3636_v20 = vpop.f32.mrf.mxu0 }
 0x277   : > { %v3723_v55 = vadd.f32 %v6444_v9, %v3687_v52  ;;  %v2880_v2 = vpop.f32.mrf.mxu2 }
 0x278   : > { %v2932_v63 = vadd.f32 %v2880_v2, %v2552_v25 }
 0x279   : > { %v3755_v53 = vmax.f32 %v3723_v55, 0.0  ;;  %v2503_v58 = vpop.f32.mrf.mxu1 }
 0x27a   : > { %v3259_v22 = vpop.f32.mrf.mxu3  ;;  %v2553_v0 = vadd.f32 %v2503_v58, %v6107_v13 }
 0x27b   : > { %3819 = vst [vmem:[%s6470_s16 + $0x90] sm:$0xff] %v3755_v53  ;;  %v3311_v21 = vadd.f32 %v3259_v22, %v2932_v63 }
 0x27d   : > { %v3688_v34 = vadd.f32 %v3636_v20, %v3311_v21  ;;  %v3639_v59 = vpop.f32.mrf.mxu0 }
 0x27f   : > { %v3724_v29 = vadd.f32 %v6444_v9, %v3688_v34  ;;  %v2883_v19 = vpop.f32.mrf.mxu2 }
 0x280   : > { %v2933_v51 = vadd.f32 %v2883_v19, %v2553_v0 }
 0x281   : > { %v3756_v15 = vmax.f32 %v3724_v29, 0.0  ;;  %v2505_v45 = vpop.f32.mrf.mxu1 }
 0x282   : > { %v3262_v5 = vpop.f32.mrf.mxu3  ;;  %v2554_v42 = vadd.f32 %v2505_v45, %v6134_v16 }
 0x283   : > { %3820 = vst [vmem:[%s6470_s16 + $0x98] sm:$0xff] %v3756_v15  ;;  %v3312_v39 = vadd.f32 %v3262_v5, %v2933_v51 }
 0x285   : > { %v3689_v56 = vadd.f32 %v3639_v59, %v3312_v39  ;;  %v3641_v43 = vpop.f32.mrf.mxu0 }
 0x287   : > { %v3725_v60 = vadd.f32 %v6444_v9, %v3689_v56  ;;  %v2885_v46 = vpop.f32.mrf.mxu2 }
 0x288   : > { %v2934_v27 = vadd.f32 %v2885_v46, %v2554_v42 }
 0x289   : > { %v3757_v49 = vmax.f32 %v3725_v60, 0.0  ;;  %v2508_v17 = vpop.f32.mrf.mxu1 }
 0x28a   : > { %v3264_v13 = vpop.f32.mrf.mxu3  ;;  %v2555_v3 = vadd.f32 %v2508_v17, %v6171_v35 }
 0x28b   : > { %3821 = vst [vmem:[%s6470_s16 + $0xa0] sm:$0xff] %v3757_v49  ;;  %v3313_v61 = vadd.f32 %v3264_v13, %v2934_v27 }
 0x28d   : > { %v3690_v44 = vadd.f32 %v3641_v43, %v3313_v61  ;;  %v3644_v30 = vpop.f32.mrf.mxu0 }
 0x28f   : > { %v3726_v11 = vadd.f32 %v6444_v9, %v3690_v44  ;;  %v2888_v62 = vpop.f32.mrf.mxu2 }
 0x290   : > { %v2935_v40 = vadd.f32 %v2888_v62, %v2555_v3 }
 0x291   : > { %v3758_v28 = vmax.f32 %v3726_v11, 0.0  ;;  %v2510_v31 = vpop.f32.mrf.mxu1 }
 0x292   : > { %v3267_v16 = vpop.f32.mrf.mxu3  ;;  %v2556_v9 = vadd.f32 %v2510_v31, %v6198_v50 }
 0x293   : > { %3822 = vst [vmem:[%s6470_s16 + $0xa8] sm:$0xff] %v3758_v28  ;;  %v3314_v4 = vadd.f32 %v3267_v16, %v2935_v40 }
 0x295   : > { %v3691_v41 = vadd.f32 %v3644_v30, %v3314_v4  ;;  %v3646_v35 = vpop.f32.mrf.mxu0 }
 0x297   : > { %v3727_v10 = vadd.f32 %v6751_v38, %v3691_v41  ;;  %v2890_v57 = vpop.f32.mrf.mxu2 }
 0x298   : > { %v2936_v18 = vadd.f32 %v2890_v57, %v2556_v9 }
 0x299   : > { %v3759_v26 = vmax.f32 %v3727_v10, 0.0  ;;  %v2513_v47 = vpop.f32.mrf.mxu1 }
 0x29a   : > { %v3269_v23 = vpop.f32.mrf.mxu3  ;;  %v2557_v14 = vadd.f32 %v2513_v47, %v6235_v12 }
 0x29b   : > { %3823 = vst [vmem:[%s6470_s16 + $0xb0] sm:$0xff] %v3759_v26  ;;  %v3315_v1 = vadd.f32 %v3269_v23, %v2936_v18 }
 0x29d   : > { %v3692_v6 = vadd.f32 %v3646_v35, %v3315_v1  ;;  %v3649_v24 = vpop.f32.mrf.mxu0 }
 0x29f   : > { %v3728_v33 = vadd.f32 %v6751_v38, %v3692_v6  ;;  %v2893_v54 = vpop.f32.mrf.mxu2 }
 0x2a0   : > { %v2937_v55 = vadd.f32 %v2893_v54, %v2557_v14 }
 0x2a1   : > { %v3760_v52 = vmax.f32 %v3728_v33, 0.0  ;;  %v2515_v25 = vpop.f32.mrf.mxu1 }
 0x2a2   : > { %v3272_v50 = vpop.f32.mrf.mxu3  ;;  %v2558_v63 = vadd.f32 %v2515_v25, %v6262_v8 }
 0x2a3   : > { %3824 = vst [vmem:[%s6470_s16 + $0xb8] sm:$0xff] %v3760_v52  ;;  %v3316_v20 = vadd.f32 %v3272_v50, %v2937_v55 }
 0x2a5   : > { %v3693_v2 = vadd.f32 %v3649_v24, %v3316_v20  ;;  %v3651_v22 = vpop.f32.mrf.mxu0 }
 0x2a7   : > { %v3729_v53 = vadd.f32 %v6751_v38, %v3693_v2  ;;  %v2895_v58 = vpop.f32.mrf.mxu2  ;;  %v6870_v2 = vld [vmem:[#allocation12_spill] sm:$0xff] }
 0x2a8   : > { %v2938_v34 = vadd.f32 %v2895_v58, %v2558_v63 }
 0x2a9   : > { %v3761_v21 = vmax.f32 %v3729_v53, 0.0  ;;  %v2518_v29 = vpop.f32.mrf.mxu1 }
 0x2aa   : > { %v3274_v12 = vpop.f32.mrf.mxu3  ;;  %v2559_v15 = vadd.f32 %v2518_v29, %v6299_v7 }
 0x2ab   : > { %3825 = vst [vmem:[%s6470_s16 + $0xc0] sm:$0xff] %v3761_v21  ;;  %v3317_v0 = vadd.f32 %v3274_v12, %v2938_v34 }
 0x2ad   : > { %v3694_v59 = vadd.f32 %v3651_v22, %v3317_v0  ;;  %v3654_v51 = vpop.f32.mrf.mxu0 }
 0x2af   : > { %v3730_v19 = vadd.f32 %v6751_v38, %v3694_v59  ;;  %v2898_v5 = vpop.f32.mrf.mxu2 }
 0x2b0   : > { %v2939_v39 = vadd.f32 %v2898_v5, %v2559_v15 }
 0x2b1   : > { %v3762_v45 = vmax.f32 %v3730_v19, 0.0  ;;  %v2520_v56 = vpop.f32.mrf.mxu1 }
 0x2b2   : > { %v3277_v8 = vpop.f32.mrf.mxu3  ;;  %v2560_v46 = vadd.f32 %v2520_v56, %v6316_v48 }
 0x2b3   : > { %3826 = vst [vmem:[%s6470_s16 + $0xc8] sm:$0xff] %v3762_v45  ;;  %v3318_v60 = vadd.f32 %v3277_v8, %v2939_v39 }
 0x2b5   : > { %v3695_v42 = vadd.f32 %v3654_v51, %v3318_v60  ;;  %v3656_v49 = vpop.f32.mrf.mxu0 }
 0x2b7   : > { %v3731_v43 = vadd.f32 %v6751_v38, %v3695_v42  ;;  %v2900_v27 = vpop.f32.mrf.mxu2 }
 0x2b8   : > { %v2940_v17 = vadd.f32 %v2900_v27, %v2560_v46 }
 0x2b9   : > { %v3763_v13 = vmax.f32 %v3731_v43, 0.0  ;;  %v2523_v61 = vpop.f32.mrf.mxu1 }
 0x2ba   : > { %v3279_v7 = vpop.f32.mrf.mxu3  ;;  %v2561_v30 = vadd.f32 %v2523_v61, %v6361_v32 }
 0x2bb   : > { %3827 = vst [vmem:[%s6470_s16 + $0xd0] sm:$0xff] %v3763_v13  ;;  %v3319_v44 = vadd.f32 %v3279_v7, %v2940_v17 }
 0x2bd   : > { %v3696_v11 = vadd.f32 %v3656_v49, %v3319_v44  ;;  %v3659_v62 = vpop.f32.mrf.mxu0 }
 0x2bf   : > { %v3732_v3 = vadd.f32 %v6751_v38, %v3696_v11  ;;  %v2903_v28 = vpop.f32.mrf.mxu2 }
 0x2c0   : > { %v2941_v16 = vadd.f32 %v2903_v28, %v2561_v30 }
 0x2c1   : > { %v3764_v40 = vmax.f32 %v3732_v3, 0.0  ;;  %v2525_v31 = vpop.f32.mrf.mxu1 }
 0x2c2   : > { %v3282_v48 = vpop.f32.mrf.mxu3  ;;  %v2562_v9 = vadd.f32 %v2525_v31, %v6374_v36 }
 0x2c3   : > { %3828 = vst [vmem:[%s6470_s16 + $0xd8] sm:$0xff] %v3764_v40  ;;  %v3320_v4 = vadd.f32 %v3282_v48, %v2941_v16 }
 0x2c5   : > { %v3697_v41 = vadd.f32 %v3659_v62, %v3320_v4  ;;  %v3661_v35 = vpop.f32.mrf.mxu0 }
 0x2c7   : > { %v3733_v10 = vadd.f32 %v6751_v38, %v3697_v41  ;;  %v2905_v57 = vpop.f32.mrf.mxu2 }
 0x2c8   : > { %v2942_v18 = vadd.f32 %v2905_v57, %v2562_v9 }
 0x2c9   : > { %v3765_v26 = vmax.f32 %v3733_v10, 0.0  ;;  %v2528_v23 = vpop.f32.mrf.mxu1 }
 0x2ca   : > { %v3284_v32 = vpop.f32.mrf.mxu3  ;;  %v2563_v33 = vadd.f32 %v2528_v23, %v6403_v37 }
 0x2cb   : > { %3829 = vst [vmem:[%s6470_s16 + $0xe0] sm:$0xff] %v3765_v26  ;;  %v3321_v47 = vadd.f32 %v3284_v32, %v2942_v18 }
 0x2cd   : > { %v3698_v1 = vadd.f32 %v3661_v35, %v3321_v47  ;;  %v3664_v52 = vpop.f32.mrf.mxu0 }
 0x2cf   : > { %v3734_v6 = vadd.f32 %v6751_v38, %v3698_v1  ;;  %v2908_v14 = vpop.f32.mrf.mxu2 }
 0x2d0   : > { %v2943_v54 = vadd.f32 %v2908_v14, %v2563_v33 }
 0x2d1   : > { %v3766_v24 = vmax.f32 %v3734_v6, 0.0  ;;  %v2530_v50 = vpop.f32.mrf.mxu1 }
 0x2d2   : > { %v3287_v36 = vpop.f32.mrf.mxu3  ;;  %v2564_v53 = vadd.f32 %v2530_v50, %v6870_v2 }
 0x2d3   : > { %3830 = vst [vmem:[%s6470_s16 + $0xe8] sm:$0xff] %v3766_v24  ;;  %v3322_v55 = vadd.f32 %v3287_v36, %v2943_v54 }
 0x2d5   : > { %v3699_v25 = vadd.f32 %v3664_v52, %v3322_v55  ;;  %v3666_v34 = vpop.f32.mrf.mxu0 }
 0x2d7   : > { %v3735_v20 = vadd.f32 %v6751_v38, %v3699_v25  ;;  %v2910_v63 = vpop.f32.mrf.mxu2 }
 0x2d8   : > { %v2944_v58 = vadd.f32 %v2910_v63, %v2564_v53 }
 0x2d9   : > { %v3767_v22 = vmax.f32 %v3735_v20, 0.0 }
 0x2da   : > { %v3289_v21 = vpop.f32.mrf.mxu3 }
 0x2db   : > { %3831 = vst [vmem:[%s6470_s16 + $0xf0] sm:$0xff] %v3767_v22  ;;  %v3323_v37 = vadd.f32 %v3289_v21, %v2944_v58 }
 0x2dd   : > { %v3700_v12 = vadd.f32 %v3666_v34, %v3323_v37 }
 0x2df   : > { %v3736_v29 = vadd.f32 %v6751_v38, %v3700_v12 }
 0x2e1   : > { %v3768_v0 = vmax.f32 %v3736_v29, 0.0 }
 0x2e3   : > { %3832 = vst [vmem:[%s6470_s16 + $0xf8] sm:$0xff] %v3768_v0 }
 0x2e4 PF: > { %s18_s26 = sadd.s32 1, %s4544_s26   ;;  %s6871_s24 = smov %s4540_s25 }
 0x2e5   : > { %p15_p5 = scmp.ge.s32.totalorder %s18_s26, 4   ;;  %s6872_s25 = smov %s6874_s27 }
 0x2e7   :  { %17 = sbr.rel (!%p15_p5) target bundleno = 2 (0x2), region = 101 }

</bundles_post_ra>
